<compile_context>
chip_gen: v7x
topology: tpu7x:2x2x1
jax: 0.10.0
libtpu: 0.0.40
codegen_flags: <defaults>
</compile_context>

<pallas_src>
import jax
import jax.numpy as jnp
from jax.experimental import pallas as pl
from jax.experimental.pallas import tpu as pltpu

VOCAB = 32
EMB = 16
HIDDEN = 32
LAMBDA_PGEN = 0.1
SOS_ID = 1

# Keep f32: every matmul here is a 2-row (latency-bound) push, so bf16 operands change
# throughput, not latency, and re-casting the recurrent h each step adds compounding
# rounding vs the PyTorch reference. (On v5e the f32 requirement also applies to VPU/EUP.)
MXU_DTYPE = jnp.float32

_VMEM = pl.BlockSpec(memory_space=pltpu.MemorySpace.VMEM)


def _mm(a, b):
    return jnp.dot(a.astype(MXU_DTYPE), b.astype(MXU_DTYPE),
                   preferred_element_type=jnp.float32)


def _gru_step(gi, h, wh, bh):
    """PyTorch GRUCell with the input-side projection gi = x@W_i + b_i precomputed
    (hoisted off the recurrence). Gate order (r, z, n); merged hidden-side matmul."""
    H = h.shape[-1]
    gh = _mm(h, wh) + bh                                  # only matmul on the serial chain
    r = jax.nn.sigmoid(gi[:, 0:H] + gh[:, 0:H])
    z = jax.nn.sigmoid(gi[:, H:2 * H] + gh[:, H:2 * H])
    n = jnp.tanh(gi[:, 2 * H:3 * H] + r * gh[:, 2 * H:3 * H])
    return (1.0 - z) * n + z * h


def seq2seq_fused_kernel(
        inputs_ref, tgt_ref, imask_ref, tmask_ref,   # data: int ids + float masks
        emb_ref,                                     # (V, E) embedding table
        w_in_ref,                                    # (E+1, 9H): [Wif|Wib|Wid ; bif|bib|bid]
        w_h_ref,                                     # (H+1, 9H): [Whf|Whb|Whd ; bhf|bhb|bhd]
        lin_ref,                                     # (2H+1, H): bidirTrans linear (+bias row)
        wa_ref,                                      # (2H, H):  attention key projection
        wo_ref,                                      # (3H+1, V): fused output proj [Woh;Woc;bo]
        loss_ref):                                   # (1, 1) output
    B, S = inputs_ref.shape
    T = tgt_ref.shape[1]
    H, V, E = HIDDEN, VOCAB, EMB

    inputs = inputs_ref[...]
    tgt = tgt_ref[...]
    imask = imask_ref[...]
    tmask = tmask_ref[...]
    emb = emb_ref[...]
    w_in = w_in_ref[...]
    w_h = w_h_ref[...]
    lin = lin_ref[...]
    wa = wa_ref[...]
    wo = wo_ref[...]

    # ----- unpack packed weight blobs (one-time slicing; DMA count stays at 10) -----------
    wif, wib, wid = w_in[:E, 0:3 * H], w_in[:E, 3 * H:6 * H], w_in[:E, 6 * H:9 * H]
    bif, bib, bid = w_in[E:E + 1, 0:3 * H], w_in[E:E + 1, 3 * H:6 * H], w_in[E:E + 1, 6 * H:9 * H]
    whf, whb, whd = w_h[:H, 0:3 * H], w_h[:H, 3 * H:6 * H], w_h[:H, 6 * H:9 * H]
    bhf, bhb, bhd = w_h[H:H + 1, 0:3 * H], w_h[H:H + 1, 3 * H:6 * H], w_h[H:H + 1, 6 * H:9 * H]
    wlin, blin = lin[:2 * H, :], lin[2 * H:2 * H + 1, :]
    wout, bout = wo[:3 * H, :], wo[3 * H:3 * H + 1, :]

    # ----- in-kernel embedding lookups via one-hot @ emb (V=32, E=16: negligible) ---------
    enc_oh = (jax.lax.broadcasted_iota(jnp.int32, (B, S, V), 2)
              == inputs[:, :, None]).astype(jnp.float32)             # (B, S, V)
    tgt_oh = (jax.lax.broadcasted_iota(jnp.int32, (B, T, V), 2)
              == tgt[:, :, None]).astype(jnp.float32)                # (B, T, V)
    sos_oh = (jax.lax.broadcasted_iota(jnp.int32, (B, 1, V), 2)
              == SOS_ID).astype(jnp.float32)
    dec_oh = jnp.concatenate([sos_oh, tgt_oh[:, :T - 1, :]], axis=1)  # teacher forcing

    enc_emb = _mm(enc_oh.reshape(B * S, V), emb)                      # (B*S, E)
    dec_emb = _mm(dec_oh.reshape(B * T, V), emb)                      # (B*T, E)

    # ----- hoisted input-side GRU projections (off the serial recurrence) -----------------
    gi_fwd = (_mm(enc_emb, wif) + bif).reshape(B, S, 3 * H)
    gi_bwd = (_mm(enc_emb, wib) + bib).reshape(B, S, 3 * H)
    gi_dec = (_mm(dec_emb, wid) + bid).reshape(B, T, 3 * H)

    # ----- bidirectional encoder: fwd & bwd interleaved, states stay in vregs -------------
    hf = jnp.zeros((B, H), jnp.float32)
    hb = jnp.zeros((B, H), jnp.float32)
    hf_out = [None] * S
    hb_out = [None] * S
    for i in range(S):
        j = S - 1 - i
        mf = imask[:, i:i + 1]                    # (B, 1)
        mb = imask[:, j:j + 1]
        hf = mf * _gru_step(gi_fwd[:, i, :], hf, whf, bhf) + (1.0 - mf) * hf
        hb = mb * _gru_step(gi_bwd[:, j, :], hb, whb, bhb) + (1.0 - mb) * hb
        hf_out[i] = hf * mf                       # encoder_output is zero at padded steps
        hb_out[j] = hb * mb

    enc = jnp.stack([jnp.concatenate([hf_out[s], hb_out[s]], axis=-1)
                     for s in range(S)], axis=1)                      # (B, S, 2H)

    # ----- bidirTrans + precomputed attention keys -----------------------------------------
    h = _mm(jnp.concatenate([hf, hb], axis=-1), wlin) + blin          # (B, H) decoder init
    enc_keys = _mm(enc.reshape(B * S, 2 * H), wa).reshape(B, S, H)    # (B, S, H)

    # ----- decoder + dot attention + fused masked-NLL loss ---------------------------------
    numer = jnp.zeros((1, 1), jnp.float32)
    for t in range(T):
        h = _gru_step(gi_dec[:, t, :], h, whd, bhd)                   # (B, H)

        # Scores / context as VPU broadcast-mul + reduce (operands are 1-2 vregs;
        # avoids 4*T serial sub-vreg MXU pushes on the critical path).
        scores = jnp.sum(h[:, None, :] * enc_keys, axis=-1)           # (B, S)
        scores = jnp.where(imask > 0.0, scores, jnp.full_like(scores, -1e30))
        scores = scores - jnp.max(scores, axis=-1, keepdims=True)
        e = jnp.exp(scores) * imask
        attn = e / jnp.maximum(jnp.sum(e, axis=-1, keepdims=True), 1e-9)
        ctx = jnp.sum(attn[:, :, None] * enc, axis=1)                 # (B, 2H)

        # Fused output projection: one (B,3H)@(3H,V) push per step.
        logits = _mm(jnp.concatenate([h, ctx], axis=-1), wout) + bout  # (B, V)
        m = jnp.max(logits, axis=-1, keepdims=True)
        ex = jnp.exp(logits - m)
        logp = (logits - m) - jnp.log(jnp.sum(ex, axis=-1, keepdims=True))

        tok_logp = jnp.sum(logp * tgt_oh[:, t, :], axis=-1, keepdims=True)   # (B, 1)
        numer = numer + jnp.sum(tok_logp * tmask[:, t:t + 1], axis=0, keepdims=True)

    # Denominator = total token count across the whole batch.
    denom = jnp.maximum(
        jnp.sum(jnp.sum(tmask, axis=1, keepdims=True), axis=0, keepdims=True), 1.0)
    # use_copy=False -> p_gen == 1 everywhere -> masked-mean(p_gen) == 1 (constant term).
    loss_ref[...] = -numer / denom - LAMBDA_PGEN


# ------------------------------ model (params + glue) ------------------------------ #

def init_params(key):
    keys = iter(jax.random.split(key, 24))

    def rnd(shape, scale=0.1):
        return jax.random.normal(next(keys), shape, jnp.float32) * scale

    H, E, V = HIDDEN, EMB, VOCAB

    def gru(in_dim):
        # merged gate layout: columns [ r | z | n ]  (PyTorch GRU gate order)
        return (rnd((in_dim, 3 * H)), rnd((H, 3 * H)),
                rnd((1, 3 * H), 0.01), rnd((1, 3 * H), 0.01))

    return {
        'emb': rnd((V, E)),
        'enc_fwd': gru(E),
        'enc_bwd': gru(E),
        'dec': gru(E),
        'lin_hidden_w': rnd((2 * H, H)),   # self.linear_hidden (bidirTrans)
        'lin_hidden_b': rnd((1, H), 0.01),
        'wa': rnd((2 * H, H)),             # attention key projection (Luong general)
        'woh': rnd((H, V)),                # output proj (hidden part)
        'woc': rnd((2 * H, V)),            # output proj (context part)
        'bo': rnd((1, V), 0.01),
    }


def _pack_params(p):
    """Collapse the 19 small weight/bias tensors into 5 contiguous arrays (fewer DMAs)."""
    w_in = jnp.concatenate([
        jnp.concatenate([p['enc_fwd'][0], p['enc_bwd'][0], p['dec'][0]], axis=1),
        jnp.concatenate([p['enc_fwd'][2], p['enc_bwd'][2], p['dec'][2]], axis=1)], axis=0)
    w_h = jnp.concatenate([
        jnp.concatenate([p['enc_fwd'][1], p['enc_bwd'][1], p['dec'][1]], axis=1),
        jnp.concatenate([p['enc_fwd'][3], p['enc_bwd'][3], p['dec'][3]], axis=1)], axis=0)
    lin = jnp.concatenate([p['lin_hidden_w'], p['lin_hidden_b']], axis=0)
    wo = jnp.concatenate([p['woh'], p['woc'], p['bo']], axis=0)
    return w_in, w_h, lin, p['wa'], wo


def seq2seq_forward(params, inputs, input_mask, targets, target_mask):
    B, S = inputs.shape
    T = targets.shape[1]
    H, V, E = HIDDEN, VOCAB, EMB
    w_in, w_h, lin, wa, wo = _pack_params(params)

    flops = 2.0 * (B * S * V * E + B * T * V * E                       # one-hot embeddings
                   + 2 * B * S * E * 3 * H + B * T * E * 3 * H         # hoisted gi matmuls
                   + (2 * S + T) * B * H * 3 * H                       # recurrent h @ W_h
                   + B * 2 * H * H + B * S * 2 * H * H                 # bidirTrans, enc_keys
                   + T * (B * S * H + B * S * 2 * H + B * 3 * H * V))  # attn + logits
    cost = pl.CostEstimate(
        flops=int(flops),
        transcendentals=int(B * (2 * S + T) * 3 * H + T * B * (S + V)),
        bytes_accessed=int(4 * (w_in.size + w_h.size + lin.size + wa.size + wo.size
                                + params['emb'].size + inputs.size + targets.size
                                + input_mask.size + target_mask.size + 1)))

    loss = pl.pallas_call(
        seq2seq_fused_kernel,
        out_shape=jax.ShapeDtypeStruct((1, 1), jnp.float32),
        in_specs=[_VMEM] * 10,
        out_specs=_VMEM,
        compiler_params=pltpu.CompilerParams(vmem_limit_bytes=8 * 1024 * 1024),
        cost_estimate=cost,
    )(inputs.astype(jnp.int32), targets.astype(jnp.int32),
      input_mask, target_mask, params['emb'], w_in, w_h, lin, wa, wo)

    p_gen = jnp.ones((B, T), jnp.float32)   # use_copy=False -> p_gen == 1 (constant)
    return loss[0, 0], p_gen


if __name__ == "__main__":
    B, S, T = 2, 8, 6
    key = jax.random.PRNGKey(0)
    pkey, ikey, tkey = jax.random.split(key, 3)
    params = init_params(pkey)

    inputs = jax.random.randint(ikey, (B, S), 2, VOCAB, dtype=jnp.int32)
    targets = jax.random.randint(tkey, (B, T), 2, VOCAB, dtype=jnp.int32)
    input_lens = jnp.array([8, 6], jnp.int32)
    target_lens = jnp.array([6, 4], jnp.int32)
    input_mask = (jnp.arange(S)[None, :] < input_lens[:, None]).astype(jnp.float32)
    target_mask = (jnp.arange(T)[None, :] < target_lens[:, None]).astype(jnp.float32)

    fwd = jax.jit(seq2seq_forward)
    loss, p_gen = fwd(params, inputs, input_mask, targets, target_mask)
    jax.block_until_ready((loss, p_gen))
    assert loss.shape == () and p_gen.shape == (B, T)
    assert bool(jnp.isfinite(loss))
    print("KERNEL_OK")
</pallas_src>

<mosaic_0001>
module attributes {stable_mosaic.version = 11 : i64} {
  func.func @seq2seq_fused_kernel(%arg0: memref<2x8xi32, #tpu.memory_space<vmem>>, %arg1: memref<2x6xi32, #tpu.memory_space<vmem>>, %arg2: memref<2x8xf32, #tpu.memory_space<vmem>>, %arg3: memref<2x6xf32, #tpu.memory_space<vmem>>, %arg4: memref<32x16xf32, #tpu.memory_space<vmem>>, %arg5: memref<17x288xf32, #tpu.memory_space<vmem>>, %arg6: memref<33x288xf32, #tpu.memory_space<vmem>>, %arg7: memref<65x32xf32, #tpu.memory_space<vmem>>, %arg8: memref<64x32xf32, #tpu.memory_space<vmem>>, %arg9: memref<97x32xf32, #tpu.memory_space<vmem>>, %arg10: memref<1x1xf32, #tpu.memory_space<vmem>>) attributes {dimension_semantics = [], scalar_prefetch = 0 : i64, scratch_operands = 0 : i64, tpu.core_type = #tpu.core_type<tc>} {
    %c0 = arith.constant 0 : index
    %c0_0 = arith.constant 0 : index
    %0 = vector.load %arg0[%c0, %c0_0] : memref<2x8xi32, #tpu.memory_space<vmem>>, vector<2x8xi32>
    %c0_1 = arith.constant 0 : index
    %c0_2 = arith.constant 0 : index
    %1 = vector.load %arg1[%c0_1, %c0_2] : memref<2x6xi32, #tpu.memory_space<vmem>>, vector<2x6xi32>
    %c0_3 = arith.constant 0 : index
    %c0_4 = arith.constant 0 : index
    %2 = vector.load %arg2[%c0_3, %c0_4] : memref<2x8xf32, #tpu.memory_space<vmem>>, vector<2x8xf32>
    %c0_5 = arith.constant 0 : index
    %c0_6 = arith.constant 0 : index
    %3 = vector.load %arg3[%c0_5, %c0_6] : memref<2x6xf32, #tpu.memory_space<vmem>>, vector<2x6xf32>
    %c0_7 = arith.constant 0 : index
    %c0_8 = arith.constant 0 : index
    %4 = vector.load %arg4[%c0_7, %c0_8] : memref<32x16xf32, #tpu.memory_space<vmem>>, vector<32x16xf32>
    %c0_9 = arith.constant 0 : index
    %c0_10 = arith.constant 0 : index
    %5 = vector.load %arg5[%c0_9, %c0_10] : memref<17x288xf32, #tpu.memory_space<vmem>>, vector<17x288xf32>
    %c0_11 = arith.constant 0 : index
    %c0_12 = arith.constant 0 : index
    %6 = vector.load %arg6[%c0_11, %c0_12] : memref<33x288xf32, #tpu.memory_space<vmem>>, vector<33x288xf32>
    %c0_13 = arith.constant 0 : index
    %c0_14 = arith.constant 0 : index
    %7 = vector.load %arg7[%c0_13, %c0_14] : memref<65x32xf32, #tpu.memory_space<vmem>>, vector<65x32xf32>
    %c0_15 = arith.constant 0 : index
    %c0_16 = arith.constant 0 : index
    %8 = vector.load %arg8[%c0_15, %c0_16] : memref<64x32xf32, #tpu.memory_space<vmem>>, vector<64x32xf32>
    %c0_17 = arith.constant 0 : index
    %c0_18 = arith.constant 0 : index
    %9 = vector.load %arg9[%c0_17, %c0_18] : memref<97x32xf32, #tpu.memory_space<vmem>>, vector<97x32xf32>
    %10 = vector.extract_strided_slice %5 {offsets = [0, 0], sizes = [16, 96], strides = [1, 1]} : vector<17x288xf32> to vector<16x96xf32>
    %11 = vector.extract_strided_slice %5 {offsets = [0, 96], sizes = [16, 96], strides = [1, 1]} : vector<17x288xf32> to vector<16x96xf32>
    %12 = vector.extract_strided_slice %5 {offsets = [0, 192], sizes = [16, 96], strides = [1, 1]} : vector<17x288xf32> to vector<16x96xf32>
    %13 = vector.extract_strided_slice %5 {offsets = [16, 0], sizes = [1, 96], strides = [1, 1]} : vector<17x288xf32> to vector<1x96xf32>
    %14 = vector.extract_strided_slice %5 {offsets = [16, 96], sizes = [1, 96], strides = [1, 1]} : vector<17x288xf32> to vector<1x96xf32>
    %15 = vector.extract_strided_slice %5 {offsets = [16, 192], sizes = [1, 96], strides = [1, 1]} : vector<17x288xf32> to vector<1x96xf32>
    %16 = vector.extract_strided_slice %6 {offsets = [0, 0], sizes = [32, 96], strides = [1, 1]} : vector<33x288xf32> to vector<32x96xf32>
    %17 = vector.extract_strided_slice %6 {offsets = [0, 96], sizes = [32, 96], strides = [1, 1]} : vector<33x288xf32> to vector<32x96xf32>
    %18 = vector.extract_strided_slice %6 {offsets = [0, 192], sizes = [32, 96], strides = [1, 1]} : vector<33x288xf32> to vector<32x96xf32>
    %19 = vector.extract_strided_slice %6 {offsets = [32, 0], sizes = [1, 96], strides = [1, 1]} : vector<33x288xf32> to vector<1x96xf32>
    %20 = vector.extract_strided_slice %6 {offsets = [32, 96], sizes = [1, 96], strides = [1, 1]} : vector<33x288xf32> to vector<1x96xf32>
    %21 = vector.extract_strided_slice %6 {offsets = [32, 192], sizes = [1, 96], strides = [1, 1]} : vector<33x288xf32> to vector<1x96xf32>
    %22 = vector.extract_strided_slice %7 {offsets = [0, 0], sizes = [64, 32], strides = [1, 1]} : vector<65x32xf32> to vector<64x32xf32>
    %23 = vector.extract_strided_slice %7 {offsets = [64, 0], sizes = [1, 32], strides = [1, 1]} : vector<65x32xf32> to vector<1x32xf32>
    %24 = vector.extract_strided_slice %9 {offsets = [0, 0], sizes = [96, 32], strides = [1, 1]} : vector<97x32xf32> to vector<96x32xf32>
    %25 = vector.extract_strided_slice %9 {offsets = [96, 0], sizes = [1, 32], strides = [1, 1]} : vector<97x32xf32> to vector<1x32xf32>
    %26 = tpu.iota {dimensions = array<i32: 2>} : vector<2x8x32xi32>
    %27 = vector.shape_cast %0 : vector<2x8xi32> to vector<2x8x1xi32>
    %28 = vector.broadcast %27 : vector<2x8x1xi32> to vector<2x8x32xi32>
    %29 = arith.cmpi eq, %26, %28 : vector<2x8x32xi32>
    %30 = arith.extui %29 : vector<2x8x32xi1> to vector<2x8x32xi32>
    %31 = arith.sitofp %30 : vector<2x8x32xi32> to vector<2x8x32xf32>
    %32 = tpu.iota {dimensions = array<i32: 2>} : vector<2x6x32xi32>
    %33 = vector.shape_cast %1 : vector<2x6xi32> to vector<2x6x1xi32>
    %34 = vector.broadcast %33 : vector<2x6x1xi32> to vector<2x6x32xi32>
    %35 = arith.cmpi eq, %32, %34 : vector<2x6x32xi32>
    %36 = arith.extui %35 : vector<2x6x32xi1> to vector<2x6x32xi32>
    %37 = arith.sitofp %36 : vector<2x6x32xi32> to vector<2x6x32xf32>
    %38 = tpu.iota {dimensions = array<i32: 2>} : vector<2x1x32xi32>
    %c1_i32 = arith.constant 1 : i32
    %39 = vector.broadcast %c1_i32 : i32 to vector<2x1x32xi32>
    %40 = arith.cmpi eq, %38, %39 : vector<2x1x32xi32>
    %41 = arith.extui %40 : vector<2x1x32xi1> to vector<2x1x32xi32>
    %42 = arith.sitofp %41 : vector<2x1x32xi32> to vector<2x1x32xf32>
    %43 = vector.extract_strided_slice %37 {offsets = [0, 0, 0], sizes = [2, 5, 32], strides = [1, 1, 1]} : vector<2x6x32xf32> to vector<2x5x32xf32>
    %44 = tpu.concatenate %42, %43 in 1 : vector<2x1x32xf32>, vector<2x5x32xf32> -> vector<2x6x32xf32>
    %45 = vector.shape_cast %31 : vector<2x8x32xf32> to vector<16x32xf32>
    %cst = arith.constant dense<0.000000e+00> : vector<16x16xf32>
    %46 = tpu.matmul %45, %4, %cst {dimension_numbers = #tpu.dot_dimension_numbers<[1], [0], [0], [1], [0, 0, 1, 1], [], []>} : vector<16x32xf32>, vector<32x16xf32>, vector<16x16xf32> -> vector<16x16xf32>
    %47 = vector.shape_cast %44 : vector<2x6x32xf32> to vector<12x32xf32>
    %cst_19 = arith.constant dense<0.000000e+00> : vector<12x16xf32>
    %48 = tpu.matmul %47, %4, %cst_19 {dimension_numbers = #tpu.dot_dimension_numbers<[1], [0], [0], [1], [0, 0, 1, 1], [], []>} : vector<12x32xf32>, vector<32x16xf32>, vector<12x16xf32> -> vector<12x16xf32>
    %cst_20 = arith.constant dense<0.000000e+00> : vector<16x96xf32>
    %49 = tpu.matmul %46, %10, %cst_20 {dimension_numbers = #tpu.dot_dimension_numbers<[1], [0], [0], [1], [0, 0, 1, 1], [], []>} : vector<16x16xf32>, vector<16x96xf32>, vector<16x96xf32> -> vector<16x96xf32>
    %50 = vector.broadcast %13 : vector<1x96xf32> to vector<16x96xf32>
    %51 = arith.addf %49, %50 : vector<16x96xf32>
    %52 = vector.shape_cast %51 : vector<16x96xf32> to vector<2x8x96xf32>
    %cst_21 = arith.constant dense<0.000000e+00> : vector<16x96xf32>
    %53 = tpu.matmul %46, %11, %cst_21 {dimension_numbers = #tpu.dot_dimension_numbers<[1], [0], [0], [1], [0, 0, 1, 1], [], []>} : vector<16x16xf32>, vector<16x96xf32>, vector<16x96xf32> -> vector<16x96xf32>
    %54 = vector.broadcast %14 : vector<1x96xf32> to vector<16x96xf32>
    %55 = arith.addf %53, %54 : vector<16x96xf32>
    %56 = vector.shape_cast %55 : vector<16x96xf32> to vector<2x8x96xf32>
    %cst_22 = arith.constant dense<0.000000e+00> : vector<12x96xf32>
    %57 = tpu.matmul %48, %12, %cst_22 {dimension_numbers = #tpu.dot_dimension_numbers<[1], [0], [0], [1], [0, 0, 1, 1], [], []>} : vector<12x16xf32>, vector<16x96xf32>, vector<12x96xf32> -> vector<12x96xf32>
    %58 = vector.broadcast %15 : vector<1x96xf32> to vector<12x96xf32>
    %59 = arith.addf %57, %58 : vector<12x96xf32>
    %60 = vector.shape_cast %59 : vector<12x96xf32> to vector<2x6x96xf32>
    %cst_23 = arith.constant 0.000000e+00 : f32
    %61 = vector.broadcast %cst_23 : f32 to vector<2x32xf32>
    %cst_24 = arith.constant 0.000000e+00 : f32
    %62 = vector.broadcast %cst_24 : f32 to vector<2x32xf32>
    %63 = vector.extract_strided_slice %2 {offsets = [0, 0], sizes = [2, 1], strides = [1, 1]} : vector<2x8xf32> to vector<2x1xf32>
    %64 = vector.extract_strided_slice %2 {offsets = [0, 7], sizes = [2, 1], strides = [1, 1]} : vector<2x8xf32> to vector<2x1xf32>
    %65 = vector.extract_strided_slice %52 {offsets = [0, 0, 0], sizes = [2, 1, 96], strides = [1, 1, 1]} : vector<2x8x96xf32> to vector<2x1x96xf32>
    %66 = vector.shape_cast %65 : vector<2x1x96xf32> to vector<2x96xf32>
    %cst_25 = arith.constant dense<0.000000e+00> : vector<2x96xf32>
    %67 = tpu.matmul %61, %16, %cst_25 {dimension_numbers = #tpu.dot_dimension_numbers<[1], [0], [0], [1], [0, 0, 1, 1], [], []>} : vector<2x32xf32>, vector<32x96xf32>, vector<2x96xf32> -> vector<2x96xf32>
    %68 = vector.broadcast %19 : vector<1x96xf32> to vector<2x96xf32>
    %69 = arith.addf %67, %68 : vector<2x96xf32>
    %70 = vector.extract_strided_slice %66 {offsets = [0, 0], sizes = [2, 32], strides = [1, 1]} : vector<2x96xf32> to vector<2x32xf32>
    %71 = vector.extract_strided_slice %69 {offsets = [0, 0], sizes = [2, 32], strides = [1, 1]} : vector<2x96xf32> to vector<2x32xf32>
    %72 = arith.addf %70, %71 : vector<2x32xf32>
    %73 = arith.negf %72 : vector<2x32xf32>
    %74 = math.exp %73 : vector<2x32xf32>
    %cst_26 = arith.constant 1.000000e+00 : f32
    %75 = vector.broadcast %cst_26 : f32 to vector<2x32xf32>
    %76 = arith.addf %75, %74 : vector<2x32xf32>
    %77 = arith.divf %75, %76 : vector<2x32xf32>
    %78 = vector.extract_strided_slice %66 {offsets = [0, 32], sizes = [2, 32], strides = [1, 1]} : vector<2x96xf32> to vector<2x32xf32>
    %79 = vector.extract_strided_slice %69 {offsets = [0, 32], sizes = [2, 32], strides = [1, 1]} : vector<2x96xf32> to vector<2x32xf32>
    %80 = arith.addf %78, %79 : vector<2x32xf32>
    %81 = arith.negf %80 : vector<2x32xf32>
    %82 = math.exp %81 : vector<2x32xf32>
    %cst_27 = arith.constant 1.000000e+00 : f32
    %83 = vector.broadcast %cst_27 : f32 to vector<2x32xf32>
    %84 = arith.addf %83, %82 : vector<2x32xf32>
    %85 = arith.divf %83, %84 : vector<2x32xf32>
    %86 = vector.extract_strided_slice %66 {offsets = [0, 64], sizes = [2, 32], strides = [1, 1]} : vector<2x96xf32> to vector<2x32xf32>
    %87 = vector.extract_strided_slice %69 {offsets = [0, 64], sizes = [2, 32], strides = [1, 1]} : vector<2x96xf32> to vector<2x32xf32>
    %88 = arith.mulf %77, %87 : vector<2x32xf32>
    %89 = arith.addf %86, %88 : vector<2x32xf32>
    %90 = math.tanh %89 : vector<2x32xf32>
    %cst_28 = arith.constant 1.000000e+00 : f32
    %91 = vector.broadcast %cst_28 : f32 to vector<2x32xf32>
    %92 = arith.subf %91, %85 : vector<2x32xf32>
    %93 = arith.mulf %92, %90 : vector<2x32xf32>
    %94 = arith.mulf %85, %61 : vector<2x32xf32>
    %95 = arith.addf %93, %94 : vector<2x32xf32>
    %96 = vector.broadcast %63 : vector<2x1xf32> to vector<2x32xf32>
    %97 = arith.mulf %96, %95 : vector<2x32xf32>
    %cst_29 = arith.constant 1.000000e+00 : f32
    %98 = vector.broadcast %cst_29 : f32 to vector<2x1xf32>
    %99 = arith.subf %98, %63 : vector<2x1xf32>
    %100 = vector.broadcast %99 : vector<2x1xf32> to vector<2x32xf32>
    %101 = arith.mulf %100, %61 : vector<2x32xf32>
    %102 = arith.addf %97, %101 : vector<2x32xf32>
    %103 = vector.extract_strided_slice %56 {offsets = [0, 7, 0], sizes = [2, 1, 96], strides = [1, 1, 1]} : vector<2x8x96xf32> to vector<2x1x96xf32>
    %104 = vector.shape_cast %103 : vector<2x1x96xf32> to vector<2x96xf32>
    %cst_30 = arith.constant dense<0.000000e+00> : vector<2x96xf32>
    %105 = tpu.matmul %62, %17, %cst_30 {dimension_numbers = #tpu.dot_dimension_numbers<[1], [0], [0], [1], [0, 0, 1, 1], [], []>} : vector<2x32xf32>, vector<32x96xf32>, vector<2x96xf32> -> vector<2x96xf32>
    %106 = vector.broadcast %20 : vector<1x96xf32> to vector<2x96xf32>
    %107 = arith.addf %105, %106 : vector<2x96xf32>
    %108 = vector.extract_strided_slice %104 {offsets = [0, 0], sizes = [2, 32], strides = [1, 1]} : vector<2x96xf32> to vector<2x32xf32>
    %109 = vector.extract_strided_slice %107 {offsets = [0, 0], sizes = [2, 32], strides = [1, 1]} : vector<2x96xf32> to vector<2x32xf32>
    %110 = arith.addf %108, %109 : vector<2x32xf32>
    %111 = arith.negf %110 : vector<2x32xf32>
    %112 = math.exp %111 : vector<2x32xf32>
    %cst_31 = arith.constant 1.000000e+00 : f32
    %113 = vector.broadcast %cst_31 : f32 to vector<2x32xf32>
    %114 = arith.addf %113, %112 : vector<2x32xf32>
    %115 = arith.divf %113, %114 : vector<2x32xf32>
    %116 = vector.extract_strided_slice %104 {offsets = [0, 32], sizes = [2, 32], strides = [1, 1]} : vector<2x96xf32> to vector<2x32xf32>
    %117 = vector.extract_strided_slice %107 {offsets = [0, 32], sizes = [2, 32], strides = [1, 1]} : vector<2x96xf32> to vector<2x32xf32>
    %118 = arith.addf %116, %117 : vector<2x32xf32>
    %119 = arith.negf %118 : vector<2x32xf32>
    %120 = math.exp %119 : vector<2x32xf32>
    %cst_32 = arith.constant 1.000000e+00 : f32
    %121 = vector.broadcast %cst_32 : f32 to vector<2x32xf32>
    %122 = arith.addf %121, %120 : vector<2x32xf32>
    %123 = arith.divf %121, %122 : vector<2x32xf32>
    %124 = vector.extract_strided_slice %104 {offsets = [0, 64], sizes = [2, 32], strides = [1, 1]} : vector<2x96xf32> to vector<2x32xf32>
    %125 = vector.extract_strided_slice %107 {offsets = [0, 64], sizes = [2, 32], strides = [1, 1]} : vector<2x96xf32> to vector<2x32xf32>
    %126 = arith.mulf %115, %125 : vector<2x32xf32>
    %127 = arith.addf %124, %126 : vector<2x32xf32>
    %128 = math.tanh %127 : vector<2x32xf32>
    %cst_33 = arith.constant 1.000000e+00 : f32
    %129 = vector.broadcast %cst_33 : f32 to vector<2x32xf32>
    %130 = arith.subf %129, %123 : vector<2x32xf32>
    %131 = arith.mulf %130, %128 : vector<2x32xf32>
    %132 = arith.mulf %123, %62 : vector<2x32xf32>
    %133 = arith.addf %131, %132 : vector<2x32xf32>
    %134 = vector.broadcast %64 : vector<2x1xf32> to vector<2x32xf32>
    %135 = arith.mulf %134, %133 : vector<2x32xf32>
    %cst_34 = arith.constant 1.000000e+00 : f32
    %136 = vector.broadcast %cst_34 : f32 to vector<2x1xf32>
    %137 = arith.subf %136, %64 : vector<2x1xf32>
    %138 = vector.broadcast %137 : vector<2x1xf32> to vector<2x32xf32>
    %139 = arith.mulf %138, %62 : vector<2x32xf32>
    %140 = arith.addf %135, %139 : vector<2x32xf32>
    %141 = vector.broadcast %63 : vector<2x1xf32> to vector<2x32xf32>
    %142 = arith.mulf %102, %141 : vector<2x32xf32>
    %143 = vector.broadcast %64 : vector<2x1xf32> to vector<2x32xf32>
    %144 = arith.mulf %140, %143 : vector<2x32xf32>
    %145 = vector.extract_strided_slice %2 {offsets = [0, 1], sizes = [2, 1], strides = [1, 1]} : vector<2x8xf32> to vector<2x1xf32>
    %146 = vector.extract_strided_slice %2 {offsets = [0, 6], sizes = [2, 1], strides = [1, 1]} : vector<2x8xf32> to vector<2x1xf32>
    %147 = vector.extract_strided_slice %52 {offsets = [0, 1, 0], sizes = [2, 1, 96], strides = [1, 1, 1]} : vector<2x8x96xf32> to vector<2x1x96xf32>
    %148 = vector.shape_cast %147 : vector<2x1x96xf32> to vector<2x96xf32>
    %cst_35 = arith.constant dense<0.000000e+00> : vector<2x96xf32>
    %149 = tpu.matmul %102, %16, %cst_35 {dimension_numbers = #tpu.dot_dimension_numbers<[1], [0], [0], [1], [0, 0, 1, 1], [], []>} : vector<2x32xf32>, vector<32x96xf32>, vector<2x96xf32> -> vector<2x96xf32>
    %150 = vector.broadcast %19 : vector<1x96xf32> to vector<2x96xf32>
    %151 = arith.addf %149, %150 : vector<2x96xf32>
    %152 = vector.extract_strided_slice %148 {offsets = [0, 0], sizes = [2, 32], strides = [1, 1]} : vector<2x96xf32> to vector<2x32xf32>
    %153 = vector.extract_strided_slice %151 {offsets = [0, 0], sizes = [2, 32], strides = [1, 1]} : vector<2x96xf32> to vector<2x32xf32>
    %154 = arith.addf %152, %153 : vector<2x32xf32>
    %155 = arith.negf %154 : vector<2x32xf32>
    %156 = math.exp %155 : vector<2x32xf32>
    %cst_36 = arith.constant 1.000000e+00 : f32
    %157 = vector.broadcast %cst_36 : f32 to vector<2x32xf32>
    %158 = arith.addf %157, %156 : vector<2x32xf32>
    %159 = arith.divf %157, %158 : vector<2x32xf32>
    %160 = vector.extract_strided_slice %148 {offsets = [0, 32], sizes = [2, 32], strides = [1, 1]} : vector<2x96xf32> to vector<2x32xf32>
    %161 = vector.extract_strided_slice %151 {offsets = [0, 32], sizes = [2, 32], strides = [1, 1]} : vector<2x96xf32> to vector<2x32xf32>
    %162 = arith.addf %160, %161 : vector<2x32xf32>
    %163 = arith.negf %162 : vector<2x32xf32>
    %164 = math.exp %163 : vector<2x32xf32>
    %cst_37 = arith.constant 1.000000e+00 : f32
    %165 = vector.broadcast %cst_37 : f32 to vector<2x32xf32>
    %166 = arith.addf %165, %164 : vector<2x32xf32>
    %167 = arith.divf %165, %166 : vector<2x32xf32>
    %168 = vector.extract_strided_slice %148 {offsets = [0, 64], sizes = [2, 32], strides = [1, 1]} : vector<2x96xf32> to vector<2x32xf32>
    %169 = vector.extract_strided_slice %151 {offsets = [0, 64], sizes = [2, 32], strides = [1, 1]} : vector<2x96xf32> to vector<2x32xf32>
    %170 = arith.mulf %159, %169 : vector<2x32xf32>
    %171 = arith.addf %168, %170 : vector<2x32xf32>
    %172 = math.tanh %171 : vector<2x32xf32>
    %cst_38 = arith.constant 1.000000e+00 : f32
    %173 = vector.broadcast %cst_38 : f32 to vector<2x32xf32>
    %174 = arith.subf %173, %167 : vector<2x32xf32>
    %175 = arith.mulf %174, %172 : vector<2x32xf32>
    %176 = arith.mulf %167, %102 : vector<2x32xf32>
    %177 = arith.addf %175, %176 : vector<2x32xf32>
    %178 = vector.broadcast %145 : vector<2x1xf32> to vector<2x32xf32>
    %179 = arith.mulf %178, %177 : vector<2x32xf32>
    %cst_39 = arith.constant 1.000000e+00 : f32
    %180 = vector.broadcast %cst_39 : f32 to vector<2x1xf32>
    %181 = arith.subf %180, %145 : vector<2x1xf32>
    %182 = vector.broadcast %181 : vector<2x1xf32> to vector<2x32xf32>
    %183 = arith.mulf %182, %102 : vector<2x32xf32>
    %184 = arith.addf %179, %183 : vector<2x32xf32>
    %185 = vector.extract_strided_slice %56 {offsets = [0, 6, 0], sizes = [2, 1, 96], strides = [1, 1, 1]} : vector<2x8x96xf32> to vector<2x1x96xf32>
    %186 = vector.shape_cast %185 : vector<2x1x96xf32> to vector<2x96xf32>
    %cst_40 = arith.constant dense<0.000000e+00> : vector<2x96xf32>
    %187 = tpu.matmul %140, %17, %cst_40 {dimension_numbers = #tpu.dot_dimension_numbers<[1], [0], [0], [1], [0, 0, 1, 1], [], []>} : vector<2x32xf32>, vector<32x96xf32>, vector<2x96xf32> -> vector<2x96xf32>
    %188 = vector.broadcast %20 : vector<1x96xf32> to vector<2x96xf32>
    %189 = arith.addf %187, %188 : vector<2x96xf32>
    %190 = vector.extract_strided_slice %186 {offsets = [0, 0], sizes = [2, 32], strides = [1, 1]} : vector<2x96xf32> to vector<2x32xf32>
    %191 = vector.extract_strided_slice %189 {offsets = [0, 0], sizes = [2, 32], strides = [1, 1]} : vector<2x96xf32> to vector<2x32xf32>
    %192 = arith.addf %190, %191 : vector<2x32xf32>
    %193 = arith.negf %192 : vector<2x32xf32>
    %194 = math.exp %193 : vector<2x32xf32>
    %cst_41 = arith.constant 1.000000e+00 : f32
    %195 = vector.broadcast %cst_41 : f32 to vector<2x32xf32>
    %196 = arith.addf %195, %194 : vector<2x32xf32>
    %197 = arith.divf %195, %196 : vector<2x32xf32>
    %198 = vector.extract_strided_slice %186 {offsets = [0, 32], sizes = [2, 32], strides = [1, 1]} : vector<2x96xf32> to vector<2x32xf32>
    %199 = vector.extract_strided_slice %189 {offsets = [0, 32], sizes = [2, 32], strides = [1, 1]} : vector<2x96xf32> to vector<2x32xf32>
    %200 = arith.addf %198, %199 : vector<2x32xf32>
    %201 = arith.negf %200 : vector<2x32xf32>
    %202 = math.exp %201 : vector<2x32xf32>
    %cst_42 = arith.constant 1.000000e+00 : f32
    %203 = vector.broadcast %cst_42 : f32 to vector<2x32xf32>
    %204 = arith.addf %203, %202 : vector<2x32xf32>
    %205 = arith.divf %203, %204 : vector<2x32xf32>
    %206 = vector.extract_strided_slice %186 {offsets = [0, 64], sizes = [2, 32], strides = [1, 1]} : vector<2x96xf32> to vector<2x32xf32>
    %207 = vector.extract_strided_slice %189 {offsets = [0, 64], sizes = [2, 32], strides = [1, 1]} : vector<2x96xf32> to vector<2x32xf32>
    %208 = arith.mulf %197, %207 : vector<2x32xf32>
    %209 = arith.addf %206, %208 : vector<2x32xf32>
    %210 = math.tanh %209 : vector<2x32xf32>
    %cst_43 = arith.constant 1.000000e+00 : f32
    %211 = vector.broadcast %cst_43 : f32 to vector<2x32xf32>
    %212 = arith.subf %211, %205 : vector<2x32xf32>
    %213 = arith.mulf %212, %210 : vector<2x32xf32>
    %214 = arith.mulf %205, %140 : vector<2x32xf32>
    %215 = arith.addf %213, %214 : vector<2x32xf32>
    %216 = vector.broadcast %146 : vector<2x1xf32> to vector<2x32xf32>
    %217 = arith.mulf %216, %215 : vector<2x32xf32>
    %cst_44 = arith.constant 1.000000e+00 : f32
    %218 = vector.broadcast %cst_44 : f32 to vector<2x1xf32>
    %219 = arith.subf %218, %146 : vector<2x1xf32>
    %220 = vector.broadcast %219 : vector<2x1xf32> to vector<2x32xf32>
    %221 = arith.mulf %220, %140 : vector<2x32xf32>
    %222 = arith.addf %217, %221 : vector<2x32xf32>
    %223 = vector.broadcast %145 : vector<2x1xf32> to vector<2x32xf32>
    %224 = arith.mulf %184, %223 : vector<2x32xf32>
    %225 = vector.broadcast %146 : vector<2x1xf32> to vector<2x32xf32>
    %226 = arith.mulf %222, %225 : vector<2x32xf32>
    %227 = vector.extract_strided_slice %2 {offsets = [0, 2], sizes = [2, 1], strides = [1, 1]} : vector<2x8xf32> to vector<2x1xf32>
    %228 = vector.extract_strided_slice %2 {offsets = [0, 5], sizes = [2, 1], strides = [1, 1]} : vector<2x8xf32> to vector<2x1xf32>
    %229 = vector.extract_strided_slice %52 {offsets = [0, 2, 0], sizes = [2, 1, 96], strides = [1, 1, 1]} : vector<2x8x96xf32> to vector<2x1x96xf32>
    %230 = vector.shape_cast %229 : vector<2x1x96xf32> to vector<2x96xf32>
    %cst_45 = arith.constant dense<0.000000e+00> : vector<2x96xf32>
    %231 = tpu.matmul %184, %16, %cst_45 {dimension_numbers = #tpu.dot_dimension_numbers<[1], [0], [0], [1], [0, 0, 1, 1], [], []>} : vector<2x32xf32>, vector<32x96xf32>, vector<2x96xf32> -> vector<2x96xf32>
    %232 = vector.broadcast %19 : vector<1x96xf32> to vector<2x96xf32>
    %233 = arith.addf %231, %232 : vector<2x96xf32>
    %234 = vector.extract_strided_slice %230 {offsets = [0, 0], sizes = [2, 32], strides = [1, 1]} : vector<2x96xf32> to vector<2x32xf32>
    %235 = vector.extract_strided_slice %233 {offsets = [0, 0], sizes = [2, 32], strides = [1, 1]} : vector<2x96xf32> to vector<2x32xf32>
    %236 = arith.addf %234, %235 : vector<2x32xf32>
    %237 = arith.negf %236 : vector<2x32xf32>
    %238 = math.exp %237 : vector<2x32xf32>
    %cst_46 = arith.constant 1.000000e+00 : f32
    %239 = vector.broadcast %cst_46 : f32 to vector<2x32xf32>
    %240 = arith.addf %239, %238 : vector<2x32xf32>
    %241 = arith.divf %239, %240 : vector<2x32xf32>
    %242 = vector.extract_strided_slice %230 {offsets = [0, 32], sizes = [2, 32], strides = [1, 1]} : vector<2x96xf32> to vector<2x32xf32>
    %243 = vector.extract_strided_slice %233 {offsets = [0, 32], sizes = [2, 32], strides = [1, 1]} : vector<2x96xf32> to vector<2x32xf32>
    %244 = arith.addf %242, %243 : vector<2x32xf32>
    %245 = arith.negf %244 : vector<2x32xf32>
    %246 = math.exp %245 : vector<2x32xf32>
    %cst_47 = arith.constant 1.000000e+00 : f32
    %247 = vector.broadcast %cst_47 : f32 to vector<2x32xf32>
    %248 = arith.addf %247, %246 : vector<2x32xf32>
    %249 = arith.divf %247, %248 : vector<2x32xf32>
    %250 = vector.extract_strided_slice %230 {offsets = [0, 64], sizes = [2, 32], strides = [1, 1]} : vector<2x96xf32> to vector<2x32xf32>
    %251 = vector.extract_strided_slice %233 {offsets = [0, 64], sizes = [2, 32], strides = [1, 1]} : vector<2x96xf32> to vector<2x32xf32>
    %252 = arith.mulf %241, %251 : vector<2x32xf32>
    %253 = arith.addf %250, %252 : vector<2x32xf32>
    %254 = math.tanh %253 : vector<2x32xf32>
    %cst_48 = arith.constant 1.000000e+00 : f32
    %255 = vector.broadcast %cst_48 : f32 to vector<2x32xf32>
    %256 = arith.subf %255, %249 : vector<2x32xf32>
    %257 = arith.mulf %256, %254 : vector<2x32xf32>
    %258 = arith.mulf %249, %184 : vector<2x32xf32>
    %259 = arith.addf %257, %258 : vector<2x32xf32>
    %260 = vector.broadcast %227 : vector<2x1xf32> to vector<2x32xf32>
    %261 = arith.mulf %260, %259 : vector<2x32xf32>
    %cst_49 = arith.constant 1.000000e+00 : f32
    %262 = vector.broadcast %cst_49 : f32 to vector<2x1xf32>
    %263 = arith.subf %262, %227 : vector<2x1xf32>
    %264 = vector.broadcast %263 : vector<2x1xf32> to vector<2x32xf32>
    %265 = arith.mulf %264, %184 : vector<2x32xf32>
    %266 = arith.addf %261, %265 : vector<2x32xf32>
    %267 = vector.extract_strided_slice %56 {offsets = [0, 5, 0], sizes = [2, 1, 96], strides = [1, 1, 1]} : vector<2x8x96xf32> to vector<2x1x96xf32>
    %268 = vector.shape_cast %267 : vector<2x1x96xf32> to vector<2x96xf32>
    %cst_50 = arith.constant dense<0.000000e+00> : vector<2x96xf32>
    %269 = tpu.matmul %222, %17, %cst_50 {dimension_numbers = #tpu.dot_dimension_numbers<[1], [0], [0], [1], [0, 0, 1, 1], [], []>} : vector<2x32xf32>, vector<32x96xf32>, vector<2x96xf32> -> vector<2x96xf32>
    %270 = vector.broadcast %20 : vector<1x96xf32> to vector<2x96xf32>
    %271 = arith.addf %269, %270 : vector<2x96xf32>
    %272 = vector.extract_strided_slice %268 {offsets = [0, 0], sizes = [2, 32], strides = [1, 1]} : vector<2x96xf32> to vector<2x32xf32>
    %273 = vector.extract_strided_slice %271 {offsets = [0, 0], sizes = [2, 32], strides = [1, 1]} : vector<2x96xf32> to vector<2x32xf32>
    %274 = arith.addf %272, %273 : vector<2x32xf32>
    %275 = arith.negf %274 : vector<2x32xf32>
    %276 = math.exp %275 : vector<2x32xf32>
    %cst_51 = arith.constant 1.000000e+00 : f32
    %277 = vector.broadcast %cst_51 : f32 to vector<2x32xf32>
    %278 = arith.addf %277, %276 : vector<2x32xf32>
    %279 = arith.divf %277, %278 : vector<2x32xf32>
    %280 = vector.extract_strided_slice %268 {offsets = [0, 32], sizes = [2, 32], strides = [1, 1]} : vector<2x96xf32> to vector<2x32xf32>
    %281 = vector.extract_strided_slice %271 {offsets = [0, 32], sizes = [2, 32], strides = [1, 1]} : vector<2x96xf32> to vector<2x32xf32>
    %282 = arith.addf %280, %281 : vector<2x32xf32>
    %283 = arith.negf %282 : vector<2x32xf32>
    %284 = math.exp %283 : vector<2x32xf32>
    %cst_52 = arith.constant 1.000000e+00 : f32
    %285 = vector.broadcast %cst_52 : f32 to vector<2x32xf32>
    %286 = arith.addf %285, %284 : vector<2x32xf32>
    %287 = arith.divf %285, %286 : vector<2x32xf32>
    %288 = vector.extract_strided_slice %268 {offsets = [0, 64], sizes = [2, 32], strides = [1, 1]} : vector<2x96xf32> to vector<2x32xf32>
    %289 = vector.extract_strided_slice %271 {offsets = [0, 64], sizes = [2, 32], strides = [1, 1]} : vector<2x96xf32> to vector<2x32xf32>
    %290 = arith.mulf %279, %289 : vector<2x32xf32>
    %291 = arith.addf %288, %290 : vector<2x32xf32>
    %292 = math.tanh %291 : vector<2x32xf32>
    %cst_53 = arith.constant 1.000000e+00 : f32
    %293 = vector.broadcast %cst_53 : f32 to vector<2x32xf32>
    %294 = arith.subf %293, %287 : vector<2x32xf32>
    %295 = arith.mulf %294, %292 : vector<2x32xf32>
    %296 = arith.mulf %287, %222 : vector<2x32xf32>
    %297 = arith.addf %295, %296 : vector<2x32xf32>
    %298 = vector.broadcast %228 : vector<2x1xf32> to vector<2x32xf32>
    %299 = arith.mulf %298, %297 : vector<2x32xf32>
    %cst_54 = arith.constant 1.000000e+00 : f32
    %300 = vector.broadcast %cst_54 : f32 to vector<2x1xf32>
    %301 = arith.subf %300, %228 : vector<2x1xf32>
    %302 = vector.broadcast %301 : vector<2x1xf32> to vector<2x32xf32>
    %303 = arith.mulf %302, %222 : vector<2x32xf32>
    %304 = arith.addf %299, %303 : vector<2x32xf32>
    %305 = vector.broadcast %227 : vector<2x1xf32> to vector<2x32xf32>
    %306 = arith.mulf %266, %305 : vector<2x32xf32>
    %307 = vector.broadcast %228 : vector<2x1xf32> to vector<2x32xf32>
    %308 = arith.mulf %304, %307 : vector<2x32xf32>
    %309 = vector.extract_strided_slice %2 {offsets = [0, 3], sizes = [2, 1], strides = [1, 1]} : vector<2x8xf32> to vector<2x1xf32>
    %310 = vector.extract_strided_slice %2 {offsets = [0, 4], sizes = [2, 1], strides = [1, 1]} : vector<2x8xf32> to vector<2x1xf32>
    %311 = vector.extract_strided_slice %52 {offsets = [0, 3, 0], sizes = [2, 1, 96], strides = [1, 1, 1]} : vector<2x8x96xf32> to vector<2x1x96xf32>
    %312 = vector.shape_cast %311 : vector<2x1x96xf32> to vector<2x96xf32>
    %cst_55 = arith.constant dense<0.000000e+00> : vector<2x96xf32>
    %313 = tpu.matmul %266, %16, %cst_55 {dimension_numbers = #tpu.dot_dimension_numbers<[1], [0], [0], [1], [0, 0, 1, 1], [], []>} : vector<2x32xf32>, vector<32x96xf32>, vector<2x96xf32> -> vector<2x96xf32>
    %314 = vector.broadcast %19 : vector<1x96xf32> to vector<2x96xf32>
    %315 = arith.addf %313, %314 : vector<2x96xf32>
    %316 = vector.extract_strided_slice %312 {offsets = [0, 0], sizes = [2, 32], strides = [1, 1]} : vector<2x96xf32> to vector<2x32xf32>
    %317 = vector.extract_strided_slice %315 {offsets = [0, 0], sizes = [2, 32], strides = [1, 1]} : vector<2x96xf32> to vector<2x32xf32>
    %318 = arith.addf %316, %317 : vector<2x32xf32>
    %319 = arith.negf %318 : vector<2x32xf32>
    %320 = math.exp %319 : vector<2x32xf32>
    %cst_56 = arith.constant 1.000000e+00 : f32
    %321 = vector.broadcast %cst_56 : f32 to vector<2x32xf32>
    %322 = arith.addf %321, %320 : vector<2x32xf32>
    %323 = arith.divf %321, %322 : vector<2x32xf32>
    %324 = vector.extract_strided_slice %312 {offsets = [0, 32], sizes = [2, 32], strides = [1, 1]} : vector<2x96xf32> to vector<2x32xf32>
    %325 = vector.extract_strided_slice %315 {offsets = [0, 32], sizes = [2, 32], strides = [1, 1]} : vector<2x96xf32> to vector<2x32xf32>
    %326 = arith.addf %324, %325 : vector<2x32xf32>
    %327 = arith.negf %326 : vector<2x32xf32>
    %328 = math.exp %327 : vector<2x32xf32>
    %cst_57 = arith.constant 1.000000e+00 : f32
    %329 = vector.broadcast %cst_57 : f32 to vector<2x32xf32>
    %330 = arith.addf %329, %328 : vector<2x32xf32>
    %331 = arith.divf %329, %330 : vector<2x32xf32>
    %332 = vector.extract_strided_slice %312 {offsets = [0, 64], sizes = [2, 32], strides = [1, 1]} : vector<2x96xf32> to vector<2x32xf32>
    %333 = vector.extract_strided_slice %315 {offsets = [0, 64], sizes = [2, 32], strides = [1, 1]} : vector<2x96xf32> to vector<2x32xf32>
    %334 = arith.mulf %323, %333 : vector<2x32xf32>
    %335 = arith.addf %332, %334 : vector<2x32xf32>
    %336 = math.tanh %335 : vector<2x32xf32>
    %cst_58 = arith.constant 1.000000e+00 : f32
    %337 = vector.broadcast %cst_58 : f32 to vector<2x32xf32>
    %338 = arith.subf %337, %331 : vector<2x32xf32>
    %339 = arith.mulf %338, %336 : vector<2x32xf32>
    %340 = arith.mulf %331, %266 : vector<2x32xf32>
    %341 = arith.addf %339, %340 : vector<2x32xf32>
    %342 = vector.broadcast %309 : vector<2x1xf32> to vector<2x32xf32>
    %343 = arith.mulf %342, %341 : vector<2x32xf32>
    %cst_59 = arith.constant 1.000000e+00 : f32
    %344 = vector.broadcast %cst_59 : f32 to vector<2x1xf32>
    %345 = arith.subf %344, %309 : vector<2x1xf32>
    %346 = vector.broadcast %345 : vector<2x1xf32> to vector<2x32xf32>
    %347 = arith.mulf %346, %266 : vector<2x32xf32>
    %348 = arith.addf %343, %347 : vector<2x32xf32>
    %349 = vector.extract_strided_slice %56 {offsets = [0, 4, 0], sizes = [2, 1, 96], strides = [1, 1, 1]} : vector<2x8x96xf32> to vector<2x1x96xf32>
    %350 = vector.shape_cast %349 : vector<2x1x96xf32> to vector<2x96xf32>
    %cst_60 = arith.constant dense<0.000000e+00> : vector<2x96xf32>
    %351 = tpu.matmul %304, %17, %cst_60 {dimension_numbers = #tpu.dot_dimension_numbers<[1], [0], [0], [1], [0, 0, 1, 1], [], []>} : vector<2x32xf32>, vector<32x96xf32>, vector<2x96xf32> -> vector<2x96xf32>
    %352 = vector.broadcast %20 : vector<1x96xf32> to vector<2x96xf32>
    %353 = arith.addf %351, %352 : vector<2x96xf32>
    %354 = vector.extract_strided_slice %350 {offsets = [0, 0], sizes = [2, 32], strides = [1, 1]} : vector<2x96xf32> to vector<2x32xf32>
    %355 = vector.extract_strided_slice %353 {offsets = [0, 0], sizes = [2, 32], strides = [1, 1]} : vector<2x96xf32> to vector<2x32xf32>
    %356 = arith.addf %354, %355 : vector<2x32xf32>
    %357 = arith.negf %356 : vector<2x32xf32>
    %358 = math.exp %357 : vector<2x32xf32>
    %cst_61 = arith.constant 1.000000e+00 : f32
    %359 = vector.broadcast %cst_61 : f32 to vector<2x32xf32>
    %360 = arith.addf %359, %358 : vector<2x32xf32>
    %361 = arith.divf %359, %360 : vector<2x32xf32>
    %362 = vector.extract_strided_slice %350 {offsets = [0, 32], sizes = [2, 32], strides = [1, 1]} : vector<2x96xf32> to vector<2x32xf32>
    %363 = vector.extract_strided_slice %353 {offsets = [0, 32], sizes = [2, 32], strides = [1, 1]} : vector<2x96xf32> to vector<2x32xf32>
    %364 = arith.addf %362, %363 : vector<2x32xf32>
    %365 = arith.negf %364 : vector<2x32xf32>
    %366 = math.exp %365 : vector<2x32xf32>
    %cst_62 = arith.constant 1.000000e+00 : f32
    %367 = vector.broadcast %cst_62 : f32 to vector<2x32xf32>
    %368 = arith.addf %367, %366 : vector<2x32xf32>
    %369 = arith.divf %367, %368 : vector<2x32xf32>
    %370 = vector.extract_strided_slice %350 {offsets = [0, 64], sizes = [2, 32], strides = [1, 1]} : vector<2x96xf32> to vector<2x32xf32>
    %371 = vector.extract_strided_slice %353 {offsets = [0, 64], sizes = [2, 32], strides = [1, 1]} : vector<2x96xf32> to vector<2x32xf32>
    %372 = arith.mulf %361, %371 : vector<2x32xf32>
    %373 = arith.addf %370, %372 : vector<2x32xf32>
    %374 = math.tanh %373 : vector<2x32xf32>
    %cst_63 = arith.constant 1.000000e+00 : f32
    %375 = vector.broadcast %cst_63 : f32 to vector<2x32xf32>
    %376 = arith.subf %375, %369 : vector<2x32xf32>
    %377 = arith.mulf %376, %374 : vector<2x32xf32>
    %378 = arith.mulf %369, %304 : vector<2x32xf32>
    %379 = arith.addf %377, %378 : vector<2x32xf32>
    %380 = vector.broadcast %310 : vector<2x1xf32> to vector<2x32xf32>
    %381 = arith.mulf %380, %379 : vector<2x32xf32>
    %cst_64 = arith.constant 1.000000e+00 : f32
    %382 = vector.broadcast %cst_64 : f32 to vector<2x1xf32>
    %383 = arith.subf %382, %310 : vector<2x1xf32>
    %384 = vector.broadcast %383 : vector<2x1xf32> to vector<2x32xf32>
    %385 = arith.mulf %384, %304 : vector<2x32xf32>
    %386 = arith.addf %381, %385 : vector<2x32xf32>
    %387 = vector.broadcast %309 : vector<2x1xf32> to vector<2x32xf32>
    %388 = arith.mulf %348, %387 : vector<2x32xf32>
    %389 = vector.broadcast %310 : vector<2x1xf32> to vector<2x32xf32>
    %390 = arith.mulf %386, %389 : vector<2x32xf32>
    %391 = vector.extract_strided_slice %2 {offsets = [0, 4], sizes = [2, 1], strides = [1, 1]} : vector<2x8xf32> to vector<2x1xf32>
    %392 = vector.extract_strided_slice %2 {offsets = [0, 3], sizes = [2, 1], strides = [1, 1]} : vector<2x8xf32> to vector<2x1xf32>
    %393 = vector.extract_strided_slice %52 {offsets = [0, 4, 0], sizes = [2, 1, 96], strides = [1, 1, 1]} : vector<2x8x96xf32> to vector<2x1x96xf32>
    %394 = vector.shape_cast %393 : vector<2x1x96xf32> to vector<2x96xf32>
    %cst_65 = arith.constant dense<0.000000e+00> : vector<2x96xf32>
    %395 = tpu.matmul %348, %16, %cst_65 {dimension_numbers = #tpu.dot_dimension_numbers<[1], [0], [0], [1], [0, 0, 1, 1], [], []>} : vector<2x32xf32>, vector<32x96xf32>, vector<2x96xf32> -> vector<2x96xf32>
    %396 = vector.broadcast %19 : vector<1x96xf32> to vector<2x96xf32>
    %397 = arith.addf %395, %396 : vector<2x96xf32>
    %398 = vector.extract_strided_slice %394 {offsets = [0, 0], sizes = [2, 32], strides = [1, 1]} : vector<2x96xf32> to vector<2x32xf32>
    %399 = vector.extract_strided_slice %397 {offsets = [0, 0], sizes = [2, 32], strides = [1, 1]} : vector<2x96xf32> to vector<2x32xf32>
    %400 = arith.addf %398, %399 : vector<2x32xf32>
    %401 = arith.negf %400 : vector<2x32xf32>
    %402 = math.exp %401 : vector<2x32xf32>
    %cst_66 = arith.constant 1.000000e+00 : f32
    %403 = vector.broadcast %cst_66 : f32 to vector<2x32xf32>
    %404 = arith.addf %403, %402 : vector<2x32xf32>
    %405 = arith.divf %403, %404 : vector<2x32xf32>
    %406 = vector.extract_strided_slice %394 {offsets = [0, 32], sizes = [2, 32], strides = [1, 1]} : vector<2x96xf32> to vector<2x32xf32>
    %407 = vector.extract_strided_slice %397 {offsets = [0, 32], sizes = [2, 32], strides = [1, 1]} : vector<2x96xf32> to vector<2x32xf32>
    %408 = arith.addf %406, %407 : vector<2x32xf32>
    %409 = arith.negf %408 : vector<2x32xf32>
    %410 = math.exp %409 : vector<2x32xf32>
    %cst_67 = arith.constant 1.000000e+00 : f32
    %411 = vector.broadcast %cst_67 : f32 to vector<2x32xf32>
    %412 = arith.addf %411, %410 : vector<2x32xf32>
    %413 = arith.divf %411, %412 : vector<2x32xf32>
    %414 = vector.extract_strided_slice %394 {offsets = [0, 64], sizes = [2, 32], strides = [1, 1]} : vector<2x96xf32> to vector<2x32xf32>
    %415 = vector.extract_strided_slice %397 {offsets = [0, 64], sizes = [2, 32], strides = [1, 1]} : vector<2x96xf32> to vector<2x32xf32>
    %416 = arith.mulf %405, %415 : vector<2x32xf32>
    %417 = arith.addf %414, %416 : vector<2x32xf32>
    %418 = math.tanh %417 : vector<2x32xf32>
    %cst_68 = arith.constant 1.000000e+00 : f32
    %419 = vector.broadcast %cst_68 : f32 to vector<2x32xf32>
    %420 = arith.subf %419, %413 : vector<2x32xf32>
    %421 = arith.mulf %420, %418 : vector<2x32xf32>
    %422 = arith.mulf %413, %348 : vector<2x32xf32>
    %423 = arith.addf %421, %422 : vector<2x32xf32>
    %424 = vector.broadcast %391 : vector<2x1xf32> to vector<2x32xf32>
    %425 = arith.mulf %424, %423 : vector<2x32xf32>
    %cst_69 = arith.constant 1.000000e+00 : f32
    %426 = vector.broadcast %cst_69 : f32 to vector<2x1xf32>
    %427 = arith.subf %426, %391 : vector<2x1xf32>
    %428 = vector.broadcast %427 : vector<2x1xf32> to vector<2x32xf32>
    %429 = arith.mulf %428, %348 : vector<2x32xf32>
    %430 = arith.addf %425, %429 : vector<2x32xf32>
    %431 = vector.extract_strided_slice %56 {offsets = [0, 3, 0], sizes = [2, 1, 96], strides = [1, 1, 1]} : vector<2x8x96xf32> to vector<2x1x96xf32>
    %432 = vector.shape_cast %431 : vector<2x1x96xf32> to vector<2x96xf32>
    %cst_70 = arith.constant dense<0.000000e+00> : vector<2x96xf32>
    %433 = tpu.matmul %386, %17, %cst_70 {dimension_numbers = #tpu.dot_dimension_numbers<[1], [0], [0], [1], [0, 0, 1, 1], [], []>} : vector<2x32xf32>, vector<32x96xf32>, vector<2x96xf32> -> vector<2x96xf32>
    %434 = vector.broadcast %20 : vector<1x96xf32> to vector<2x96xf32>
    %435 = arith.addf %433, %434 : vector<2x96xf32>
    %436 = vector.extract_strided_slice %432 {offsets = [0, 0], sizes = [2, 32], strides = [1, 1]} : vector<2x96xf32> to vector<2x32xf32>
    %437 = vector.extract_strided_slice %435 {offsets = [0, 0], sizes = [2, 32], strides = [1, 1]} : vector<2x96xf32> to vector<2x32xf32>
    %438 = arith.addf %436, %437 : vector<2x32xf32>
    %439 = arith.negf %438 : vector<2x32xf32>
    %440 = math.exp %439 : vector<2x32xf32>
    %cst_71 = arith.constant 1.000000e+00 : f32
    %441 = vector.broadcast %cst_71 : f32 to vector<2x32xf32>
    %442 = arith.addf %441, %440 : vector<2x32xf32>
    %443 = arith.divf %441, %442 : vector<2x32xf32>
    %444 = vector.extract_strided_slice %432 {offsets = [0, 32], sizes = [2, 32], strides = [1, 1]} : vector<2x96xf32> to vector<2x32xf32>
    %445 = vector.extract_strided_slice %435 {offsets = [0, 32], sizes = [2, 32], strides = [1, 1]} : vector<2x96xf32> to vector<2x32xf32>
    %446 = arith.addf %444, %445 : vector<2x32xf32>
    %447 = arith.negf %446 : vector<2x32xf32>
    %448 = math.exp %447 : vector<2x32xf32>
    %cst_72 = arith.constant 1.000000e+00 : f32
    %449 = vector.broadcast %cst_72 : f32 to vector<2x32xf32>
    %450 = arith.addf %449, %448 : vector<2x32xf32>
    %451 = arith.divf %449, %450 : vector<2x32xf32>
    %452 = vector.extract_strided_slice %432 {offsets = [0, 64], sizes = [2, 32], strides = [1, 1]} : vector<2x96xf32> to vector<2x32xf32>
    %453 = vector.extract_strided_slice %435 {offsets = [0, 64], sizes = [2, 32], strides = [1, 1]} : vector<2x96xf32> to vector<2x32xf32>
    %454 = arith.mulf %443, %453 : vector<2x32xf32>
    %455 = arith.addf %452, %454 : vector<2x32xf32>
    %456 = math.tanh %455 : vector<2x32xf32>
    %cst_73 = arith.constant 1.000000e+00 : f32
    %457 = vector.broadcast %cst_73 : f32 to vector<2x32xf32>
    %458 = arith.subf %457, %451 : vector<2x32xf32>
    %459 = arith.mulf %458, %456 : vector<2x32xf32>
    %460 = arith.mulf %451, %386 : vector<2x32xf32>
    %461 = arith.addf %459, %460 : vector<2x32xf32>
    %462 = vector.broadcast %392 : vector<2x1xf32> to vector<2x32xf32>
    %463 = arith.mulf %462, %461 : vector<2x32xf32>
    %cst_74 = arith.constant 1.000000e+00 : f32
    %464 = vector.broadcast %cst_74 : f32 to vector<2x1xf32>
    %465 = arith.subf %464, %392 : vector<2x1xf32>
    %466 = vector.broadcast %465 : vector<2x1xf32> to vector<2x32xf32>
    %467 = arith.mulf %466, %386 : vector<2x32xf32>
    %468 = arith.addf %463, %467 : vector<2x32xf32>
    %469 = vector.broadcast %391 : vector<2x1xf32> to vector<2x32xf32>
    %470 = arith.mulf %430, %469 : vector<2x32xf32>
    %471 = vector.broadcast %392 : vector<2x1xf32> to vector<2x32xf32>
    %472 = arith.mulf %468, %471 : vector<2x32xf32>
    %473 = vector.extract_strided_slice %2 {offsets = [0, 5], sizes = [2, 1], strides = [1, 1]} : vector<2x8xf32> to vector<2x1xf32>
    %474 = vector.extract_strided_slice %2 {offsets = [0, 2], sizes = [2, 1], strides = [1, 1]} : vector<2x8xf32> to vector<2x1xf32>
    %475 = vector.extract_strided_slice %52 {offsets = [0, 5, 0], sizes = [2, 1, 96], strides = [1, 1, 1]} : vector<2x8x96xf32> to vector<2x1x96xf32>
    %476 = vector.shape_cast %475 : vector<2x1x96xf32> to vector<2x96xf32>
    %cst_75 = arith.constant dense<0.000000e+00> : vector<2x96xf32>
    %477 = tpu.matmul %430, %16, %cst_75 {dimension_numbers = #tpu.dot_dimension_numbers<[1], [0], [0], [1], [0, 0, 1, 1], [], []>} : vector<2x32xf32>, vector<32x96xf32>, vector<2x96xf32> -> vector<2x96xf32>
    %478 = vector.broadcast %19 : vector<1x96xf32> to vector<2x96xf32>
    %479 = arith.addf %477, %478 : vector<2x96xf32>
    %480 = vector.extract_strided_slice %476 {offsets = [0, 0], sizes = [2, 32], strides = [1, 1]} : vector<2x96xf32> to vector<2x32xf32>
    %481 = vector.extract_strided_slice %479 {offsets = [0, 0], sizes = [2, 32], strides = [1, 1]} : vector<2x96xf32> to vector<2x32xf32>
    %482 = arith.addf %480, %481 : vector<2x32xf32>
    %483 = arith.negf %482 : vector<2x32xf32>
    %484 = math.exp %483 : vector<2x32xf32>
    %cst_76 = arith.constant 1.000000e+00 : f32
    %485 = vector.broadcast %cst_76 : f32 to vector<2x32xf32>
    %486 = arith.addf %485, %484 : vector<2x32xf32>
    %487 = arith.divf %485, %486 : vector<2x32xf32>
    %488 = vector.extract_strided_slice %476 {offsets = [0, 32], sizes = [2, 32], strides = [1, 1]} : vector<2x96xf32> to vector<2x32xf32>
    %489 = vector.extract_strided_slice %479 {offsets = [0, 32], sizes = [2, 32], strides = [1, 1]} : vector<2x96xf32> to vector<2x32xf32>
    %490 = arith.addf %488, %489 : vector<2x32xf32>
    %491 = arith.negf %490 : vector<2x32xf32>
    %492 = math.exp %491 : vector<2x32xf32>
    %cst_77 = arith.constant 1.000000e+00 : f32
    %493 = vector.broadcast %cst_77 : f32 to vector<2x32xf32>
    %494 = arith.addf %493, %492 : vector<2x32xf32>
    %495 = arith.divf %493, %494 : vector<2x32xf32>
    %496 = vector.extract_strided_slice %476 {offsets = [0, 64], sizes = [2, 32], strides = [1, 1]} : vector<2x96xf32> to vector<2x32xf32>
    %497 = vector.extract_strided_slice %479 {offsets = [0, 64], sizes = [2, 32], strides = [1, 1]} : vector<2x96xf32> to vector<2x32xf32>
    %498 = arith.mulf %487, %497 : vector<2x32xf32>
    %499 = arith.addf %496, %498 : vector<2x32xf32>
    %500 = math.tanh %499 : vector<2x32xf32>
    %cst_78 = arith.constant 1.000000e+00 : f32
    %501 = vector.broadcast %cst_78 : f32 to vector<2x32xf32>
    %502 = arith.subf %501, %495 : vector<2x32xf32>
    %503 = arith.mulf %502, %500 : vector<2x32xf32>
    %504 = arith.mulf %495, %430 : vector<2x32xf32>
    %505 = arith.addf %503, %504 : vector<2x32xf32>
    %506 = vector.broadcast %473 : vector<2x1xf32> to vector<2x32xf32>
    %507 = arith.mulf %506, %505 : vector<2x32xf32>
    %cst_79 = arith.constant 1.000000e+00 : f32
    %508 = vector.broadcast %cst_79 : f32 to vector<2x1xf32>
    %509 = arith.subf %508, %473 : vector<2x1xf32>
    %510 = vector.broadcast %509 : vector<2x1xf32> to vector<2x32xf32>
    %511 = arith.mulf %510, %430 : vector<2x32xf32>
    %512 = arith.addf %507, %511 : vector<2x32xf32>
    %513 = vector.extract_strided_slice %56 {offsets = [0, 2, 0], sizes = [2, 1, 96], strides = [1, 1, 1]} : vector<2x8x96xf32> to vector<2x1x96xf32>
    %514 = vector.shape_cast %513 : vector<2x1x96xf32> to vector<2x96xf32>
    %cst_80 = arith.constant dense<0.000000e+00> : vector<2x96xf32>
    %515 = tpu.matmul %468, %17, %cst_80 {dimension_numbers = #tpu.dot_dimension_numbers<[1], [0], [0], [1], [0, 0, 1, 1], [], []>} : vector<2x32xf32>, vector<32x96xf32>, vector<2x96xf32> -> vector<2x96xf32>
    %516 = vector.broadcast %20 : vector<1x96xf32> to vector<2x96xf32>
    %517 = arith.addf %515, %516 : vector<2x96xf32>
    %518 = vector.extract_strided_slice %514 {offsets = [0, 0], sizes = [2, 32], strides = [1, 1]} : vector<2x96xf32> to vector<2x32xf32>
    %519 = vector.extract_strided_slice %517 {offsets = [0, 0], sizes = [2, 32], strides = [1, 1]} : vector<2x96xf32> to vector<2x32xf32>
    %520 = arith.addf %518, %519 : vector<2x32xf32>
    %521 = arith.negf %520 : vector<2x32xf32>
    %522 = math.exp %521 : vector<2x32xf32>
    %cst_81 = arith.constant 1.000000e+00 : f32
    %523 = vector.broadcast %cst_81 : f32 to vector<2x32xf32>
    %524 = arith.addf %523, %522 : vector<2x32xf32>
    %525 = arith.divf %523, %524 : vector<2x32xf32>
    %526 = vector.extract_strided_slice %514 {offsets = [0, 32], sizes = [2, 32], strides = [1, 1]} : vector<2x96xf32> to vector<2x32xf32>
    %527 = vector.extract_strided_slice %517 {offsets = [0, 32], sizes = [2, 32], strides = [1, 1]} : vector<2x96xf32> to vector<2x32xf32>
    %528 = arith.addf %526, %527 : vector<2x32xf32>
    %529 = arith.negf %528 : vector<2x32xf32>
    %530 = math.exp %529 : vector<2x32xf32>
    %cst_82 = arith.constant 1.000000e+00 : f32
    %531 = vector.broadcast %cst_82 : f32 to vector<2x32xf32>
    %532 = arith.addf %531, %530 : vector<2x32xf32>
    %533 = arith.divf %531, %532 : vector<2x32xf32>
    %534 = vector.extract_strided_slice %514 {offsets = [0, 64], sizes = [2, 32], strides = [1, 1]} : vector<2x96xf32> to vector<2x32xf32>
    %535 = vector.extract_strided_slice %517 {offsets = [0, 64], sizes = [2, 32], strides = [1, 1]} : vector<2x96xf32> to vector<2x32xf32>
    %536 = arith.mulf %525, %535 : vector<2x32xf32>
    %537 = arith.addf %534, %536 : vector<2x32xf32>
    %538 = math.tanh %537 : vector<2x32xf32>
    %cst_83 = arith.constant 1.000000e+00 : f32
    %539 = vector.broadcast %cst_83 : f32 to vector<2x32xf32>
    %540 = arith.subf %539, %533 : vector<2x32xf32>
    %541 = arith.mulf %540, %538 : vector<2x32xf32>
    %542 = arith.mulf %533, %468 : vector<2x32xf32>
    %543 = arith.addf %541, %542 : vector<2x32xf32>
    %544 = vector.broadcast %474 : vector<2x1xf32> to vector<2x32xf32>
    %545 = arith.mulf %544, %543 : vector<2x32xf32>
    %cst_84 = arith.constant 1.000000e+00 : f32
    %546 = vector.broadcast %cst_84 : f32 to vector<2x1xf32>
    %547 = arith.subf %546, %474 : vector<2x1xf32>
    %548 = vector.broadcast %547 : vector<2x1xf32> to vector<2x32xf32>
    %549 = arith.mulf %548, %468 : vector<2x32xf32>
    %550 = arith.addf %545, %549 : vector<2x32xf32>
    %551 = vector.broadcast %473 : vector<2x1xf32> to vector<2x32xf32>
    %552 = arith.mulf %512, %551 : vector<2x32xf32>
    %553 = vector.broadcast %474 : vector<2x1xf32> to vector<2x32xf32>
    %554 = arith.mulf %550, %553 : vector<2x32xf32>
    %555 = vector.extract_strided_slice %2 {offsets = [0, 6], sizes = [2, 1], strides = [1, 1]} : vector<2x8xf32> to vector<2x1xf32>
    %556 = vector.extract_strided_slice %2 {offsets = [0, 1], sizes = [2, 1], strides = [1, 1]} : vector<2x8xf32> to vector<2x1xf32>
    %557 = vector.extract_strided_slice %52 {offsets = [0, 6, 0], sizes = [2, 1, 96], strides = [1, 1, 1]} : vector<2x8x96xf32> to vector<2x1x96xf32>
    %558 = vector.shape_cast %557 : vector<2x1x96xf32> to vector<2x96xf32>
    %cst_85 = arith.constant dense<0.000000e+00> : vector<2x96xf32>
    %559 = tpu.matmul %512, %16, %cst_85 {dimension_numbers = #tpu.dot_dimension_numbers<[1], [0], [0], [1], [0, 0, 1, 1], [], []>} : vector<2x32xf32>, vector<32x96xf32>, vector<2x96xf32> -> vector<2x96xf32>
    %560 = vector.broadcast %19 : vector<1x96xf32> to vector<2x96xf32>
    %561 = arith.addf %559, %560 : vector<2x96xf32>
    %562 = vector.extract_strided_slice %558 {offsets = [0, 0], sizes = [2, 32], strides = [1, 1]} : vector<2x96xf32> to vector<2x32xf32>
    %563 = vector.extract_strided_slice %561 {offsets = [0, 0], sizes = [2, 32], strides = [1, 1]} : vector<2x96xf32> to vector<2x32xf32>
    %564 = arith.addf %562, %563 : vector<2x32xf32>
    %565 = arith.negf %564 : vector<2x32xf32>
    %566 = math.exp %565 : vector<2x32xf32>
    %cst_86 = arith.constant 1.000000e+00 : f32
    %567 = vector.broadcast %cst_86 : f32 to vector<2x32xf32>
    %568 = arith.addf %567, %566 : vector<2x32xf32>
    %569 = arith.divf %567, %568 : vector<2x32xf32>
    %570 = vector.extract_strided_slice %558 {offsets = [0, 32], sizes = [2, 32], strides = [1, 1]} : vector<2x96xf32> to vector<2x32xf32>
    %571 = vector.extract_strided_slice %561 {offsets = [0, 32], sizes = [2, 32], strides = [1, 1]} : vector<2x96xf32> to vector<2x32xf32>
    %572 = arith.addf %570, %571 : vector<2x32xf32>
    %573 = arith.negf %572 : vector<2x32xf32>
    %574 = math.exp %573 : vector<2x32xf32>
    %cst_87 = arith.constant 1.000000e+00 : f32
    %575 = vector.broadcast %cst_87 : f32 to vector<2x32xf32>
    %576 = arith.addf %575, %574 : vector<2x32xf32>
    %577 = arith.divf %575, %576 : vector<2x32xf32>
    %578 = vector.extract_strided_slice %558 {offsets = [0, 64], sizes = [2, 32], strides = [1, 1]} : vector<2x96xf32> to vector<2x32xf32>
    %579 = vector.extract_strided_slice %561 {offsets = [0, 64], sizes = [2, 32], strides = [1, 1]} : vector<2x96xf32> to vector<2x32xf32>
    %580 = arith.mulf %569, %579 : vector<2x32xf32>
    %581 = arith.addf %578, %580 : vector<2x32xf32>
    %582 = math.tanh %581 : vector<2x32xf32>
    %cst_88 = arith.constant 1.000000e+00 : f32
    %583 = vector.broadcast %cst_88 : f32 to vector<2x32xf32>
    %584 = arith.subf %583, %577 : vector<2x32xf32>
    %585 = arith.mulf %584, %582 : vector<2x32xf32>
    %586 = arith.mulf %577, %512 : vector<2x32xf32>
    %587 = arith.addf %585, %586 : vector<2x32xf32>
    %588 = vector.broadcast %555 : vector<2x1xf32> to vector<2x32xf32>
    %589 = arith.mulf %588, %587 : vector<2x32xf32>
    %cst_89 = arith.constant 1.000000e+00 : f32
    %590 = vector.broadcast %cst_89 : f32 to vector<2x1xf32>
    %591 = arith.subf %590, %555 : vector<2x1xf32>
    %592 = vector.broadcast %591 : vector<2x1xf32> to vector<2x32xf32>
    %593 = arith.mulf %592, %512 : vector<2x32xf32>
    %594 = arith.addf %589, %593 : vector<2x32xf32>
    %595 = vector.extract_strided_slice %56 {offsets = [0, 1, 0], sizes = [2, 1, 96], strides = [1, 1, 1]} : vector<2x8x96xf32> to vector<2x1x96xf32>
    %596 = vector.shape_cast %595 : vector<2x1x96xf32> to vector<2x96xf32>
    %cst_90 = arith.constant dense<0.000000e+00> : vector<2x96xf32>
    %597 = tpu.matmul %550, %17, %cst_90 {dimension_numbers = #tpu.dot_dimension_numbers<[1], [0], [0], [1], [0, 0, 1, 1], [], []>} : vector<2x32xf32>, vector<32x96xf32>, vector<2x96xf32> -> vector<2x96xf32>
    %598 = vector.broadcast %20 : vector<1x96xf32> to vector<2x96xf32>
    %599 = arith.addf %597, %598 : vector<2x96xf32>
    %600 = vector.extract_strided_slice %596 {offsets = [0, 0], sizes = [2, 32], strides = [1, 1]} : vector<2x96xf32> to vector<2x32xf32>
    %601 = vector.extract_strided_slice %599 {offsets = [0, 0], sizes = [2, 32], strides = [1, 1]} : vector<2x96xf32> to vector<2x32xf32>
    %602 = arith.addf %600, %601 : vector<2x32xf32>
    %603 = arith.negf %602 : vector<2x32xf32>
    %604 = math.exp %603 : vector<2x32xf32>
    %cst_91 = arith.constant 1.000000e+00 : f32
    %605 = vector.broadcast %cst_91 : f32 to vector<2x32xf32>
    %606 = arith.addf %605, %604 : vector<2x32xf32>
    %607 = arith.divf %605, %606 : vector<2x32xf32>
    %608 = vector.extract_strided_slice %596 {offsets = [0, 32], sizes = [2, 32], strides = [1, 1]} : vector<2x96xf32> to vector<2x32xf32>
    %609 = vector.extract_strided_slice %599 {offsets = [0, 32], sizes = [2, 32], strides = [1, 1]} : vector<2x96xf32> to vector<2x32xf32>
    %610 = arith.addf %608, %609 : vector<2x32xf32>
    %611 = arith.negf %610 : vector<2x32xf32>
    %612 = math.exp %611 : vector<2x32xf32>
    %cst_92 = arith.constant 1.000000e+00 : f32
    %613 = vector.broadcast %cst_92 : f32 to vector<2x32xf32>
    %614 = arith.addf %613, %612 : vector<2x32xf32>
    %615 = arith.divf %613, %614 : vector<2x32xf32>
    %616 = vector.extract_strided_slice %596 {offsets = [0, 64], sizes = [2, 32], strides = [1, 1]} : vector<2x96xf32> to vector<2x32xf32>
    %617 = vector.extract_strided_slice %599 {offsets = [0, 64], sizes = [2, 32], strides = [1, 1]} : vector<2x96xf32> to vector<2x32xf32>
    %618 = arith.mulf %607, %617 : vector<2x32xf32>
    %619 = arith.addf %616, %618 : vector<2x32xf32>
    %620 = math.tanh %619 : vector<2x32xf32>
    %cst_93 = arith.constant 1.000000e+00 : f32
    %621 = vector.broadcast %cst_93 : f32 to vector<2x32xf32>
    %622 = arith.subf %621, %615 : vector<2x32xf32>
    %623 = arith.mulf %622, %620 : vector<2x32xf32>
    %624 = arith.mulf %615, %550 : vector<2x32xf32>
    %625 = arith.addf %623, %624 : vector<2x32xf32>
    %626 = vector.broadcast %556 : vector<2x1xf32> to vector<2x32xf32>
    %627 = arith.mulf %626, %625 : vector<2x32xf32>
    %cst_94 = arith.constant 1.000000e+00 : f32
    %628 = vector.broadcast %cst_94 : f32 to vector<2x1xf32>
    %629 = arith.subf %628, %556 : vector<2x1xf32>
    %630 = vector.broadcast %629 : vector<2x1xf32> to vector<2x32xf32>
    %631 = arith.mulf %630, %550 : vector<2x32xf32>
    %632 = arith.addf %627, %631 : vector<2x32xf32>
    %633 = vector.broadcast %555 : vector<2x1xf32> to vector<2x32xf32>
    %634 = arith.mulf %594, %633 : vector<2x32xf32>
    %635 = vector.broadcast %556 : vector<2x1xf32> to vector<2x32xf32>
    %636 = arith.mulf %632, %635 : vector<2x32xf32>
    %637 = vector.extract_strided_slice %2 {offsets = [0, 7], sizes = [2, 1], strides = [1, 1]} : vector<2x8xf32> to vector<2x1xf32>
    %638 = vector.extract_strided_slice %2 {offsets = [0, 0], sizes = [2, 1], strides = [1, 1]} : vector<2x8xf32> to vector<2x1xf32>
    %639 = vector.extract_strided_slice %52 {offsets = [0, 7, 0], sizes = [2, 1, 96], strides = [1, 1, 1]} : vector<2x8x96xf32> to vector<2x1x96xf32>
    %640 = vector.shape_cast %639 : vector<2x1x96xf32> to vector<2x96xf32>
    %cst_95 = arith.constant dense<0.000000e+00> : vector<2x96xf32>
    %641 = tpu.matmul %594, %16, %cst_95 {dimension_numbers = #tpu.dot_dimension_numbers<[1], [0], [0], [1], [0, 0, 1, 1], [], []>} : vector<2x32xf32>, vector<32x96xf32>, vector<2x96xf32> -> vector<2x96xf32>
    %642 = vector.broadcast %19 : vector<1x96xf32> to vector<2x96xf32>
    %643 = arith.addf %641, %642 : vector<2x96xf32>
    %644 = vector.extract_strided_slice %640 {offsets = [0, 0], sizes = [2, 32], strides = [1, 1]} : vector<2x96xf32> to vector<2x32xf32>
    %645 = vector.extract_strided_slice %643 {offsets = [0, 0], sizes = [2, 32], strides = [1, 1]} : vector<2x96xf32> to vector<2x32xf32>
    %646 = arith.addf %644, %645 : vector<2x32xf32>
    %647 = arith.negf %646 : vector<2x32xf32>
    %648 = math.exp %647 : vector<2x32xf32>
    %cst_96 = arith.constant 1.000000e+00 : f32
    %649 = vector.broadcast %cst_96 : f32 to vector<2x32xf32>
    %650 = arith.addf %649, %648 : vector<2x32xf32>
    %651 = arith.divf %649, %650 : vector<2x32xf32>
    %652 = vector.extract_strided_slice %640 {offsets = [0, 32], sizes = [2, 32], strides = [1, 1]} : vector<2x96xf32> to vector<2x32xf32>
    %653 = vector.extract_strided_slice %643 {offsets = [0, 32], sizes = [2, 32], strides = [1, 1]} : vector<2x96xf32> to vector<2x32xf32>
    %654 = arith.addf %652, %653 : vector<2x32xf32>
    %655 = arith.negf %654 : vector<2x32xf32>
    %656 = math.exp %655 : vector<2x32xf32>
    %cst_97 = arith.constant 1.000000e+00 : f32
    %657 = vector.broadcast %cst_97 : f32 to vector<2x32xf32>
    %658 = arith.addf %657, %656 : vector<2x32xf32>
    %659 = arith.divf %657, %658 : vector<2x32xf32>
    %660 = vector.extract_strided_slice %640 {offsets = [0, 64], sizes = [2, 32], strides = [1, 1]} : vector<2x96xf32> to vector<2x32xf32>
    %661 = vector.extract_strided_slice %643 {offsets = [0, 64], sizes = [2, 32], strides = [1, 1]} : vector<2x96xf32> to vector<2x32xf32>
    %662 = arith.mulf %651, %661 : vector<2x32xf32>
    %663 = arith.addf %660, %662 : vector<2x32xf32>
    %664 = math.tanh %663 : vector<2x32xf32>
    %cst_98 = arith.constant 1.000000e+00 : f32
    %665 = vector.broadcast %cst_98 : f32 to vector<2x32xf32>
    %666 = arith.subf %665, %659 : vector<2x32xf32>
    %667 = arith.mulf %666, %664 : vector<2x32xf32>
    %668 = arith.mulf %659, %594 : vector<2x32xf32>
    %669 = arith.addf %667, %668 : vector<2x32xf32>
    %670 = vector.broadcast %637 : vector<2x1xf32> to vector<2x32xf32>
    %671 = arith.mulf %670, %669 : vector<2x32xf32>
    %cst_99 = arith.constant 1.000000e+00 : f32
    %672 = vector.broadcast %cst_99 : f32 to vector<2x1xf32>
    %673 = arith.subf %672, %637 : vector<2x1xf32>
    %674 = vector.broadcast %673 : vector<2x1xf32> to vector<2x32xf32>
    %675 = arith.mulf %674, %594 : vector<2x32xf32>
    %676 = arith.addf %671, %675 : vector<2x32xf32>
    %677 = vector.extract_strided_slice %56 {offsets = [0, 0, 0], sizes = [2, 1, 96], strides = [1, 1, 1]} : vector<2x8x96xf32> to vector<2x1x96xf32>
    %678 = vector.shape_cast %677 : vector<2x1x96xf32> to vector<2x96xf32>
    %cst_100 = arith.constant dense<0.000000e+00> : vector<2x96xf32>
    %679 = tpu.matmul %632, %17, %cst_100 {dimension_numbers = #tpu.dot_dimension_numbers<[1], [0], [0], [1], [0, 0, 1, 1], [], []>} : vector<2x32xf32>, vector<32x96xf32>, vector<2x96xf32> -> vector<2x96xf32>
    %680 = vector.broadcast %20 : vector<1x96xf32> to vector<2x96xf32>
    %681 = arith.addf %679, %680 : vector<2x96xf32>
    %682 = vector.extract_strided_slice %678 {offsets = [0, 0], sizes = [2, 32], strides = [1, 1]} : vector<2x96xf32> to vector<2x32xf32>
    %683 = vector.extract_strided_slice %681 {offsets = [0, 0], sizes = [2, 32], strides = [1, 1]} : vector<2x96xf32> to vector<2x32xf32>
    %684 = arith.addf %682, %683 : vector<2x32xf32>
    %685 = arith.negf %684 : vector<2x32xf32>
    %686 = math.exp %685 : vector<2x32xf32>
    %cst_101 = arith.constant 1.000000e+00 : f32
    %687 = vector.broadcast %cst_101 : f32 to vector<2x32xf32>
    %688 = arith.addf %687, %686 : vector<2x32xf32>
    %689 = arith.divf %687, %688 : vector<2x32xf32>
    %690 = vector.extract_strided_slice %678 {offsets = [0, 32], sizes = [2, 32], strides = [1, 1]} : vector<2x96xf32> to vector<2x32xf32>
    %691 = vector.extract_strided_slice %681 {offsets = [0, 32], sizes = [2, 32], strides = [1, 1]} : vector<2x96xf32> to vector<2x32xf32>
    %692 = arith.addf %690, %691 : vector<2x32xf32>
    %693 = arith.negf %692 : vector<2x32xf32>
    %694 = math.exp %693 : vector<2x32xf32>
    %cst_102 = arith.constant 1.000000e+00 : f32
    %695 = vector.broadcast %cst_102 : f32 to vector<2x32xf32>
    %696 = arith.addf %695, %694 : vector<2x32xf32>
    %697 = arith.divf %695, %696 : vector<2x32xf32>
    %698 = vector.extract_strided_slice %678 {offsets = [0, 64], sizes = [2, 32], strides = [1, 1]} : vector<2x96xf32> to vector<2x32xf32>
    %699 = vector.extract_strided_slice %681 {offsets = [0, 64], sizes = [2, 32], strides = [1, 1]} : vector<2x96xf32> to vector<2x32xf32>
    %700 = arith.mulf %689, %699 : vector<2x32xf32>
    %701 = arith.addf %698, %700 : vector<2x32xf32>
    %702 = math.tanh %701 : vector<2x32xf32>
    %cst_103 = arith.constant 1.000000e+00 : f32
    %703 = vector.broadcast %cst_103 : f32 to vector<2x32xf32>
    %704 = arith.subf %703, %697 : vector<2x32xf32>
    %705 = arith.mulf %704, %702 : vector<2x32xf32>
    %706 = arith.mulf %697, %632 : vector<2x32xf32>
    %707 = arith.addf %705, %706 : vector<2x32xf32>
    %708 = vector.broadcast %638 : vector<2x1xf32> to vector<2x32xf32>
    %709 = arith.mulf %708, %707 : vector<2x32xf32>
    %cst_104 = arith.constant 1.000000e+00 : f32
    %710 = vector.broadcast %cst_104 : f32 to vector<2x1xf32>
    %711 = arith.subf %710, %638 : vector<2x1xf32>
    %712 = vector.broadcast %711 : vector<2x1xf32> to vector<2x32xf32>
    %713 = arith.mulf %712, %632 : vector<2x32xf32>
    %714 = arith.addf %709, %713 : vector<2x32xf32>
    %715 = vector.broadcast %637 : vector<2x1xf32> to vector<2x32xf32>
    %716 = arith.mulf %676, %715 : vector<2x32xf32>
    %717 = vector.broadcast %638 : vector<2x1xf32> to vector<2x32xf32>
    %718 = arith.mulf %714, %717 : vector<2x32xf32>
    %719 = tpu.concatenate %142, %718 in 1 : vector<2x32xf32>, vector<2x32xf32> -> vector<2x64xf32>
    %720 = tpu.concatenate %224, %636 in 1 : vector<2x32xf32>, vector<2x32xf32> -> vector<2x64xf32>
    %721 = tpu.concatenate %306, %554 in 1 : vector<2x32xf32>, vector<2x32xf32> -> vector<2x64xf32>
    %722 = tpu.concatenate %388, %472 in 1 : vector<2x32xf32>, vector<2x32xf32> -> vector<2x64xf32>
    %723 = tpu.concatenate %470, %390 in 1 : vector<2x32xf32>, vector<2x32xf32> -> vector<2x64xf32>
    %724 = tpu.concatenate %552, %308 in 1 : vector<2x32xf32>, vector<2x32xf32> -> vector<2x64xf32>
    %725 = tpu.concatenate %634, %226 in 1 : vector<2x32xf32>, vector<2x32xf32> -> vector<2x64xf32>
    %726 = tpu.concatenate %716, %144 in 1 : vector<2x32xf32>, vector<2x32xf32> -> vector<2x64xf32>
    %727 = vector.shape_cast %719 : vector<2x64xf32> to vector<2x1x64xf32>
    %728 = vector.shape_cast %720 : vector<2x64xf32> to vector<2x1x64xf32>
    %729 = vector.shape_cast %721 : vector<2x64xf32> to vector<2x1x64xf32>
    %730 = vector.shape_cast %722 : vector<2x64xf32> to vector<2x1x64xf32>
    %731 = vector.shape_cast %723 : vector<2x64xf32> to vector<2x1x64xf32>
    %732 = vector.shape_cast %724 : vector<2x64xf32> to vector<2x1x64xf32>
    %733 = vector.shape_cast %725 : vector<2x64xf32> to vector<2x1x64xf32>
    %734 = vector.shape_cast %726 : vector<2x64xf32> to vector<2x1x64xf32>
    %735 = tpu.concatenate %727, %728, %729, %730, %731, %732, %733, %734 in 1 : vector<2x1x64xf32>, vector<2x1x64xf32>, vector<2x1x64xf32>, vector<2x1x64xf32>, vector<2x1x64xf32>, vector<2x1x64xf32>, vector<2x1x64xf32>, vector<2x1x64xf32> -> vector<2x8x64xf32>
    %736 = tpu.concatenate %676, %714 in 1 : vector<2x32xf32>, vector<2x32xf32> -> vector<2x64xf32>
    %cst_105 = arith.constant dense<0.000000e+00> : vector<2x32xf32>
    %737 = tpu.matmul %736, %22, %cst_105 {dimension_numbers = #tpu.dot_dimension_numbers<[1], [0], [0], [1], [0, 0, 1, 1], [], []>} : vector<2x64xf32>, vector<64x32xf32>, vector<2x32xf32> -> vector<2x32xf32>
    %738 = vector.broadcast %23 : vector<1x32xf32> to vector<2x32xf32>
    %739 = arith.addf %737, %738 : vector<2x32xf32>
    %740 = vector.shape_cast %735 : vector<2x8x64xf32> to vector<16x64xf32>
    %cst_106 = arith.constant dense<0.000000e+00> : vector<16x32xf32>
    %741 = tpu.matmul %740, %8, %cst_106 {dimension_numbers = #tpu.dot_dimension_numbers<[1], [0], [0], [1], [0, 0, 1, 1], [], []>} : vector<16x64xf32>, vector<64x32xf32>, vector<16x32xf32> -> vector<16x32xf32>
    %742 = vector.shape_cast %741 : vector<16x32xf32> to vector<2x8x32xf32>
    %cst_107 = arith.constant 0.000000e+00 : f32
    %743 = vector.broadcast %cst_107 : f32 to vector<1x1xf32>
    %744 = vector.extract_strided_slice %60 {offsets = [0, 0, 0], sizes = [2, 1, 96], strides = [1, 1, 1]} : vector<2x6x96xf32> to vector<2x1x96xf32>
    %745 = vector.shape_cast %744 : vector<2x1x96xf32> to vector<2x96xf32>
    %cst_108 = arith.constant dense<0.000000e+00> : vector<2x96xf32>
    %746 = tpu.matmul %739, %18, %cst_108 {dimension_numbers = #tpu.dot_dimension_numbers<[1], [0], [0], [1], [0, 0, 1, 1], [], []>} : vector<2x32xf32>, vector<32x96xf32>, vector<2x96xf32> -> vector<2x96xf32>
    %747 = vector.broadcast %21 : vector<1x96xf32> to vector<2x96xf32>
    %748 = arith.addf %746, %747 : vector<2x96xf32>
    %749 = vector.extract_strided_slice %745 {offsets = [0, 0], sizes = [2, 32], strides = [1, 1]} : vector<2x96xf32> to vector<2x32xf32>
    %750 = vector.extract_strided_slice %748 {offsets = [0, 0], sizes = [2, 32], strides = [1, 1]} : vector<2x96xf32> to vector<2x32xf32>
    %751 = arith.addf %749, %750 : vector<2x32xf32>
    %752 = arith.negf %751 : vector<2x32xf32>
    %753 = math.exp %752 : vector<2x32xf32>
    %cst_109 = arith.constant 1.000000e+00 : f32
    %754 = vector.broadcast %cst_109 : f32 to vector<2x32xf32>
    %755 = arith.addf %754, %753 : vector<2x32xf32>
    %756 = arith.divf %754, %755 : vector<2x32xf32>
    %757 = vector.extract_strided_slice %745 {offsets = [0, 32], sizes = [2, 32], strides = [1, 1]} : vector<2x96xf32> to vector<2x32xf32>
    %758 = vector.extract_strided_slice %748 {offsets = [0, 32], sizes = [2, 32], strides = [1, 1]} : vector<2x96xf32> to vector<2x32xf32>
    %759 = arith.addf %757, %758 : vector<2x32xf32>
    %760 = arith.negf %759 : vector<2x32xf32>
    %761 = math.exp %760 : vector<2x32xf32>
    %cst_110 = arith.constant 1.000000e+00 : f32
    %762 = vector.broadcast %cst_110 : f32 to vector<2x32xf32>
    %763 = arith.addf %762, %761 : vector<2x32xf32>
    %764 = arith.divf %762, %763 : vector<2x32xf32>
    %765 = vector.extract_strided_slice %745 {offsets = [0, 64], sizes = [2, 32], strides = [1, 1]} : vector<2x96xf32> to vector<2x32xf32>
    %766 = vector.extract_strided_slice %748 {offsets = [0, 64], sizes = [2, 32], strides = [1, 1]} : vector<2x96xf32> to vector<2x32xf32>
    %767 = arith.mulf %756, %766 : vector<2x32xf32>
    %768 = arith.addf %765, %767 : vector<2x32xf32>
    %769 = math.tanh %768 : vector<2x32xf32>
    %cst_111 = arith.constant 1.000000e+00 : f32
    %770 = vector.broadcast %cst_111 : f32 to vector<2x32xf32>
    %771 = arith.subf %770, %764 : vector<2x32xf32>
    %772 = arith.mulf %771, %769 : vector<2x32xf32>
    %773 = arith.mulf %764, %739 : vector<2x32xf32>
    %774 = arith.addf %772, %773 : vector<2x32xf32>
    %775 = vector.shape_cast %774 : vector<2x32xf32> to vector<2x1x32xf32>
    %776 = vector.broadcast %775 : vector<2x1x32xf32> to vector<2x8x32xf32>
    %777 = arith.mulf %776, %742 : vector<2x8x32xf32>
    %cst_112 = arith.constant dense<0.000000e+00> : vector<2x8xf32>
    %778 = vector.multi_reduction <add>, %777, %cst_112 [2] : vector<2x8x32xf32> to vector<2x8xf32>
    %cst_113 = arith.constant 0.000000e+00 : f32
    %779 = vector.broadcast %cst_113 : f32 to vector<2x8xf32>
    %780 = arith.cmpf ogt, %2, %779 : vector<2x8xf32>
    %cst_114 = arith.constant -1.000000e+30 : f32
    %781 = vector.broadcast %cst_114 : f32 to vector<2x8xf32>
    %782 = arith.select %780, %778, %781 : vector<2x8xi1>, vector<2x8xf32>
    %cst_115 = arith.constant dense<0xFF800000> : vector<2xf32>
    %783 = vector.multi_reduction <maximumf>, %782, %cst_115 [1] : vector<2x8xf32> to vector<2xf32>
    %784 = vector.shape_cast %783 : vector<2xf32> to vector<2x1xf32>
    %785 = vector.broadcast %784 : vector<2x1xf32> to vector<2x8xf32>
    %786 = arith.subf %782, %785 : vector<2x8xf32>
    %787 = math.exp %786 : vector<2x8xf32>
    %788 = arith.mulf %787, %2 : vector<2x8xf32>
    %cst_116 = arith.constant dense<0.000000e+00> : vector<2xf32>
    %789 = vector.multi_reduction <add>, %788, %cst_116 [1] : vector<2x8xf32> to vector<2xf32>
    %790 = vector.shape_cast %789 : vector<2xf32> to vector<2x1xf32>
    %cst_117 = arith.constant 9.99999971E-10 : f32
    %791 = vector.broadcast %cst_117 : f32 to vector<2x1xf32>
    %792 = arith.maximumf %790, %791 : vector<2x1xf32>
    %793 = vector.broadcast %792 : vector<2x1xf32> to vector<2x8xf32>
    %794 = arith.divf %788, %793 : vector<2x8xf32>
    %795 = vector.shape_cast %794 : vector<2x8xf32> to vector<2x8x1xf32>
    %796 = vector.broadcast %795 : vector<2x8x1xf32> to vector<2x8x64xf32>
    %797 = arith.mulf %796, %735 : vector<2x8x64xf32>
    %cst_118 = arith.constant dense<0.000000e+00> : vector<2x64xf32>
    %798 = vector.multi_reduction <add>, %797, %cst_118 [1] : vector<2x8x64xf32> to vector<2x64xf32>
    %799 = tpu.concatenate %774, %798 in 1 : vector<2x32xf32>, vector<2x64xf32> -> vector<2x96xf32>
    %cst_119 = arith.constant dense<0.000000e+00> : vector<2x32xf32>
    %800 = tpu.matmul %799, %24, %cst_119 {dimension_numbers = #tpu.dot_dimension_numbers<[1], [0], [0], [1], [0, 0, 1, 1], [], []>} : vector<2x96xf32>, vector<96x32xf32>, vector<2x32xf32> -> vector<2x32xf32>
    %801 = vector.broadcast %25 : vector<1x32xf32> to vector<2x32xf32>
    %802 = arith.addf %800, %801 : vector<2x32xf32>
    %cst_120 = arith.constant dense<0xFF800000> : vector<2xf32>
    %803 = vector.multi_reduction <maximumf>, %802, %cst_120 [1] : vector<2x32xf32> to vector<2xf32>
    %804 = vector.shape_cast %803 : vector<2xf32> to vector<2x1xf32>
    %805 = vector.broadcast %804 : vector<2x1xf32> to vector<2x32xf32>
    %806 = arith.subf %802, %805 : vector<2x32xf32>
    %807 = math.exp %806 : vector<2x32xf32>
    %808 = vector.broadcast %804 : vector<2x1xf32> to vector<2x32xf32>
    %809 = arith.subf %802, %808 : vector<2x32xf32>
    %cst_121 = arith.constant dense<0.000000e+00> : vector<2xf32>
    %810 = vector.multi_reduction <add>, %807, %cst_121 [1] : vector<2x32xf32> to vector<2xf32>
    %811 = vector.shape_cast %810 : vector<2xf32> to vector<2x1xf32>
    %812 = math.log %811 : vector<2x1xf32>
    %813 = vector.broadcast %812 : vector<2x1xf32> to vector<2x32xf32>
    %814 = arith.subf %809, %813 : vector<2x32xf32>
    %815 = vector.extract_strided_slice %37 {offsets = [0, 0, 0], sizes = [2, 1, 32], strides = [1, 1, 1]} : vector<2x6x32xf32> to vector<2x1x32xf32>
    %816 = vector.shape_cast %815 : vector<2x1x32xf32> to vector<2x32xf32>
    %817 = arith.mulf %814, %816 : vector<2x32xf32>
    %cst_122 = arith.constant dense<0.000000e+00> : vector<2xf32>
    %818 = vector.multi_reduction <add>, %817, %cst_122 [1] : vector<2x32xf32> to vector<2xf32>
    %819 = vector.shape_cast %818 : vector<2xf32> to vector<2x1xf32>
    %820 = vector.extract_strided_slice %3 {offsets = [0, 0], sizes = [2, 1], strides = [1, 1]} : vector<2x6xf32> to vector<2x1xf32>
    %821 = arith.mulf %819, %820 : vector<2x1xf32>
    %cst_123 = arith.constant dense<0.000000e+00> : vector<1xf32>
    %822 = vector.multi_reduction <add>, %821, %cst_123 [0] : vector<2x1xf32> to vector<1xf32>
    %823 = vector.shape_cast %822 : vector<1xf32> to vector<1x1xf32>
    %824 = arith.addf %743, %823 : vector<1x1xf32>
    %825 = vector.extract_strided_slice %60 {offsets = [0, 1, 0], sizes = [2, 1, 96], strides = [1, 1, 1]} : vector<2x6x96xf32> to vector<2x1x96xf32>
    %826 = vector.shape_cast %825 : vector<2x1x96xf32> to vector<2x96xf32>
    %cst_124 = arith.constant dense<0.000000e+00> : vector<2x96xf32>
    %827 = tpu.matmul %774, %18, %cst_124 {dimension_numbers = #tpu.dot_dimension_numbers<[1], [0], [0], [1], [0, 0, 1, 1], [], []>} : vector<2x32xf32>, vector<32x96xf32>, vector<2x96xf32> -> vector<2x96xf32>
    %828 = vector.broadcast %21 : vector<1x96xf32> to vector<2x96xf32>
    %829 = arith.addf %827, %828 : vector<2x96xf32>
    %830 = vector.extract_strided_slice %826 {offsets = [0, 0], sizes = [2, 32], strides = [1, 1]} : vector<2x96xf32> to vector<2x32xf32>
    %831 = vector.extract_strided_slice %829 {offsets = [0, 0], sizes = [2, 32], strides = [1, 1]} : vector<2x96xf32> to vector<2x32xf32>
    %832 = arith.addf %830, %831 : vector<2x32xf32>
    %833 = arith.negf %832 : vector<2x32xf32>
    %834 = math.exp %833 : vector<2x32xf32>
    %cst_125 = arith.constant 1.000000e+00 : f32
    %835 = vector.broadcast %cst_125 : f32 to vector<2x32xf32>
    %836 = arith.addf %835, %834 : vector<2x32xf32>
    %837 = arith.divf %835, %836 : vector<2x32xf32>
    %838 = vector.extract_strided_slice %826 {offsets = [0, 32], sizes = [2, 32], strides = [1, 1]} : vector<2x96xf32> to vector<2x32xf32>
    %839 = vector.extract_strided_slice %829 {offsets = [0, 32], sizes = [2, 32], strides = [1, 1]} : vector<2x96xf32> to vector<2x32xf32>
    %840 = arith.addf %838, %839 : vector<2x32xf32>
    %841 = arith.negf %840 : vector<2x32xf32>
    %842 = math.exp %841 : vector<2x32xf32>
    %cst_126 = arith.constant 1.000000e+00 : f32
    %843 = vector.broadcast %cst_126 : f32 to vector<2x32xf32>
    %844 = arith.addf %843, %842 : vector<2x32xf32>
    %845 = arith.divf %843, %844 : vector<2x32xf32>
    %846 = vector.extract_strided_slice %826 {offsets = [0, 64], sizes = [2, 32], strides = [1, 1]} : vector<2x96xf32> to vector<2x32xf32>
    %847 = vector.extract_strided_slice %829 {offsets = [0, 64], sizes = [2, 32], strides = [1, 1]} : vector<2x96xf32> to vector<2x32xf32>
    %848 = arith.mulf %837, %847 : vector<2x32xf32>
    %849 = arith.addf %846, %848 : vector<2x32xf32>
    %850 = math.tanh %849 : vector<2x32xf32>
    %cst_127 = arith.constant 1.000000e+00 : f32
    %851 = vector.broadcast %cst_127 : f32 to vector<2x32xf32>
    %852 = arith.subf %851, %845 : vector<2x32xf32>
    %853 = arith.mulf %852, %850 : vector<2x32xf32>
    %854 = arith.mulf %845, %774 : vector<2x32xf32>
    %855 = arith.addf %853, %854 : vector<2x32xf32>
    %856 = vector.shape_cast %855 : vector<2x32xf32> to vector<2x1x32xf32>
    %857 = vector.broadcast %856 : vector<2x1x32xf32> to vector<2x8x32xf32>
    %858 = arith.mulf %857, %742 : vector<2x8x32xf32>
    %cst_128 = arith.constant dense<0.000000e+00> : vector<2x8xf32>
    %859 = vector.multi_reduction <add>, %858, %cst_128 [2] : vector<2x8x32xf32> to vector<2x8xf32>
    %cst_129 = arith.constant 0.000000e+00 : f32
    %860 = vector.broadcast %cst_129 : f32 to vector<2x8xf32>
    %861 = arith.cmpf ogt, %2, %860 : vector<2x8xf32>
    %cst_130 = arith.constant -1.000000e+30 : f32
    %862 = vector.broadcast %cst_130 : f32 to vector<2x8xf32>
    %863 = arith.select %861, %859, %862 : vector<2x8xi1>, vector<2x8xf32>
    %cst_131 = arith.constant dense<0xFF800000> : vector<2xf32>
    %864 = vector.multi_reduction <maximumf>, %863, %cst_131 [1] : vector<2x8xf32> to vector<2xf32>
    %865 = vector.shape_cast %864 : vector<2xf32> to vector<2x1xf32>
    %866 = vector.broadcast %865 : vector<2x1xf32> to vector<2x8xf32>
    %867 = arith.subf %863, %866 : vector<2x8xf32>
    %868 = math.exp %867 : vector<2x8xf32>
    %869 = arith.mulf %868, %2 : vector<2x8xf32>
    %cst_132 = arith.constant dense<0.000000e+00> : vector<2xf32>
    %870 = vector.multi_reduction <add>, %869, %cst_132 [1] : vector<2x8xf32> to vector<2xf32>
    %871 = vector.shape_cast %870 : vector<2xf32> to vector<2x1xf32>
    %cst_133 = arith.constant 9.99999971E-10 : f32
    %872 = vector.broadcast %cst_133 : f32 to vector<2x1xf32>
    %873 = arith.maximumf %871, %872 : vector<2x1xf32>
    %874 = vector.broadcast %873 : vector<2x1xf32> to vector<2x8xf32>
    %875 = arith.divf %869, %874 : vector<2x8xf32>
    %876 = vector.shape_cast %875 : vector<2x8xf32> to vector<2x8x1xf32>
    %877 = vector.broadcast %876 : vector<2x8x1xf32> to vector<2x8x64xf32>
    %878 = arith.mulf %877, %735 : vector<2x8x64xf32>
    %cst_134 = arith.constant dense<0.000000e+00> : vector<2x64xf32>
    %879 = vector.multi_reduction <add>, %878, %cst_134 [1] : vector<2x8x64xf32> to vector<2x64xf32>
    %880 = tpu.concatenate %855, %879 in 1 : vector<2x32xf32>, vector<2x64xf32> -> vector<2x96xf32>
    %cst_135 = arith.constant dense<0.000000e+00> : vector<2x32xf32>
    %881 = tpu.matmul %880, %24, %cst_135 {dimension_numbers = #tpu.dot_dimension_numbers<[1], [0], [0], [1], [0, 0, 1, 1], [], []>} : vector<2x96xf32>, vector<96x32xf32>, vector<2x32xf32> -> vector<2x32xf32>
    %882 = vector.broadcast %25 : vector<1x32xf32> to vector<2x32xf32>
    %883 = arith.addf %881, %882 : vector<2x32xf32>
    %cst_136 = arith.constant dense<0xFF800000> : vector<2xf32>
    %884 = vector.multi_reduction <maximumf>, %883, %cst_136 [1] : vector<2x32xf32> to vector<2xf32>
    %885 = vector.shape_cast %884 : vector<2xf32> to vector<2x1xf32>
    %886 = vector.broadcast %885 : vector<2x1xf32> to vector<2x32xf32>
    %887 = arith.subf %883, %886 : vector<2x32xf32>
    %888 = math.exp %887 : vector<2x32xf32>
    %889 = vector.broadcast %885 : vector<2x1xf32> to vector<2x32xf32>
    %890 = arith.subf %883, %889 : vector<2x32xf32>
    %cst_137 = arith.constant dense<0.000000e+00> : vector<2xf32>
    %891 = vector.multi_reduction <add>, %888, %cst_137 [1] : vector<2x32xf32> to vector<2xf32>
    %892 = vector.shape_cast %891 : vector<2xf32> to vector<2x1xf32>
    %893 = math.log %892 : vector<2x1xf32>
    %894 = vector.broadcast %893 : vector<2x1xf32> to vector<2x32xf32>
    %895 = arith.subf %890, %894 : vector<2x32xf32>
    %896 = vector.extract_strided_slice %37 {offsets = [0, 1, 0], sizes = [2, 1, 32], strides = [1, 1, 1]} : vector<2x6x32xf32> to vector<2x1x32xf32>
    %897 = vector.shape_cast %896 : vector<2x1x32xf32> to vector<2x32xf32>
    %898 = arith.mulf %895, %897 : vector<2x32xf32>
    %cst_138 = arith.constant dense<0.000000e+00> : vector<2xf32>
    %899 = vector.multi_reduction <add>, %898, %cst_138 [1] : vector<2x32xf32> to vector<2xf32>
    %900 = vector.shape_cast %899 : vector<2xf32> to vector<2x1xf32>
    %901 = vector.extract_strided_slice %3 {offsets = [0, 1], sizes = [2, 1], strides = [1, 1]} : vector<2x6xf32> to vector<2x1xf32>
    %902 = arith.mulf %900, %901 : vector<2x1xf32>
    %cst_139 = arith.constant dense<0.000000e+00> : vector<1xf32>
    %903 = vector.multi_reduction <add>, %902, %cst_139 [0] : vector<2x1xf32> to vector<1xf32>
    %904 = vector.shape_cast %903 : vector<1xf32> to vector<1x1xf32>
    %905 = arith.addf %824, %904 : vector<1x1xf32>
    %906 = vector.extract_strided_slice %60 {offsets = [0, 2, 0], sizes = [2, 1, 96], strides = [1, 1, 1]} : vector<2x6x96xf32> to vector<2x1x96xf32>
    %907 = vector.shape_cast %906 : vector<2x1x96xf32> to vector<2x96xf32>
    %cst_140 = arith.constant dense<0.000000e+00> : vector<2x96xf32>
    %908 = tpu.matmul %855, %18, %cst_140 {dimension_numbers = #tpu.dot_dimension_numbers<[1], [0], [0], [1], [0, 0, 1, 1], [], []>} : vector<2x32xf32>, vector<32x96xf32>, vector<2x96xf32> -> vector<2x96xf32>
    %909 = vector.broadcast %21 : vector<1x96xf32> to vector<2x96xf32>
    %910 = arith.addf %908, %909 : vector<2x96xf32>
    %911 = vector.extract_strided_slice %907 {offsets = [0, 0], sizes = [2, 32], strides = [1, 1]} : vector<2x96xf32> to vector<2x32xf32>
    %912 = vector.extract_strided_slice %910 {offsets = [0, 0], sizes = [2, 32], strides = [1, 1]} : vector<2x96xf32> to vector<2x32xf32>
    %913 = arith.addf %911, %912 : vector<2x32xf32>
    %914 = arith.negf %913 : vector<2x32xf32>
    %915 = math.exp %914 : vector<2x32xf32>
    %cst_141 = arith.constant 1.000000e+00 : f32
    %916 = vector.broadcast %cst_141 : f32 to vector<2x32xf32>
    %917 = arith.addf %916, %915 : vector<2x32xf32>
    %918 = arith.divf %916, %917 : vector<2x32xf32>
    %919 = vector.extract_strided_slice %907 {offsets = [0, 32], sizes = [2, 32], strides = [1, 1]} : vector<2x96xf32> to vector<2x32xf32>
    %920 = vector.extract_strided_slice %910 {offsets = [0, 32], sizes = [2, 32], strides = [1, 1]} : vector<2x96xf32> to vector<2x32xf32>
    %921 = arith.addf %919, %920 : vector<2x32xf32>
    %922 = arith.negf %921 : vector<2x32xf32>
    %923 = math.exp %922 : vector<2x32xf32>
    %cst_142 = arith.constant 1.000000e+00 : f32
    %924 = vector.broadcast %cst_142 : f32 to vector<2x32xf32>
    %925 = arith.addf %924, %923 : vector<2x32xf32>
    %926 = arith.divf %924, %925 : vector<2x32xf32>
    %927 = vector.extract_strided_slice %907 {offsets = [0, 64], sizes = [2, 32], strides = [1, 1]} : vector<2x96xf32> to vector<2x32xf32>
    %928 = vector.extract_strided_slice %910 {offsets = [0, 64], sizes = [2, 32], strides = [1, 1]} : vector<2x96xf32> to vector<2x32xf32>
    %929 = arith.mulf %918, %928 : vector<2x32xf32>
    %930 = arith.addf %927, %929 : vector<2x32xf32>
    %931 = math.tanh %930 : vector<2x32xf32>
    %cst_143 = arith.constant 1.000000e+00 : f32
    %932 = vector.broadcast %cst_143 : f32 to vector<2x32xf32>
    %933 = arith.subf %932, %926 : vector<2x32xf32>
    %934 = arith.mulf %933, %931 : vector<2x32xf32>
    %935 = arith.mulf %926, %855 : vector<2x32xf32>
    %936 = arith.addf %934, %935 : vector<2x32xf32>
    %937 = vector.shape_cast %936 : vector<2x32xf32> to vector<2x1x32xf32>
    %938 = vector.broadcast %937 : vector<2x1x32xf32> to vector<2x8x32xf32>
    %939 = arith.mulf %938, %742 : vector<2x8x32xf32>
    %cst_144 = arith.constant dense<0.000000e+00> : vector<2x8xf32>
    %940 = vector.multi_reduction <add>, %939, %cst_144 [2] : vector<2x8x32xf32> to vector<2x8xf32>
    %cst_145 = arith.constant 0.000000e+00 : f32
    %941 = vector.broadcast %cst_145 : f32 to vector<2x8xf32>
    %942 = arith.cmpf ogt, %2, %941 : vector<2x8xf32>
    %cst_146 = arith.constant -1.000000e+30 : f32
    %943 = vector.broadcast %cst_146 : f32 to vector<2x8xf32>
    %944 = arith.select %942, %940, %943 : vector<2x8xi1>, vector<2x8xf32>
    %cst_147 = arith.constant dense<0xFF800000> : vector<2xf32>
    %945 = vector.multi_reduction <maximumf>, %944, %cst_147 [1] : vector<2x8xf32> to vector<2xf32>
    %946 = vector.shape_cast %945 : vector<2xf32> to vector<2x1xf32>
    %947 = vector.broadcast %946 : vector<2x1xf32> to vector<2x8xf32>
    %948 = arith.subf %944, %947 : vector<2x8xf32>
    %949 = math.exp %948 : vector<2x8xf32>
    %950 = arith.mulf %949, %2 : vector<2x8xf32>
    %cst_148 = arith.constant dense<0.000000e+00> : vector<2xf32>
    %951 = vector.multi_reduction <add>, %950, %cst_148 [1] : vector<2x8xf32> to vector<2xf32>
    %952 = vector.shape_cast %951 : vector<2xf32> to vector<2x1xf32>
    %cst_149 = arith.constant 9.99999971E-10 : f32
    %953 = vector.broadcast %cst_149 : f32 to vector<2x1xf32>
    %954 = arith.maximumf %952, %953 : vector<2x1xf32>
    %955 = vector.broadcast %954 : vector<2x1xf32> to vector<2x8xf32>
    %956 = arith.divf %950, %955 : vector<2x8xf32>
    %957 = vector.shape_cast %956 : vector<2x8xf32> to vector<2x8x1xf32>
    %958 = vector.broadcast %957 : vector<2x8x1xf32> to vector<2x8x64xf32>
    %959 = arith.mulf %958, %735 : vector<2x8x64xf32>
    %cst_150 = arith.constant dense<0.000000e+00> : vector<2x64xf32>
    %960 = vector.multi_reduction <add>, %959, %cst_150 [1] : vector<2x8x64xf32> to vector<2x64xf32>
    %961 = tpu.concatenate %936, %960 in 1 : vector<2x32xf32>, vector<2x64xf32> -> vector<2x96xf32>
    %cst_151 = arith.constant dense<0.000000e+00> : vector<2x32xf32>
    %962 = tpu.matmul %961, %24, %cst_151 {dimension_numbers = #tpu.dot_dimension_numbers<[1], [0], [0], [1], [0, 0, 1, 1], [], []>} : vector<2x96xf32>, vector<96x32xf32>, vector<2x32xf32> -> vector<2x32xf32>
    %963 = vector.broadcast %25 : vector<1x32xf32> to vector<2x32xf32>
    %964 = arith.addf %962, %963 : vector<2x32xf32>
    %cst_152 = arith.constant dense<0xFF800000> : vector<2xf32>
    %965 = vector.multi_reduction <maximumf>, %964, %cst_152 [1] : vector<2x32xf32> to vector<2xf32>
    %966 = vector.shape_cast %965 : vector<2xf32> to vector<2x1xf32>
    %967 = vector.broadcast %966 : vector<2x1xf32> to vector<2x32xf32>
    %968 = arith.subf %964, %967 : vector<2x32xf32>
    %969 = math.exp %968 : vector<2x32xf32>
    %970 = vector.broadcast %966 : vector<2x1xf32> to vector<2x32xf32>
    %971 = arith.subf %964, %970 : vector<2x32xf32>
    %cst_153 = arith.constant dense<0.000000e+00> : vector<2xf32>
    %972 = vector.multi_reduction <add>, %969, %cst_153 [1] : vector<2x32xf32> to vector<2xf32>
    %973 = vector.shape_cast %972 : vector<2xf32> to vector<2x1xf32>
    %974 = math.log %973 : vector<2x1xf32>
    %975 = vector.broadcast %974 : vector<2x1xf32> to vector<2x32xf32>
    %976 = arith.subf %971, %975 : vector<2x32xf32>
    %977 = vector.extract_strided_slice %37 {offsets = [0, 2, 0], sizes = [2, 1, 32], strides = [1, 1, 1]} : vector<2x6x32xf32> to vector<2x1x32xf32>
    %978 = vector.shape_cast %977 : vector<2x1x32xf32> to vector<2x32xf32>
    %979 = arith.mulf %976, %978 : vector<2x32xf32>
    %cst_154 = arith.constant dense<0.000000e+00> : vector<2xf32>
    %980 = vector.multi_reduction <add>, %979, %cst_154 [1] : vector<2x32xf32> to vector<2xf32>
    %981 = vector.shape_cast %980 : vector<2xf32> to vector<2x1xf32>
    %982 = vector.extract_strided_slice %3 {offsets = [0, 2], sizes = [2, 1], strides = [1, 1]} : vector<2x6xf32> to vector<2x1xf32>
    %983 = arith.mulf %981, %982 : vector<2x1xf32>
    %cst_155 = arith.constant dense<0.000000e+00> : vector<1xf32>
    %984 = vector.multi_reduction <add>, %983, %cst_155 [0] : vector<2x1xf32> to vector<1xf32>
    %985 = vector.shape_cast %984 : vector<1xf32> to vector<1x1xf32>
    %986 = arith.addf %905, %985 : vector<1x1xf32>
    %987 = vector.extract_strided_slice %60 {offsets = [0, 3, 0], sizes = [2, 1, 96], strides = [1, 1, 1]} : vector<2x6x96xf32> to vector<2x1x96xf32>
    %988 = vector.shape_cast %987 : vector<2x1x96xf32> to vector<2x96xf32>
    %cst_156 = arith.constant dense<0.000000e+00> : vector<2x96xf32>
    %989 = tpu.matmul %936, %18, %cst_156 {dimension_numbers = #tpu.dot_dimension_numbers<[1], [0], [0], [1], [0, 0, 1, 1], [], []>} : vector<2x32xf32>, vector<32x96xf32>, vector<2x96xf32> -> vector<2x96xf32>
    %990 = vector.broadcast %21 : vector<1x96xf32> to vector<2x96xf32>
    %991 = arith.addf %989, %990 : vector<2x96xf32>
    %992 = vector.extract_strided_slice %988 {offsets = [0, 0], sizes = [2, 32], strides = [1, 1]} : vector<2x96xf32> to vector<2x32xf32>
    %993 = vector.extract_strided_slice %991 {offsets = [0, 0], sizes = [2, 32], strides = [1, 1]} : vector<2x96xf32> to vector<2x32xf32>
    %994 = arith.addf %992, %993 : vector<2x32xf32>
    %995 = arith.negf %994 : vector<2x32xf32>
    %996 = math.exp %995 : vector<2x32xf32>
    %cst_157 = arith.constant 1.000000e+00 : f32
    %997 = vector.broadcast %cst_157 : f32 to vector<2x32xf32>
    %998 = arith.addf %997, %996 : vector<2x32xf32>
    %999 = arith.divf %997, %998 : vector<2x32xf32>
    %1000 = vector.extract_strided_slice %988 {offsets = [0, 32], sizes = [2, 32], strides = [1, 1]} : vector<2x96xf32> to vector<2x32xf32>
    %1001 = vector.extract_strided_slice %991 {offsets = [0, 32], sizes = [2, 32], strides = [1, 1]} : vector<2x96xf32> to vector<2x32xf32>
    %1002 = arith.addf %1000, %1001 : vector<2x32xf32>
    %1003 = arith.negf %1002 : vector<2x32xf32>
    %1004 = math.exp %1003 : vector<2x32xf32>
    %cst_158 = arith.constant 1.000000e+00 : f32
    %1005 = vector.broadcast %cst_158 : f32 to vector<2x32xf32>
    %1006 = arith.addf %1005, %1004 : vector<2x32xf32>
    %1007 = arith.divf %1005, %1006 : vector<2x32xf32>
    %1008 = vector.extract_strided_slice %988 {offsets = [0, 64], sizes = [2, 32], strides = [1, 1]} : vector<2x96xf32> to vector<2x32xf32>
    %1009 = vector.extract_strided_slice %991 {offsets = [0, 64], sizes = [2, 32], strides = [1, 1]} : vector<2x96xf32> to vector<2x32xf32>
    %1010 = arith.mulf %999, %1009 : vector<2x32xf32>
    %1011 = arith.addf %1008, %1010 : vector<2x32xf32>
    %1012 = math.tanh %1011 : vector<2x32xf32>
    %cst_159 = arith.constant 1.000000e+00 : f32
    %1013 = vector.broadcast %cst_159 : f32 to vector<2x32xf32>
    %1014 = arith.subf %1013, %1007 : vector<2x32xf32>
    %1015 = arith.mulf %1014, %1012 : vector<2x32xf32>
    %1016 = arith.mulf %1007, %936 : vector<2x32xf32>
    %1017 = arith.addf %1015, %1016 : vector<2x32xf32>
    %1018 = vector.shape_cast %1017 : vector<2x32xf32> to vector<2x1x32xf32>
    %1019 = vector.broadcast %1018 : vector<2x1x32xf32> to vector<2x8x32xf32>
    %1020 = arith.mulf %1019, %742 : vector<2x8x32xf32>
    %cst_160 = arith.constant dense<0.000000e+00> : vector<2x8xf32>
    %1021 = vector.multi_reduction <add>, %1020, %cst_160 [2] : vector<2x8x32xf32> to vector<2x8xf32>
    %cst_161 = arith.constant 0.000000e+00 : f32
    %1022 = vector.broadcast %cst_161 : f32 to vector<2x8xf32>
    %1023 = arith.cmpf ogt, %2, %1022 : vector<2x8xf32>
    %cst_162 = arith.constant -1.000000e+30 : f32
    %1024 = vector.broadcast %cst_162 : f32 to vector<2x8xf32>
    %1025 = arith.select %1023, %1021, %1024 : vector<2x8xi1>, vector<2x8xf32>
    %cst_163 = arith.constant dense<0xFF800000> : vector<2xf32>
    %1026 = vector.multi_reduction <maximumf>, %1025, %cst_163 [1] : vector<2x8xf32> to vector<2xf32>
    %1027 = vector.shape_cast %1026 : vector<2xf32> to vector<2x1xf32>
    %1028 = vector.broadcast %1027 : vector<2x1xf32> to vector<2x8xf32>
    %1029 = arith.subf %1025, %1028 : vector<2x8xf32>
    %1030 = math.exp %1029 : vector<2x8xf32>
    %1031 = arith.mulf %1030, %2 : vector<2x8xf32>
    %cst_164 = arith.constant dense<0.000000e+00> : vector<2xf32>
    %1032 = vector.multi_reduction <add>, %1031, %cst_164 [1] : vector<2x8xf32> to vector<2xf32>
    %1033 = vector.shape_cast %1032 : vector<2xf32> to vector<2x1xf32>
    %cst_165 = arith.constant 9.99999971E-10 : f32
    %1034 = vector.broadcast %cst_165 : f32 to vector<2x1xf32>
    %1035 = arith.maximumf %1033, %1034 : vector<2x1xf32>
    %1036 = vector.broadcast %1035 : vector<2x1xf32> to vector<2x8xf32>
    %1037 = arith.divf %1031, %1036 : vector<2x8xf32>
    %1038 = vector.shape_cast %1037 : vector<2x8xf32> to vector<2x8x1xf32>
    %1039 = vector.broadcast %1038 : vector<2x8x1xf32> to vector<2x8x64xf32>
    %1040 = arith.mulf %1039, %735 : vector<2x8x64xf32>
    %cst_166 = arith.constant dense<0.000000e+00> : vector<2x64xf32>
    %1041 = vector.multi_reduction <add>, %1040, %cst_166 [1] : vector<2x8x64xf32> to vector<2x64xf32>
    %1042 = tpu.concatenate %1017, %1041 in 1 : vector<2x32xf32>, vector<2x64xf32> -> vector<2x96xf32>
    %cst_167 = arith.constant dense<0.000000e+00> : vector<2x32xf32>
    %1043 = tpu.matmul %1042, %24, %cst_167 {dimension_numbers = #tpu.dot_dimension_numbers<[1], [0], [0], [1], [0, 0, 1, 1], [], []>} : vector<2x96xf32>, vector<96x32xf32>, vector<2x32xf32> -> vector<2x32xf32>
    %1044 = vector.broadcast %25 : vector<1x32xf32> to vector<2x32xf32>
    %1045 = arith.addf %1043, %1044 : vector<2x32xf32>
    %cst_168 = arith.constant dense<0xFF800000> : vector<2xf32>
    %1046 = vector.multi_reduction <maximumf>, %1045, %cst_168 [1] : vector<2x32xf32> to vector<2xf32>
    %1047 = vector.shape_cast %1046 : vector<2xf32> to vector<2x1xf32>
    %1048 = vector.broadcast %1047 : vector<2x1xf32> to vector<2x32xf32>
    %1049 = arith.subf %1045, %1048 : vector<2x32xf32>
    %1050 = math.exp %1049 : vector<2x32xf32>
    %1051 = vector.broadcast %1047 : vector<2x1xf32> to vector<2x32xf32>
    %1052 = arith.subf %1045, %1051 : vector<2x32xf32>
    %cst_169 = arith.constant dense<0.000000e+00> : vector<2xf32>
    %1053 = vector.multi_reduction <add>, %1050, %cst_169 [1] : vector<2x32xf32> to vector<2xf32>
    %1054 = vector.shape_cast %1053 : vector<2xf32> to vector<2x1xf32>
    %1055 = math.log %1054 : vector<2x1xf32>
    %1056 = vector.broadcast %1055 : vector<2x1xf32> to vector<2x32xf32>
    %1057 = arith.subf %1052, %1056 : vector<2x32xf32>
    %1058 = vector.extract_strided_slice %37 {offsets = [0, 3, 0], sizes = [2, 1, 32], strides = [1, 1, 1]} : vector<2x6x32xf32> to vector<2x1x32xf32>
    %1059 = vector.shape_cast %1058 : vector<2x1x32xf32> to vector<2x32xf32>
    %1060 = arith.mulf %1057, %1059 : vector<2x32xf32>
    %cst_170 = arith.constant dense<0.000000e+00> : vector<2xf32>
    %1061 = vector.multi_reduction <add>, %1060, %cst_170 [1] : vector<2x32xf32> to vector<2xf32>
    %1062 = vector.shape_cast %1061 : vector<2xf32> to vector<2x1xf32>
    %1063 = vector.extract_strided_slice %3 {offsets = [0, 3], sizes = [2, 1], strides = [1, 1]} : vector<2x6xf32> to vector<2x1xf32>
    %1064 = arith.mulf %1062, %1063 : vector<2x1xf32>
    %cst_171 = arith.constant dense<0.000000e+00> : vector<1xf32>
    %1065 = vector.multi_reduction <add>, %1064, %cst_171 [0] : vector<2x1xf32> to vector<1xf32>
    %1066 = vector.shape_cast %1065 : vector<1xf32> to vector<1x1xf32>
    %1067 = arith.addf %986, %1066 : vector<1x1xf32>
    %1068 = vector.extract_strided_slice %60 {offsets = [0, 4, 0], sizes = [2, 1, 96], strides = [1, 1, 1]} : vector<2x6x96xf32> to vector<2x1x96xf32>
    %1069 = vector.shape_cast %1068 : vector<2x1x96xf32> to vector<2x96xf32>
    %cst_172 = arith.constant dense<0.000000e+00> : vector<2x96xf32>
    %1070 = tpu.matmul %1017, %18, %cst_172 {dimension_numbers = #tpu.dot_dimension_numbers<[1], [0], [0], [1], [0, 0, 1, 1], [], []>} : vector<2x32xf32>, vector<32x96xf32>, vector<2x96xf32> -> vector<2x96xf32>
    %1071 = vector.broadcast %21 : vector<1x96xf32> to vector<2x96xf32>
    %1072 = arith.addf %1070, %1071 : vector<2x96xf32>
    %1073 = vector.extract_strided_slice %1069 {offsets = [0, 0], sizes = [2, 32], strides = [1, 1]} : vector<2x96xf32> to vector<2x32xf32>
    %1074 = vector.extract_strided_slice %1072 {offsets = [0, 0], sizes = [2, 32], strides = [1, 1]} : vector<2x96xf32> to vector<2x32xf32>
    %1075 = arith.addf %1073, %1074 : vector<2x32xf32>
    %1076 = arith.negf %1075 : vector<2x32xf32>
    %1077 = math.exp %1076 : vector<2x32xf32>
    %cst_173 = arith.constant 1.000000e+00 : f32
    %1078 = vector.broadcast %cst_173 : f32 to vector<2x32xf32>
    %1079 = arith.addf %1078, %1077 : vector<2x32xf32>
    %1080 = arith.divf %1078, %1079 : vector<2x32xf32>
    %1081 = vector.extract_strided_slice %1069 {offsets = [0, 32], sizes = [2, 32], strides = [1, 1]} : vector<2x96xf32> to vector<2x32xf32>
    %1082 = vector.extract_strided_slice %1072 {offsets = [0, 32], sizes = [2, 32], strides = [1, 1]} : vector<2x96xf32> to vector<2x32xf32>
    %1083 = arith.addf %1081, %1082 : vector<2x32xf32>
    %1084 = arith.negf %1083 : vector<2x32xf32>
    %1085 = math.exp %1084 : vector<2x32xf32>
    %cst_174 = arith.constant 1.000000e+00 : f32
    %1086 = vector.broadcast %cst_174 : f32 to vector<2x32xf32>
    %1087 = arith.addf %1086, %1085 : vector<2x32xf32>
    %1088 = arith.divf %1086, %1087 : vector<2x32xf32>
    %1089 = vector.extract_strided_slice %1069 {offsets = [0, 64], sizes = [2, 32], strides = [1, 1]} : vector<2x96xf32> to vector<2x32xf32>
    %1090 = vector.extract_strided_slice %1072 {offsets = [0, 64], sizes = [2, 32], strides = [1, 1]} : vector<2x96xf32> to vector<2x32xf32>
    %1091 = arith.mulf %1080, %1090 : vector<2x32xf32>
    %1092 = arith.addf %1089, %1091 : vector<2x32xf32>
    %1093 = math.tanh %1092 : vector<2x32xf32>
    %cst_175 = arith.constant 1.000000e+00 : f32
    %1094 = vector.broadcast %cst_175 : f32 to vector<2x32xf32>
    %1095 = arith.subf %1094, %1088 : vector<2x32xf32>
    %1096 = arith.mulf %1095, %1093 : vector<2x32xf32>
    %1097 = arith.mulf %1088, %1017 : vector<2x32xf32>
    %1098 = arith.addf %1096, %1097 : vector<2x32xf32>
    %1099 = vector.shape_cast %1098 : vector<2x32xf32> to vector<2x1x32xf32>
    %1100 = vector.broadcast %1099 : vector<2x1x32xf32> to vector<2x8x32xf32>
    %1101 = arith.mulf %1100, %742 : vector<2x8x32xf32>
    %cst_176 = arith.constant dense<0.000000e+00> : vector<2x8xf32>
    %1102 = vector.multi_reduction <add>, %1101, %cst_176 [2] : vector<2x8x32xf32> to vector<2x8xf32>
    %cst_177 = arith.constant 0.000000e+00 : f32
    %1103 = vector.broadcast %cst_177 : f32 to vector<2x8xf32>
    %1104 = arith.cmpf ogt, %2, %1103 : vector<2x8xf32>
    %cst_178 = arith.constant -1.000000e+30 : f32
    %1105 = vector.broadcast %cst_178 : f32 to vector<2x8xf32>
    %1106 = arith.select %1104, %1102, %1105 : vector<2x8xi1>, vector<2x8xf32>
    %cst_179 = arith.constant dense<0xFF800000> : vector<2xf32>
    %1107 = vector.multi_reduction <maximumf>, %1106, %cst_179 [1] : vector<2x8xf32> to vector<2xf32>
    %1108 = vector.shape_cast %1107 : vector<2xf32> to vector<2x1xf32>
    %1109 = vector.broadcast %1108 : vector<2x1xf32> to vector<2x8xf32>
    %1110 = arith.subf %1106, %1109 : vector<2x8xf32>
    %1111 = math.exp %1110 : vector<2x8xf32>
    %1112 = arith.mulf %1111, %2 : vector<2x8xf32>
    %cst_180 = arith.constant dense<0.000000e+00> : vector<2xf32>
    %1113 = vector.multi_reduction <add>, %1112, %cst_180 [1] : vector<2x8xf32> to vector<2xf32>
    %1114 = vector.shape_cast %1113 : vector<2xf32> to vector<2x1xf32>
    %cst_181 = arith.constant 9.99999971E-10 : f32
    %1115 = vector.broadcast %cst_181 : f32 to vector<2x1xf32>
    %1116 = arith.maximumf %1114, %1115 : vector<2x1xf32>
    %1117 = vector.broadcast %1116 : vector<2x1xf32> to vector<2x8xf32>
    %1118 = arith.divf %1112, %1117 : vector<2x8xf32>
    %1119 = vector.shape_cast %1118 : vector<2x8xf32> to vector<2x8x1xf32>
    %1120 = vector.broadcast %1119 : vector<2x8x1xf32> to vector<2x8x64xf32>
    %1121 = arith.mulf %1120, %735 : vector<2x8x64xf32>
    %cst_182 = arith.constant dense<0.000000e+00> : vector<2x64xf32>
    %1122 = vector.multi_reduction <add>, %1121, %cst_182 [1] : vector<2x8x64xf32> to vector<2x64xf32>
    %1123 = tpu.concatenate %1098, %1122 in 1 : vector<2x32xf32>, vector<2x64xf32> -> vector<2x96xf32>
    %cst_183 = arith.constant dense<0.000000e+00> : vector<2x32xf32>
    %1124 = tpu.matmul %1123, %24, %cst_183 {dimension_numbers = #tpu.dot_dimension_numbers<[1], [0], [0], [1], [0, 0, 1, 1], [], []>} : vector<2x96xf32>, vector<96x32xf32>, vector<2x32xf32> -> vector<2x32xf32>
    %1125 = vector.broadcast %25 : vector<1x32xf32> to vector<2x32xf32>
    %1126 = arith.addf %1124, %1125 : vector<2x32xf32>
    %cst_184 = arith.constant dense<0xFF800000> : vector<2xf32>
    %1127 = vector.multi_reduction <maximumf>, %1126, %cst_184 [1] : vector<2x32xf32> to vector<2xf32>
    %1128 = vector.shape_cast %1127 : vector<2xf32> to vector<2x1xf32>
    %1129 = vector.broadcast %1128 : vector<2x1xf32> to vector<2x32xf32>
    %1130 = arith.subf %1126, %1129 : vector<2x32xf32>
    %1131 = math.exp %1130 : vector<2x32xf32>
    %1132 = vector.broadcast %1128 : vector<2x1xf32> to vector<2x32xf32>
    %1133 = arith.subf %1126, %1132 : vector<2x32xf32>
    %cst_185 = arith.constant dense<0.000000e+00> : vector<2xf32>
    %1134 = vector.multi_reduction <add>, %1131, %cst_185 [1] : vector<2x32xf32> to vector<2xf32>
    %1135 = vector.shape_cast %1134 : vector<2xf32> to vector<2x1xf32>
    %1136 = math.log %1135 : vector<2x1xf32>
    %1137 = vector.broadcast %1136 : vector<2x1xf32> to vector<2x32xf32>
    %1138 = arith.subf %1133, %1137 : vector<2x32xf32>
    %1139 = vector.extract_strided_slice %37 {offsets = [0, 4, 0], sizes = [2, 1, 32], strides = [1, 1, 1]} : vector<2x6x32xf32> to vector<2x1x32xf32>
    %1140 = vector.shape_cast %1139 : vector<2x1x32xf32> to vector<2x32xf32>
    %1141 = arith.mulf %1138, %1140 : vector<2x32xf32>
    %cst_186 = arith.constant dense<0.000000e+00> : vector<2xf32>
    %1142 = vector.multi_reduction <add>, %1141, %cst_186 [1] : vector<2x32xf32> to vector<2xf32>
    %1143 = vector.shape_cast %1142 : vector<2xf32> to vector<2x1xf32>
    %1144 = vector.extract_strided_slice %3 {offsets = [0, 4], sizes = [2, 1], strides = [1, 1]} : vector<2x6xf32> to vector<2x1xf32>
    %1145 = arith.mulf %1143, %1144 : vector<2x1xf32>
    %cst_187 = arith.constant dense<0.000000e+00> : vector<1xf32>
    %1146 = vector.multi_reduction <add>, %1145, %cst_187 [0] : vector<2x1xf32> to vector<1xf32>
    %1147 = vector.shape_cast %1146 : vector<1xf32> to vector<1x1xf32>
    %1148 = arith.addf %1067, %1147 : vector<1x1xf32>
    %1149 = vector.extract_strided_slice %60 {offsets = [0, 5, 0], sizes = [2, 1, 96], strides = [1, 1, 1]} : vector<2x6x96xf32> to vector<2x1x96xf32>
    %1150 = vector.shape_cast %1149 : vector<2x1x96xf32> to vector<2x96xf32>
    %cst_188 = arith.constant dense<0.000000e+00> : vector<2x96xf32>
    %1151 = tpu.matmul %1098, %18, %cst_188 {dimension_numbers = #tpu.dot_dimension_numbers<[1], [0], [0], [1], [0, 0, 1, 1], [], []>} : vector<2x32xf32>, vector<32x96xf32>, vector<2x96xf32> -> vector<2x96xf32>
    %1152 = vector.broadcast %21 : vector<1x96xf32> to vector<2x96xf32>
    %1153 = arith.addf %1151, %1152 : vector<2x96xf32>
    %1154 = vector.extract_strided_slice %1150 {offsets = [0, 0], sizes = [2, 32], strides = [1, 1]} : vector<2x96xf32> to vector<2x32xf32>
    %1155 = vector.extract_strided_slice %1153 {offsets = [0, 0], sizes = [2, 32], strides = [1, 1]} : vector<2x96xf32> to vector<2x32xf32>
    %1156 = arith.addf %1154, %1155 : vector<2x32xf32>
    %1157 = arith.negf %1156 : vector<2x32xf32>
    %1158 = math.exp %1157 : vector<2x32xf32>
    %cst_189 = arith.constant 1.000000e+00 : f32
    %1159 = vector.broadcast %cst_189 : f32 to vector<2x32xf32>
    %1160 = arith.addf %1159, %1158 : vector<2x32xf32>
    %1161 = arith.divf %1159, %1160 : vector<2x32xf32>
    %1162 = vector.extract_strided_slice %1150 {offsets = [0, 32], sizes = [2, 32], strides = [1, 1]} : vector<2x96xf32> to vector<2x32xf32>
    %1163 = vector.extract_strided_slice %1153 {offsets = [0, 32], sizes = [2, 32], strides = [1, 1]} : vector<2x96xf32> to vector<2x32xf32>
    %1164 = arith.addf %1162, %1163 : vector<2x32xf32>
    %1165 = arith.negf %1164 : vector<2x32xf32>
    %1166 = math.exp %1165 : vector<2x32xf32>
    %cst_190 = arith.constant 1.000000e+00 : f32
    %1167 = vector.broadcast %cst_190 : f32 to vector<2x32xf32>
    %1168 = arith.addf %1167, %1166 : vector<2x32xf32>
    %1169 = arith.divf %1167, %1168 : vector<2x32xf32>
    %1170 = vector.extract_strided_slice %1150 {offsets = [0, 64], sizes = [2, 32], strides = [1, 1]} : vector<2x96xf32> to vector<2x32xf32>
    %1171 = vector.extract_strided_slice %1153 {offsets = [0, 64], sizes = [2, 32], strides = [1, 1]} : vector<2x96xf32> to vector<2x32xf32>
    %1172 = arith.mulf %1161, %1171 : vector<2x32xf32>
    %1173 = arith.addf %1170, %1172 : vector<2x32xf32>
    %1174 = math.tanh %1173 : vector<2x32xf32>
    %cst_191 = arith.constant 1.000000e+00 : f32
    %1175 = vector.broadcast %cst_191 : f32 to vector<2x32xf32>
    %1176 = arith.subf %1175, %1169 : vector<2x32xf32>
    %1177 = arith.mulf %1176, %1174 : vector<2x32xf32>
    %1178 = arith.mulf %1169, %1098 : vector<2x32xf32>
    %1179 = arith.addf %1177, %1178 : vector<2x32xf32>
    %1180 = vector.shape_cast %1179 : vector<2x32xf32> to vector<2x1x32xf32>
    %1181 = vector.broadcast %1180 : vector<2x1x32xf32> to vector<2x8x32xf32>
    %1182 = arith.mulf %1181, %742 : vector<2x8x32xf32>
    %cst_192 = arith.constant dense<0.000000e+00> : vector<2x8xf32>
    %1183 = vector.multi_reduction <add>, %1182, %cst_192 [2] : vector<2x8x32xf32> to vector<2x8xf32>
    %cst_193 = arith.constant 0.000000e+00 : f32
    %1184 = vector.broadcast %cst_193 : f32 to vector<2x8xf32>
    %1185 = arith.cmpf ogt, %2, %1184 : vector<2x8xf32>
    %cst_194 = arith.constant -1.000000e+30 : f32
    %1186 = vector.broadcast %cst_194 : f32 to vector<2x8xf32>
    %1187 = arith.select %1185, %1183, %1186 : vector<2x8xi1>, vector<2x8xf32>
    %cst_195 = arith.constant dense<0xFF800000> : vector<2xf32>
    %1188 = vector.multi_reduction <maximumf>, %1187, %cst_195 [1] : vector<2x8xf32> to vector<2xf32>
    %1189 = vector.shape_cast %1188 : vector<2xf32> to vector<2x1xf32>
    %1190 = vector.broadcast %1189 : vector<2x1xf32> to vector<2x8xf32>
    %1191 = arith.subf %1187, %1190 : vector<2x8xf32>
    %1192 = math.exp %1191 : vector<2x8xf32>
    %1193 = arith.mulf %1192, %2 : vector<2x8xf32>
    %cst_196 = arith.constant dense<0.000000e+00> : vector<2xf32>
    %1194 = vector.multi_reduction <add>, %1193, %cst_196 [1] : vector<2x8xf32> to vector<2xf32>
    %1195 = vector.shape_cast %1194 : vector<2xf32> to vector<2x1xf32>
    %cst_197 = arith.constant 9.99999971E-10 : f32
    %1196 = vector.broadcast %cst_197 : f32 to vector<2x1xf32>
    %1197 = arith.maximumf %1195, %1196 : vector<2x1xf32>
    %1198 = vector.broadcast %1197 : vector<2x1xf32> to vector<2x8xf32>
    %1199 = arith.divf %1193, %1198 : vector<2x8xf32>
    %1200 = vector.shape_cast %1199 : vector<2x8xf32> to vector<2x8x1xf32>
    %1201 = vector.broadcast %1200 : vector<2x8x1xf32> to vector<2x8x64xf32>
    %1202 = arith.mulf %1201, %735 : vector<2x8x64xf32>
    %cst_198 = arith.constant dense<0.000000e+00> : vector<2x64xf32>
    %1203 = vector.multi_reduction <add>, %1202, %cst_198 [1] : vector<2x8x64xf32> to vector<2x64xf32>
    %1204 = tpu.concatenate %1179, %1203 in 1 : vector<2x32xf32>, vector<2x64xf32> -> vector<2x96xf32>
    %cst_199 = arith.constant dense<0.000000e+00> : vector<2x32xf32>
    %1205 = tpu.matmul %1204, %24, %cst_199 {dimension_numbers = #tpu.dot_dimension_numbers<[1], [0], [0], [1], [0, 0, 1, 1], [], []>} : vector<2x96xf32>, vector<96x32xf32>, vector<2x32xf32> -> vector<2x32xf32>
    %1206 = vector.broadcast %25 : vector<1x32xf32> to vector<2x32xf32>
    %1207 = arith.addf %1205, %1206 : vector<2x32xf32>
    %cst_200 = arith.constant dense<0xFF800000> : vector<2xf32>
    %1208 = vector.multi_reduction <maximumf>, %1207, %cst_200 [1] : vector<2x32xf32> to vector<2xf32>
    %1209 = vector.shape_cast %1208 : vector<2xf32> to vector<2x1xf32>
    %1210 = vector.broadcast %1209 : vector<2x1xf32> to vector<2x32xf32>
    %1211 = arith.subf %1207, %1210 : vector<2x32xf32>
    %1212 = math.exp %1211 : vector<2x32xf32>
    %1213 = vector.broadcast %1209 : vector<2x1xf32> to vector<2x32xf32>
    %1214 = arith.subf %1207, %1213 : vector<2x32xf32>
    %cst_201 = arith.constant dense<0.000000e+00> : vector<2xf32>
    %1215 = vector.multi_reduction <add>, %1212, %cst_201 [1] : vector<2x32xf32> to vector<2xf32>
    %1216 = vector.shape_cast %1215 : vector<2xf32> to vector<2x1xf32>
    %1217 = math.log %1216 : vector<2x1xf32>
    %1218 = vector.broadcast %1217 : vector<2x1xf32> to vector<2x32xf32>
    %1219 = arith.subf %1214, %1218 : vector<2x32xf32>
    %1220 = vector.extract_strided_slice %37 {offsets = [0, 5, 0], sizes = [2, 1, 32], strides = [1, 1, 1]} : vector<2x6x32xf32> to vector<2x1x32xf32>
    %1221 = vector.shape_cast %1220 : vector<2x1x32xf32> to vector<2x32xf32>
    %1222 = arith.mulf %1219, %1221 : vector<2x32xf32>
    %cst_202 = arith.constant dense<0.000000e+00> : vector<2xf32>
    %1223 = vector.multi_reduction <add>, %1222, %cst_202 [1] : vector<2x32xf32> to vector<2xf32>
    %1224 = vector.shape_cast %1223 : vector<2xf32> to vector<2x1xf32>
    %1225 = vector.extract_strided_slice %3 {offsets = [0, 5], sizes = [2, 1], strides = [1, 1]} : vector<2x6xf32> to vector<2x1xf32>
    %1226 = arith.mulf %1224, %1225 : vector<2x1xf32>
    %cst_203 = arith.constant dense<0.000000e+00> : vector<1xf32>
    %1227 = vector.multi_reduction <add>, %1226, %cst_203 [0] : vector<2x1xf32> to vector<1xf32>
    %1228 = vector.shape_cast %1227 : vector<1xf32> to vector<1x1xf32>
    %1229 = arith.addf %1148, %1228 : vector<1x1xf32>
    %cst_204 = arith.constant dense<0.000000e+00> : vector<2xf32>
    %1230 = vector.multi_reduction <add>, %3, %cst_204 [1] : vector<2x6xf32> to vector<2xf32>
    %1231 = vector.shape_cast %1230 : vector<2xf32> to vector<2x1xf32>
    %cst_205 = arith.constant dense<0.000000e+00> : vector<1xf32>
    %1232 = vector.multi_reduction <add>, %1231, %cst_205 [0] : vector<2x1xf32> to vector<1xf32>
    %1233 = vector.shape_cast %1232 : vector<1xf32> to vector<1x1xf32>
    %cst_206 = arith.constant 1.000000e+00 : f32
    %1234 = vector.broadcast %cst_206 : f32 to vector<1x1xf32>
    %1235 = arith.maximumf %1233, %1234 : vector<1x1xf32>
    %cst_207 = arith.constant 0.000000e+00 : f32
    %1236 = vector.broadcast %cst_207 : f32 to vector<1x1xf32>
    %1237 = arith.subf %1236, %1229 : vector<1x1xf32>
    %1238 = arith.divf %1237, %1235 : vector<1x1xf32>
    %cst_208 = arith.constant 1.000000e-01 : f32
    %1239 = vector.broadcast %cst_208 : f32 to vector<1x1xf32>
    %1240 = arith.subf %1238, %1239 : vector<1x1xf32>
    %c0_209 = arith.constant 0 : index
    %c0_210 = arith.constant 0 : index
    %1241 = vector.load %arg10[%c0_209, %c0_210] : memref<1x1xf32, #tpu.memory_space<vmem>>, vector<1x1xf32>
    tpu.vector_store %arg10[%c0_209, %c0_210], %1240 {strides = array<i32>} : memref<1x1xf32, #tpu.memory_space<vmem>>, vector<1x1xf32>,
    return
  }
}

</mosaic_0001>

<bundles_post_ra>
// kernel: seq2seq_forward.1
= control target key start
LH: loop header
LB: loop body
LE: loop exit
PB: predicated region body
PF: predicated region fallthrough
CT: control target
= control target key end

     0   :  { %v98_v0 = vlaneseq  ;;  %s9126_s0 = inlined_call_operand.vmem [shape: s32[2,8], index: 0, kind: input, shape index: {}]   ;;  %s9127_s1 = inlined_call_operand.vmem [shape: s32[2,6], index: 1, kind: input, shape index: {}]   ;;  %s9128_s2 = inlined_call_operand.vmem [shape: f32[2,8], index: 2, kind: input, shape index: {}]   ;;  %s9129_s3 = inlined_call_operand.vmem [shape: f32[2,6], index: 3, kind: input, shape index: {}]   ;;  %s9130_s4 = inlined_call_operand.vmem [shape: f32[32,16], index: 4, kind: input, shape index: {}]   ;;  %s9131_s5 = inlined_call_operand.vmem [shape: f32[17,288], index: 5, kind: input, shape index: {}]   ;;  %s9132_s6 = inlined_call_operand.vmem [shape: f32[33,288], index: 6, kind: input, shape index: {}]   ;;  %s9133_s7 = inlined_call_operand.vmem [shape: f32[65,32], index: 7, kind: input, shape index: {}]   ;;  %s9134_s8 = inlined_call_operand.vmem [shape: f32[64,32], index: 8, kind: input, shape index: {}]   ;;  %s9135_s9 = inlined_call_operand.vmem [shape: f32[97,32], index: 9, kind: input, shape index: {}]   ;;  %s9136_s10 = inlined_call_operand.hbm [shape: f32[1,1], index: 10, kind: output, shape index: {}]  }
   0x1   :  { %v40_v1 = vld [vmem:[%s9130_s4] sm:$0xff]  ;;  %v41_v2 = vld [vmem:[%s9130_s4 + $0x8] sm:$0xff]  ;;  %v42_v3 = vld [vmem:[%s9130_s4 + $0x10] sm:$0xff] }
   0x2   :  { %v43_v4 = vld [vmem:[%s9130_s4 + $0x18] sm:$0xff]  ;;  %v7458_v5 = vshrl.u32 %v98_v0, 7  ;;  %v7460_v6 = vpack.c.bf16 %v41_v2, %v40_v1 }
   0x3   :  { %v7462_v7 = vpack.c.bf16 %v43_v4, %v42_v3 }
   0x4   :  { %15 = vsyncpa [#allocation3], 0  ;;  %v37_v8 = vld [vmem:[%s9127_s1] sm:$0x3]  ;;  %v7471_v10 = vsub.s32 0, %v7458_v5  ;;  %v7474_v11 = vsub.s32 1, %v7458_v5  ;;  %6627 = vmatprep.subr.bf16.mxu0 %v7460_v6 }
   0x5   :  { %v36_v9 = vld [vmem:[%s9126_s0] sm:$0x3]  ;;  %6629 = vmatpush3.bf16.msra.mxu0 %v7460_v6  ;;  %v45_v16 = vld [vmem:[%s9131_s5 + $0x8] sm:$0xff]  ;;  %v46_v17 = vld [vmem:[%s9131_s5 + $0x10] sm:$0xff]  ;;  %s7369_s16 = smov 64   ;;  %s7370_s4 = smov 32  }
   0x6   :  { %9146 = vst [vmem:[#allocation5_spill] sm:$0xff] %v7474_v11  ;;  %v123_v12 = vrot.slane %v37_v8, %v7471_v10  ;;  %v103_v13 = vrot.slane %v36_v9, %v7471_v10  ;;  %6631 = vmatprep.subr.bf16.mxu0 %v7462_v7  ;;  %v130_v14 = vrot.slane %v37_v8, %v7474_v11  ;;  %v48_v18 = vld [vmem:[%s9131_s5 + $0x20] sm:$0xff]  ;;  %v49_v20 = vld [vmem:[%s9131_s5 + $0x28] sm:$0xff]  ;;  %v56_v26 = vld [vmem:[%s9132_s6 + $0x18] sm:$0xff]  ;;  %v7371_v40 = vmov 1983009808  }
   0x7   :  { %v110_v15 = vrot.slane %v36_v9, %v7474_v11  ;;  %v6944_v19 = vpack.i.bf16 %v46_v17, %v45_v16  ;;  %v54_v21 = vld [vmem:[%s9132_s6 + $0x8] sm:$0xff]  ;;  %v6949_v22 = vpack.i.bf16 %v49_v20, %v48_v18  ;;  %v53_v23 = vld [vmem:[%s9132_s6] sm:$0xff]  ;;  %v60_v29 = vld [vmem:[%s9132_s6 + $0x38] sm:$0xff]  ;;  %v238_v41 = vunpack.c.l.s4 %v7371_v40  ;;  %s7376_s18 = smov 96   ;;  %s7387_s23 = smov 126  }
   0x8   :  { %125 = vbcast.lane.b32.xlu0 %v123_v12, 256  ;;  %105 = vbcast.lane.b32.xlu1 %v103_v13, 256  ;;  %v57_v24 = vld [vmem:[%s9132_s6 + $0x20] sm:$0xff]  ;;  %v6954_v25 = vpack.i.bf16 %v54_v21, %v53_v23  ;;  %v7511_v28 = vpack.c.bf16 %v56_v26, %v53_v23  ;;  %v59_v30 = vld [vmem:[%s9132_s6 + $0x30] sm:$0xff]  ;;  %v62_v32 = vld [vmem:[%s9132_s6 + $0x48] sm:$0xff]  ;;  %v7545_v42 = vand.u32 127, %v98_v0 }
   0x9   :  { %6633 = vmatpush3.bf16.msra.mxu0 %v7462_v7  ;;  %v6959_v27 = vpack.i.bf16 %v57_v24, %v56_v26  ;;  %v63_v31 = vld [vmem:[%s9132_s6 + $0x50] sm:$0xff]  ;;  %v7525_v33 = vpack.c.bf16 %v62_v32, %v59_v30  ;;  %v6964_v34 = vpack.i.bf16 %v60_v29, %v59_v30  ;;  %v7532_v36 = vld [vmem:[%s9131_s5] sm:$0xff]  ;;  %v7537_v37 = vld [vmem:[%s9131_s5 + $0x18] sm:$0xff]  ;;  %v239_v43 = vunpack.c.0.s8 %v238_v41  ;;  %s7388_s24 = smov 124   ;;  %s7389_s0 = smov 123  }
   0xa   :  { %6635 = vmatprep.subr.bf16.mxu0 %v7460_v6  ;;  %v6969_v35 = vpack.i.bf16 %v63_v31, %v62_v32  ;;  %v6974_v38 = vpack.i.bf16 %v45_v16, %v7532_v36  ;;  %v6979_v39 = vpack.i.bf16 %v48_v18, %v7537_v37  ;;  %9147 = vst [vmem:[#allocation6_spill] sm:$0xff] %v7545_v42  ;;  %vm140_vm0 = vcmp.eq.s32.totalorder %v7545_v42, 1  ;;  %s7390_s1 = smov [#allocation2]  }
   0xb   :  { %vm152_vm1 = vcmask 261120   ;;  %vm149_vm4 = vcmask 1040384   ;;  %v9139_v46 = vmov 0.0   ;;  %v7554_v50 = vsub.s32 %v239_v43, %v7458_v5  ;;  %s5801_s25 = sshll.u32 %s7390_s1, 4  ;;  %s5802_s25 = int_to_ptr.vmem [resolvable:$true] %s5801_s25 }
   0xc   :  { %132 = vbcast.lane.b32.xlu0 %v130_v14, 256  ;;  %112 = vbcast.lane.b32.xlu1 %v110_v15, 256  ;;  %v5813_v49 = vsel %vm140_vm0, 1.0, %v9139_v46  ;;  %vm840_vm5 = vcmask 1041409   ;;  %vm575_vm8 = vcmask 523264   ;;  %vm376_vm9 = vcmask 130048   ;;  %p7350_p1 = scmp.lt.s32.totalorder %s5802_s25, %s5802_s25 }
   0xd   :  { %9148 = vst [vmem:[#allocation7_spill] sm:$0xff] %v7554_v50  ;;  %vm7374_vm10 = vmmov 0   ;;  %vm3453_vm11 = vcmask 1041408   ;;  %vm3456_vm12 = vcmask 1042432   ;;  %vm3459_vm13 = vcmask 1043456   ;;  %s7345_s26 = scalar_lea.vmem %s5802_s25, 16 }
   0xe   :  { %vm3462_vm14 = vcmask 1044480   ;;  %vm3465_vm15 = vcmask 1045504   ;;  %vm3468_vm0 = vcmask 1046528   ;;  %p7346_p0 = scmp.ne.s32.totalorder %s5802_s25, %s7345_s26  ;;  %s7349_s27 = scalar_lea.vmem %s5802_s25, 32 }
   0xf   :  { %p7351_p2 = scmp.lt.s32.totalorder %s7349_s27, %s7345_s26 }
  0x10   :  { %6945 = vrot.lane.b32.xlu0 %v6944_v19, %s7369_s16  ;;  %6950 = vrot.lane.b32.xlu1 %v6949_v22, %s7369_s16 }
  0x11   :  { %p7352_p3 = por %p7351_p2, %p7350_p1 }
  0x13   :  { %p7353_p4 = pnand %p7352_p3, %p7346_p0 }
  0x14   :  { %6955 = vrot.lane.b32.xlu0 %v6954_v25, %s7370_s4  ;;  %6960 = vrot.lane.b32.xlu1 %v6959_v27, %s7370_s4 }
  0x18   :  { %6965 = vrot.lane.b32.xlu0 %v6964_v34, %s7370_s4  ;;  %6970 = vrot.lane.b32.xlu1 %v6969_v35, %s7370_s4 }
  0x1c   :  { %6975 = vrot.lane.b32.xlu0 %v6974_v38, %s7370_s4  ;;  %6980 = vrot.lane.b32.xlu1 %v6979_v39, %s7370_s4 }
  0x7a   :  { %v126_v44 = vpop.permute.xlu0 %125  ;;  %v106_v45 = vpop.permute.xlu1 %105 }
  0x7b   :  { %vm134_vm2 = vcmp.eq.s32.totalorder %v7545_v42, %v126_v44  ;;  %vm114_vm3 = vcmp.eq.s32.totalorder %v7545_v42, %v106_v45 }
  0x7c   :  { %v5811_v47 = vsel %vm134_vm2, 1.0, %v9139_v46  ;;  %v5809_v48 = vsel %vm114_vm3, 1.0, %v9139_v46  ;;  %vm3867_vm3 = vcmask 58368  }
  0x7d   :  { %v145_v51 = vrot.slane %v5811_v47, 7  ;;  %6149 = vmatprep.mubr.msk.f32.mxu0 %vm152_vm1, %v5809_v48  ;;  %v4713_v54 = vrot.slane %v5811_v47, 2  ;;  %v4364_v56 = vrot.slane %v5811_v47, 1  ;;  %v5059_v3 = vrot.slane %v5811_v47, 3 }
  0x7e   :  { %v133_v52 = vpop.permute.xlu0 %132  ;;  %v113_v53 = vpop.permute.xlu1 %112  ;;  %v5409_v13 = vrot.slane %v5811_v47, 4  ;;  %v5755_v21 = vrot.slane %v5811_v47, 5 }
  0x7f   :  { %vm135_vm6 = vcmp.eq.s32.totalorder %v7545_v42, %v133_v52  ;;  %vm115_vm7 = vcmp.eq.s32.totalorder %v7545_v42, %v113_v53  ;;  %v150_v55 = vsel %vm149_vm4, %v5813_v49, %v145_v51  ;;  %v9137_v51 = vmov 0.0|0.0  }
  0x80   :  { %v5812_v57 = vsel %vm135_vm6, 1.0, %v9139_v46  ;;  %v5810_v58 = vsel %vm115_vm7, 1.0, %v9139_v46  ;;  %v236_v59 = vcombine.high %v150_v55, %v150_v55  ;;  %v243_v60 = vrot.slane %v150_v55, %v7554_v50 }
  0x81   :  { %v146_v61 = vrot.slane %v5812_v57, 7  ;;  %6150 = vmatmul.mubr.msk.f32.vlgmr.msra.gmra.mrb[0].mxu0 %vm152_vm1, %v5810_v58  ;;  %v4714_v62 = vrot.slane %v5812_v57, 1  ;;  %v7565_v63 = vsel %vm840_vm5, %v5812_v57, %v4364_v56  ;;  %v5060_v0 = vrot.slane %v5812_v57, 2 }
  0x82   :  { %9149 = vst [vmem:[#allocation8_spill] sm:$0xff] %v7565_v63  ;;  %6637 = vmatpush3.bf16.msra.mxu0 %v7460_v6  ;;  %v251_v1 = vcombine.high %v243_v60, %v243_v60  ;;  %v6946_v2 = vpop.permute.xlu0 %6945  ;;  %v5410_v4 = vrot.slane %v5812_v57, 3  ;;  %v6951_v9 = vpop.permute.xlu1 %6950  ;;  %v5756_v14 = vrot.slane %v5812_v57, 4  ;;  %v250_v15 = vrot.slane %v236_v59, %v7554_v50  ;;  %v7623_v59 = vld [vmem:[%s9131_s5 + $0x30] ss:$0 sm:$0xff] }
  0x83   :  { %6639 = vmatprep.subr.bf16.mxu0 %v7462_v7  ;;  %v151_v8 = vsel %vm149_vm4, %v5813_v49, %v146_v61  ;;  %v7571_v12 = vsel %vm840_vm5, %v4714_v62, %v4713_v54  ;;  %v7576_v18 = vsel %vm840_vm5, %v5060_v0, %v5059_v3  ;;  %v7582_v20 = vsel %vm840_vm5, %v146_v61, %v5811_v47 }
  0x84   :  { %9150 = vst [vmem:[#allocation9_spill] sm:$0xff] %v7571_v12  ;;  %v252_v16 = vcombine.high %v151_v8, %v151_v8  ;;  %v259_v17 = vrot.slane %v151_v8, %v7554_v50  ;;  %v268_v6 = vcombine.low %v243_v60, %v251_v1  ;;  %9151 = vst [vmem:[#allocation10_spill] sm:$0xff] %v7576_v18  ;;  %v6948_v52 = vunpack.i.h.bf16 %v6946_v2  ;;  %v5821_v60 = vld [vmem:[%s9131_s5 + $0x38] ss:$0 sm:$0xff] }
  0x85   :  { %v7579_v19 = vsel %vm840_vm5, %v5410_v4, %v5409_v13  ;;  %9153 = vst [vmem:[#allocation12_spill] sm:$0xff] %v7582_v20  ;;  %v7591_v27 = vsel %vm840_vm5, %v5756_v14, %v5755_v21  ;;  %v6642_v49 = vpack.c.bf16 %v7537_v37, %v7532_v36  ;;  %v6947_v53 = vunpack.i.l.bf16 %v6946_v2  ;;  %v7612_v36 = vld [vmem:[%s9132_s6 + $0x60] ss:$0 sm:$0xff]  ;;  %v5830_v37 = vld [vmem:[%s9132_s6 + $0x68] ss:$0 sm:$0xff] }
  0x86   :  { %9152 = vst [vmem:[#allocation11_spill] sm:$0xff] %v7579_v19  ;;  %6641 = vmatpush3.bf16.msra.mxu0 %v7462_v7  ;;  %v267_v22 = vcombine.high %v259_v17, %v259_v17  ;;  %v269_v23 = vcombine.low %v250_v15, %v259_v17  ;;  %v266_v24 = vrot.slane %v252_v16, %v7554_v50  ;;  %v7586_v25 = vpop.permute.xlu0 %6955  ;;  %v7588_v26 = vpop.permute.xlu1 %6960  ;;  %9154 = vst [vmem:[#allocation13_spill] sm:$0xff] %v7591_v27  ;;  %vm3936_vm6 = vcmask 785408  }
  0x87   :  { %v276_v29 = vrot.slane %v268_v6, %v7554_v50  ;;  %6643 = vmatprep.subr.bf16.mxu0 %v6642_v49  ;;  %v6953_v54 = vunpack.i.h.bf16 %v6951_v9  ;;  %v6952_v55 = vunpack.i.l.bf16 %v6951_v9  ;;  %v576_v56 = vsel %vm575_vm8, %v6947_v53, %v6948_v52  ;;  %892 = vrot.lane.b32.xlu0 %v7612_v36, %s7370_s4 }
  0x88   :  { %v283_v30 = vrot.slane %v269_v23, %v7554_v50  ;;  %v285_v31 = vcombine.low %v267_v22, %v266_v24  ;;  %894 = vrot.lane.b32.xlu1 %v5830_v37, %s7370_s4  ;;  %v6958_v0 = vunpack.i.h.bf16 %v7586_v25  ;;  %v6957_v1 = vunpack.i.l.bf16 %v7586_v25 }
  0x89   :  { %v577_v57 = vsel %vm575_vm8, %v6952_v55, %v6953_v54  ;;  %v6963_v2 = vunpack.i.h.bf16 %v7588_v26  ;;  %v6962_v3 = vunpack.i.l.bf16 %v7588_v26  ;;  %vm4010_vm7 = vcmask 254976  }
  0x8a   :  { %v284_v32 = vcombine.low %v276_v29, %v283_v30  ;;  %v292_v34 = vrot.slane %v285_v31, %v7554_v50  ;;  %v7596_v7 = vpop.permute.xlu0 %6965  ;;  %v7598_v35 = vpop.permute.xlu1 %6970  ;;  %v6650_v58 = vpack.c.bf16 %v577_v57, %v576_v56  ;;  %v882_v4 = vsel %vm152_vm1, %v6957_v1, %v6958_v0 }
  0x8b   :  { %480 = vrot.lane.b32.xlu0 %v7623_v59, %s7370_s4  ;;  %v883_v8 = vsel %vm152_vm1, %v6962_v3, %v6963_v2  ;;  %v6968_v9 = vunpack.i.h.bf16 %v7596_v7  ;;  %v6967_v13 = vunpack.i.l.bf16 %v7596_v7  ;;  %v6973_v14 = vunpack.i.h.bf16 %v7598_v35 }
  0x8c   :  { %6160 = vmatprep.mubr.msk.f32.mxu0 %vm152_vm1, %v284_v32  ;;  %482 = vrot.lane.b32.xlu1 %v5821_v60, %s7370_s4  ;;  %v6972_v15 = vunpack.i.l.bf16 %v7598_v35  ;;  %v7653_v16 = vpack.c.bf16 %v883_v8, %v882_v4 }
  0x8d   :  { %6161 = vmatmul.mubr.msk.f32.vlgmr.msra.gmra.mrb[2].mxu0 %vm152_vm1, %v292_v34  ;;  %v884_v6 = vsel %vm152_vm1, %v6967_v13, %v6968_v9 }
  0x8e   :  { %v6976_v38 = vpop.permute.xlu0 %6975  ;;  %v6981_v41 = vpop.permute.xlu1 %6980  ;;  %6645 = vmatpush3.bf16.msra.mxu0 %v6642_v49  ;;  %v885_v21 = vsel %vm152_vm1, %v6972_v15, %v6973_v14 }
  0x8f   :  { %v6978_v39 = vunpack.i.h.bf16 %v6976_v38  ;;  %v6977_v40 = vunpack.i.l.bf16 %v6976_v38  ;;  %v6983_v43 = vunpack.i.h.bf16 %v6981_v41  ;;  %v6982_v44 = vunpack.i.l.bf16 %v6981_v41  ;;  %6651 = vmatprep.subr.bf16.mxu0 %v6650_v58 }
  0x90   :  { %v7663_v23 = vpack.c.bf16 %v885_v21, %v884_v6 }
  0x91   :  { %v474_v45 = vsel %vm152_vm1, %v6977_v40, %v6978_v39  ;;  %v475_v47 = vsel %vm152_vm1, %v6982_v44, %v6983_v43 }
  0x92   :  { %v6646_v48 = vpack.c.bf16 %v475_v47, %v474_v45 }
  0x94   :  { %6647 = vmatprep.subr.bf16.mxu1 %v6646_v48 }
  0x95   :  { %6649 = vmatpush3.bf16.msra.mxu1 %v6646_v48 }
  0x96   :  { %6654 = vmatprep.subr.bf16.mxu1 %v9137_v51 }
  0xf9   :  { %v893_v7 = vpop.permute.xlu0 %892 }
  0xfa   :  { %v895_v35 = vpop.permute.xlu1 %894 }
  0xfb   :  { %v7685_v38 = vsel %vm152_vm1, %v893_v7, %v895_v35  ;;  %v7375_v35 = vmov 7  }
  0xfc   :  { %6984 = vset.pattern.permute.xlu1 %v7375_v35  ;;  %6985 = vset.pattern.permute.xlu0 %v7375_v35 }
  0xfd   :  { %v481_v48 = vpop.permute.xlu0 %480 }
  0xfe   :  { %v483_v49 = vpop.permute.xlu1 %482 }
  0xff   :  { %v484_v52 = vsel %vm152_vm1, %v481_v48, %v483_v49 }
 0x154   :  { %v6151_v61 = vpop.f32.mrb[0].mxu0 }
 0x155   :  { %v225_v62 = vpop.f32.mrb[1].mxu0 }
 0x156   :  { %6174 = vmatprep.mubr.msk.f32.mxu1 %vm376_vm9, %v225_v62  ;;  %6167 = vmatprep.mubr.msk.f32.mxu0 %vm376_vm9, %v225_v62 }
 0x157   :  { %6175 = vmatmul.mubr.msk.f32.vlgmr.msra.gmra.mrb[0].mxu1 %vm376_vm9, %v6151_v61  ;;  %6168 = vmatmul.mubr.msk.f32.vlgmr.msra.gmra.mrb[4].mxu0 %vm376_vm9, %v6151_v61 }
 0x158   :  { %6656 = vmatpush3.bf16.msra.mxu1 %v7511_v28  ;;  %6192 = vmatprep.mubr.msk.f32.mxu1 %vm7374_vm10, %v9139_v46 }
 0x159   :  { %6657 = vmatprep.subr.bf16.mxu1 %v9137_v51  ;;  %6653 = vmatpush3.bf16.msra.mxu0 %v6650_v58 }
 0x15a   :  { %6660 = vmatprep.subr.bf16.mxu0 %v9137_v51 }
 0x15c   :  { %6659 = vmatpush3.bf16.msra.mxu1 %v7525_v33 }
 0x15d   :  { %6666 = vmatprep.subr.bf16.mxu1 %v9137_v51 }
 0x15f   :  { %6193 = vmatmul.mubr.f32.vlgmr.msra.gmra.mrb[2].mxu1 %v9139_v46 }
 0x160   :  { %v6162_v17 = vpop.f32.mrb[2].mxu0  ;;  %6668 = vmatpush3.bf16.msra.mxu1 %v7511_v28  ;;  %6214 = vmatprep.mubr.msk.f32.mxu1 %vm7374_vm10, %v9139_v46 }
 0x161   :  { %v363_v22 = vpop.f32.mrb[3].mxu0  ;;  %6669 = vmatprep.subr.bf16.mxu1 %v9137_v51 }
 0x162   :  { %6181 = vmatprep.mubr.msk.f32.mxu0 %vm376_vm9, %v363_v22 }
 0x163   :  { %6182 = vmatmul.mubr.msk.f32.vlgmr.msra.gmra.mrb[6].mxu0 %vm376_vm9, %v6162_v17  ;;  %vm5777_vm9 = vcmask 41984  }
 0x164   :  { %6662 = vmatpush3.bf16.msra.mxu0 %v7653_v16  ;;  %6203 = vmatprep.mubr.msk.f32.mxu0 %vm7374_vm10, %v9139_v46 }
 0x165   :  { %6663 = vmatprep.subr.bf16.mxu0 %v9137_v51  ;;  %6671 = vmatpush3.bf16.msra.mxu1 %v7525_v33 }
 0x166   :  { %6678 = vmatprep.subr.bf16.mxu1 %v9137_v51 }
 0x168   :  { %6665 = vmatpush3.bf16.msra.mxu0 %v7663_v23 }
 0x169   :  { %6672 = vmatprep.subr.bf16.mxu0 %v9137_v51 }
 0x16b   :  { %6204 = vmatmul.mubr.f32.vlgmr.msra.gmra.mrb[8].mxu0 %v9139_v46 }
 0x16c   :  { %6674 = vmatpush3.bf16.msra.mxu0 %v7653_v16  ;;  %6225 = vmatprep.mubr.msk.f32.mxu0 %vm7374_vm10, %v9139_v46 }
 0x16d   :  { %6675 = vmatprep.subr.bf16.mxu0 %v9137_v51 }
 0x170   :  { %6677 = vmatpush3.bf16.msra.mxu0 %v7663_v23 }
 0x171   :  { %6684 = vmatprep.subr.bf16.mxu0 %v9137_v51 }
 0x22a   :  { %v6169_v24 = vpop.f32.mrb[4].mxu0  ;;  %v6176_v25 = vpop.f32.mrb[0].mxu1 }
 0x22b   :  { %v449_v26 = vpop.f32.mrb[5].mxu0  ;;  %v552_v29 = vpop.f32.mrb[1].mxu1  ;;  %v7696_v54 = vadd.f32 %v6176_v25, %v484_v52  ;;  %v7704_v58 = vadd.f32 %v6169_v24, %v7623_v59 }
 0x22c   :  { %v7694_v53 = vadd.f32 %v552_v29, %v484_v52  ;;  %v7701_v57 = vadd.f32 %v7623_v59, %v449_v26 }
 0x232   :  { %v774_v30 = vpop.f32.mrb[2].mxu1 }
 0x233   :  { %v6194_v31 = vpop.f32.mrb[3].mxu1  ;;  %v775_v43 = vadd.f32 %v7612_v36, %v774_v30 }
 0x235   :  { %v779_v47 = vrot.slane %v775_v43, 1  ;;  %v782_v37 = vadd.f32 %v775_v43, %v7701_v57 }
 0x236   :  { %v7680_v32 = vpop.f32.mrb[6].mxu0 }
 0x237   :  { %v7682_v34 = vpop.f32.mrb[7].mxu0  ;;  %v783_v62 = vadd.f32 %v779_v47, %v7704_v58  ;;  %v5828_v0 = vmul.f32 -1.442695, %v782_v37 }
 0x238   :  { %9155 = vst [vmem:[#allocation14_spill] sm:$0xff] %v7682_v34 }
 0x239   :  { %v5829_v1 = vmul.f32 -1.442695, %v783_v62 }
 0x23e   :  { %v964_v39 = vpop.f32.mrb[8].mxu0 }
 0x23f   :  { %v965_v40 = vadd.f32 %v964_v39, %v7685_v38  ;;  %v6205_v41 = vpop.f32.mrb[9].mxu0 }
 0x241   :  { %v969_v44 = vrot.slane %v965_v40, 1  ;;  %v970_v45 = vrot.slane %v965_v40, 2 }
 0x243   :  { %989 = vrot.lane.b32.xlu1 %v970_v45, %s7369_s16  ;;  %987 = vrot.lane.b32.xlu0 %v969_v44, %s7369_s16  ;;  %v973_v55 = vadd.f32 %v969_v44, %v7694_v53  ;;  %v974_v56 = vadd.f32 %v970_v45, %v7696_v54 }
 0x245   :  { %v5831_v60 = vmul.f32 -1.442695, %v973_v55  ;;  %v5832_v61 = vmul.f32 -1.442695, %v974_v56  ;;  %v7724_v55 = vld [vmem:[%s9128_s2] sm:$0x3] }
 0x246   :  { %v7729_v37 = vsub.f32 1.0, %v7724_v55 }
 0x247   :  { %796 = vrot.lane.b32.xlu1 %v775_v43, %s7369_s16  ;;  %798 = vrot.lane.b32.xlu0 %v779_v47, %s7369_s16  ;;  %7021 = vpow2.f32 %v5831_v60 }
 0x248   :  { %7023 = vpow2.f32 %v5832_v61  ;;  %v7377_v61 = vmov 0  }
 0x249   :  { %7025 = vpow2.f32 %v5828_v0 }
 0x24a   :  { %7027 = vpow2.f32 %v5829_v1 }
 0x251   :  { %v7022_v2 = vpop.eup %7021 }
 0x252   :  { %v7024_v3 = vpop.eup %7023  ;;  %v981_v4 = vadd.f32 1.0, %v7022_v2 }
 0x253   :  { %v7026_v8 = vpop.eup %7025  ;;  %v982_v9 = vadd.f32 1.0, %v7024_v3 }
 0x254   :  { %v7028_v13 = vpop.eup %7027  ;;  %v790_v59 = vadd.f32 1.0, %v7026_v8  ;;  %7029 = vrcp.f32 %v981_v4 }
 0x255   :  { %7031 = vrcp.f32 %v982_v9  ;;  %v791_v14 = vadd.f32 1.0, %v7028_v13 }
 0x256   :  { %7033 = vrcp.f32 %v790_v59 }
 0x257   :  { %7035 = vrcp.f32 %v791_v14 }
 0x25e   :  { %v7030_v15 = vpop.eup %7029 }
 0x25f   :  { %v7032_v17 = vpop.eup %7031  ;;  %v1007_v1 = vsub.f32 1.0, %v7030_v15  ;;  %v1019_v8 = vmul.f32 0.0, %v7030_v15 }
 0x260   :  { %v7708_v25 = vpop.eup %7033  ;;  %v1008_v62 = vsub.f32 1.0, %v7032_v17  ;;  %v1020_v2 = vmul.f32 0.0, %v7032_v17 }
 0x261   :  { %v7036_v26 = vpop.eup %7035  ;;  %v828_v35 = vmul.f32 0.0, %v7708_v25 }
 0x2b5   :  { %v990_v6 = vpop.permute.xlu1 %989  ;;  %v988_v21 = vpop.permute.xlu0 %987 }
 0x2b6   :  { %v994_v22 = vmul.f32 %v7032_v17, %v990_v6  ;;  %v993_v24 = vmul.f32 %v7030_v15, %v988_v21  ;;  %v829_v17 = vmul.f32 0.0, %v7036_v26  ;;  %v816_v15 = vsub.f32 1.0, %v7708_v25 }
 0x2b8   :  { %999 = vrot.lane.b32.xlu1 %v994_v22, %s7369_s16  ;;  %997 = vrot.lane.b32.xlu0 %v993_v24, %s7369_s16  ;;  %v817_v24 = vsub.f32 1.0, %v7036_v26 }
 0x2b9   :  { %v797_v29 = vpop.permute.xlu1 %796  ;;  %v799_v30 = vpop.permute.xlu0 %798 }
 0x2ba   :  { %v802_v31 = vmul.f32 %v7708_v25, %v797_v29  ;;  %v803_v7 = vmul.f32 %v7036_v26, %v799_v30 }
 0x2bc   :  { %806 = vrot.lane.b32.xlu1 %v802_v31, %s7369_s16  ;;  %808 = vrot.lane.b32.xlu0 %v803_v7, %s7369_s16 }
 0x32a   :  { %v1000_v39 = vpop.permute.xlu1 %999  ;;  %v998_v40 = vpop.permute.xlu0 %997 }
 0x32b   :  { %v1004_v41 = vadd.f32 %v1000_v39, %v7696_v54  ;;  %v1003_v43 = vadd.f32 %v998_v40, %v7694_v53 }
 0x32d   :  { %7037 = vtanh.f32 %v1004_v41 }
 0x32e   :  { %7039 = vtanh.f32 %v1003_v43  ;;  %v807_v44 = vpop.permute.xlu1 %806  ;;  %v809_v45 = vpop.permute.xlu0 %808 }
 0x32f   :  { %v813_v47 = vadd.f32 %v809_v45, %v7704_v58  ;;  %v812_v48 = vadd.f32 %v807_v44, %v7701_v57 }
 0x331   :  { %7041 = vtanh.f32 %v813_v47 }
 0x332   :  { %7043 = vtanh.f32 %v812_v48 }
 0x337   :  { %v7038_v49 = vpop.eup %7037 }
 0x338   :  { %v7040_v52 = vpop.eup %7039  ;;  %1013 = vrot.lane.b32.xlu1 %v7038_v49, %s7376_s18 }
 0x339   :  { %1011 = vrot.lane.b32.xlu0 %v7040_v52, %s7376_s18 }
 0x33b   :  { %v7042_v56 = vpop.eup %7041 }
 0x33c   :  { %1024 = vperm.xlu1 %6984, %v7724_v55   ;;  %v7044_v60 = vpop.eup %7043 }
 0x33d   :  { %822 = vrot.lane.b32.xlu0 %v7042_v56, %s7376_s18 }
 0x340   :  { %820 = vrot.lane.b32.xlu1 %v7044_v60, %s7376_s18 }
 0x341   :  { %1037 = vperm.xlu0 %6985, %v7729_v37   ;;  %6987 = vset.pattern.permute.xlu1 %v7377_v61 }
 0x345   :  { %6986 = vset.pattern.permute.xlu0 %v7377_v61 }
 0x346   :  { %834 = vperm.xlu0 %6986, %v7724_v55  }
 0x3aa   :  { %v1014_v0 = vpop.permute.xlu1 %1013 }
 0x3ab   :  { %v1018_v3 = vmul.f32 %v1014_v0, %v1008_v62  ;;  %v1012_v4 = vpop.permute.xlu0 %1011 }
 0x3ac   :  { %v1017_v9 = vmul.f32 %v1012_v4, %v1007_v1 }
 0x3ad   :  { %v1022_v13 = vadd.f32 %v1020_v2, %v1018_v3 }
 0x3ae   :  { %v1021_v59 = vadd.f32 %v1019_v8, %v1017_v9 }
 0x3af   :  { %v1030_v14 = vrot.slane %v1022_v13, 6  ;;  %v823_v22 = vpop.permute.xlu0 %822 }
 0x3b0   :  { %v1029_v6 = vrot.slane %v1021_v59, 7  ;;  %v827_v29 = vmul.f32 %v823_v22, %v817_v24 }
 0x3b2   :  { %v1031_v21 = vsel %vm840_vm5, %v1030_v14, %v1029_v6  ;;  %v831_v31 = vadd.f32 %v829_v17, %v827_v29 }
 0x3b3   :  { %1032 = vrot.lane.b32.xlu1 %v1031_v21, %s7376_s18 }
 0x3b4   :  { %v839_v40 = vrot.slane %v831_v31, 7 }
 0x3b7   :  { %849 = vperm.xlu1 %6987, %v7729_v37  }
 0x3bb   :  { %v7737_v30 = vpop.permute.xlu1 %1024 }
 0x3bf   :  { %v821_v7 = vpop.permute.xlu1 %820 }
 0x3c0   :  { %v826_v39 = vmul.f32 %v821_v7, %v816_v15  ;;  %v7743_v44 = vpop.permute.xlu0 %1037 }
 0x3c1   :  { %v1040_v45 = vmul.f32 0.0, %v7743_v44 }
 0x3c2   :  { %v830_v41 = vadd.f32 %v828_v35, %v826_v39 }
 0x3c4   :  { %v841_v43 = vsel %vm840_vm5, %v839_v40, %v830_v41 }
 0x3c5   :  { %842 = vrot.lane.b32.xlu1 %v841_v43, %s7376_s18  ;;  %v7759_v49 = vpop.permute.xlu0 %834 }
 0x425   :  { %v1033_v47 = vpop.permute.xlu1 %1032 }
 0x426   :  { %v1035_v26 = vmul.f32 %v1033_v47, %v7737_v30 }
 0x428   :  { %v7747_v48 = vadd.f32 %v1040_v45, %v1035_v26 }
 0x42a   :  { %6226 = vmatmul.mubr.msk.f32.vlgmr.msra.gmra.mrb[10].mxu0 %vm152_vm1, %v7747_v48 }
 0x42b   :  { %6686 = vmatpush3.bf16.msra.mxu0 %v7653_v16  ;;  %6247 = vmatprep.mubr.msk.f32.mxu0 %vm7374_vm10, %v9139_v46 }
 0x42c   :  { %6687 = vmatprep.subr.bf16.mxu0 %v9137_v51 }
 0x42f   :  { %6689 = vmatpush3.bf16.msra.mxu0 %v7663_v23 }
 0x430   :  { %6696 = vmatprep.subr.bf16.mxu0 %v9137_v51 }
 0x436   :  { %v7757_v25 = vpop.permute.xlu1 %849 }
 0x437   :  { %v852_v52 = vmul.f32 0.0, %v7757_v25 }
 0x43a   :  { %v843_v56 = vpop.permute.xlu1 %842 }
 0x43b   :  { %v845_v60 = vmul.f32 %v843_v56, %v7759_v49 }
 0x43d   :  { %v7763_v61 = vadd.f32 %v852_v52, %v845_v60 }
 0x43f   :  { %6215 = vmatmul.mubr.msk.f32.vlgmr.msra.gmra.mrb[4].mxu1 %vm152_vm1, %v7763_v61 }
 0x440   :  { %6680 = vmatpush3.bf16.msra.mxu1 %v7511_v28  ;;  %6236 = vmatprep.mubr.msk.f32.mxu1 %vm7374_vm10, %v9139_v46 }
 0x441   :  { %6681 = vmatprep.subr.bf16.mxu1 %v9137_v51 }
 0x444   :  { %6683 = vmatpush3.bf16.msra.mxu1 %v7525_v33 }
 0x445   :  { %6690 = vmatprep.subr.bf16.mxu1 %v9137_v51 }
 0x4fd   :  { %v1265_v62 = vpop.f32.mrb[10].mxu0 }
 0x4fe   :  { %v1266_v0 = vadd.f32 %v1265_v62, %v7685_v38  ;;  %v6227_v1 = vpop.f32.mrb[11].mxu0  ;;  %v7378_v62 = vmov 6  }
 0x4ff   :  { %6989 = vset.pattern.permute.xlu1 %v7378_v62  ;;  %6988 = vset.pattern.permute.xlu0 %v7378_v62 }
 0x500   :  { %v1270_v2 = vrot.slane %v1266_v0, 2  ;;  %v1271_v3 = vrot.slane %v1266_v0, 3 }
 0x502   :  { %1290 = vrot.lane.b32.xlu1 %v1271_v3, %s7369_s16  ;;  %1288 = vrot.lane.b32.xlu0 %v1270_v2, %s7369_s16  ;;  %v1274_v59 = vadd.f32 %v1270_v2, %v7694_v53  ;;  %v1275_v14 = vadd.f32 %v1271_v3, %v7696_v54 }
 0x504   :  { %v5837_v6 = vmul.f32 -1.442695, %v1274_v59  ;;  %v5838_v21 = vmul.f32 -1.442695, %v1275_v14 }
 0x506   :  { %7045 = vpow2.f32 %v5837_v6 }
 0x507   :  { %7047 = vpow2.f32 %v5838_v21 }
 0x510   :  { %v7046_v22 = vpop.eup %7045 }
 0x511   :  { %v7048_v24 = vpop.eup %7047  ;;  %v1282_v17 = vadd.f32 1.0, %v7046_v22  ;;  %v1321_v22 = vrot.slane %v7747_v48, 3 }
 0x512   :  { %v1113_v4 = vpop.f32.mrb[4].mxu1  ;;  %v1283_v31 = vadd.f32 1.0, %v7048_v24  ;;  %v1320_v24 = vrot.slane %v7747_v48, 2 }
 0x513   :  { %v1114_v8 = vadd.f32 %v7612_v36, %v1113_v4  ;;  %v6216_v9 = vpop.f32.mrb[5].mxu1  ;;  %7049 = vrcp.f32 %v1282_v17 }
 0x514   :  { %7051 = vrcp.f32 %v1283_v31  ;;  %v1167_v31 = vrot.slane %v7763_v61, 7 }
 0x515   :  { %1137 = vrot.lane.b32.xlu1 %v1114_v8, %s7369_s16  ;;  %v1118_v13 = vrot.slane %v1114_v8, 7  ;;  %v1122_v29 = vadd.f32 %v1114_v8, %v7704_v58 }
 0x517   :  { %1135 = vrot.lane.b32.xlu0 %v1118_v13, %s7369_s16  ;;  %v1121_v15 = vadd.f32 %v1118_v13, %v7701_v57  ;;  %v5835_v7 = vmul.f32 -1.442695, %v1122_v29 }
 0x519   :  { %v5834_v35 = vmul.f32 -1.442695, %v1121_v15  ;;  %7053 = vpow2.f32 %v5835_v7 }
 0x51b   :  { %7055 = vpow2.f32 %v5834_v35  ;;  %v7379_v35 = vmov 1  }
 0x51d   :  { %v7783_v39 = vpop.eup %7049 }
 0x51e   :  { %v7785_v40 = vpop.eup %7051 }
 0x523   :  { %v7054_v26 = vpop.eup %7053 }
 0x524   :  { %v1130_v56 = vadd.f32 1.0, %v7054_v26  ;;  %v1309_v26 = vsub.f32 1.0, %v7785_v40 }
 0x525   :  { %v7056_v52 = vpop.eup %7055 }
 0x526   :  { %v1129_v60 = vadd.f32 1.0, %v7056_v52  ;;  %7057 = vrcp.f32 %v1130_v56  ;;  %v1308_v52 = vsub.f32 1.0, %v7783_v39 }
 0x528   :  { %7059 = vrcp.f32 %v1129_v60 }
 0x530   :  { %v7791_v0 = vpop.eup %7057 }
 0x532   :  { %v7060_v3 = vpop.eup %7059 }
 0x574   :  { %v1291_v41 = vpop.permute.xlu1 %1290  ;;  %v1289_v43 = vpop.permute.xlu0 %1288 }
 0x575   :  { %v1295_v45 = vmul.f32 %v7785_v40, %v1291_v41  ;;  %v1294_v47 = vmul.f32 %v7783_v39, %v1289_v43 }
 0x577   :  { %1300 = vrot.lane.b32.xlu1 %v1295_v45, %s7369_s16  ;;  %1298 = vrot.lane.b32.xlu0 %v1294_v47, %s7369_s16 }
 0x587   :  { %v1138_v1 = vpop.permute.xlu1 %1137 }
 0x588   :  { %v1142_v2 = vmul.f32 %v7791_v0, %v1138_v1 }
 0x589   :  { %v1136_v4 = vpop.permute.xlu0 %1135 }
 0x58a   :  { %v1141_v8 = vmul.f32 %v7060_v3, %v1136_v4  ;;  %1147 = vrot.lane.b32.xlu1 %v1142_v2, %s7369_s16 }
 0x58c   :  { %1145 = vrot.lane.b32.xlu0 %v1141_v8, %s7369_s16 }
 0x5e9   :  { %v1301_v9 = vpop.permute.xlu1 %1300  ;;  %v1299_v13 = vpop.permute.xlu0 %1298 }
 0x5ea   :  { %v1305_v59 = vadd.f32 %v1301_v9, %v7696_v54  ;;  %v1304_v14 = vadd.f32 %v1299_v13, %v7694_v53 }
 0x5ec   :  { %7061 = vtanh.f32 %v1305_v59 }
 0x5ed   :  { %7063 = vtanh.f32 %v1304_v14 }
 0x5f6   :  { %v7062_v6 = vpop.eup %7061 }
 0x5f7   :  { %v7064_v21 = vpop.eup %7063  ;;  %1314 = vrot.lane.b32.xlu1 %v7062_v6, %s7376_s18 }
 0x5f8   :  { %1312 = vrot.lane.b32.xlu0 %v7064_v21, %s7376_s18 }
 0x5fb   :  { %1324 = vrot.lane.b32.xlu1 %v1321_v22, %s7370_s4 }
 0x5fc   :  { %1322 = vrot.lane.b32.xlu0 %v1320_v24, %s7370_s4  ;;  %v1148_v29 = vpop.permute.xlu1 %1147  ;;  %v1155_v24 = vsub.f32 1.0, %v7060_v3 }
 0x5fd   :  { %v1152_v17 = vadd.f32 %v1148_v29, %v7704_v58 }
 0x5fe   :  { %v1146_v15 = vpop.permute.xlu0 %1145 }
 0x5ff   :  { %7065 = vtanh.f32 %v1152_v17  ;;  %v1151_v7 = vadd.f32 %v1146_v15, %v7701_v57  ;;  %1168 = vrot.lane.b32.xlu1 %v1167_v31, %s7370_s4  ;;  %v1156_v15 = vsub.f32 1.0, %v7791_v0 }
 0x601   :  { %7067 = vtanh.f32 %v1151_v7 }
 0x603   :  { %1346 = vperm.xlu1 %6989, %v7729_v37  }
 0x607   :  { %6991 = vset.pattern.permute.xlu1 %v7379_v35 }
 0x609   :  { %v7066_v41 = vpop.eup %7065 }
 0x60a   :  { %1161 = vrot.lane.b32.xlu1 %v7066_v41, %s7376_s18 }
 0x60b   :  { %v7068_v43 = vpop.eup %7067 }
 0x60c   :  { %1159 = vrot.lane.b32.xlu0 %v7068_v43, %s7376_s18 }
 0x610   :  { %1333 = vperm.xlu0 %6988, %v7724_v55  }
 0x614   :  { %1170 = vrot.lane.b32.xlu0 %v7763_v61, %s7370_s4 }
 0x615   :  { %6990 = vset.pattern.permute.xlu0 %v7379_v35 }
 0x618   :  { %1179 = vperm.xlu0 %6990, %v7724_v55  }
 0x669   :  { %v1315_v45 = vpop.permute.xlu1 %1314 }
 0x66a   :  { %v1313_v47 = vpop.permute.xlu0 %1312  ;;  %v1319_v60 = vmul.f32 %v1315_v45, %v1309_v26 }
 0x66b   :  { %v1318_v2 = vmul.f32 %v1313_v47, %v1308_v52 }
 0x66d   :  { %v1325_v56 = vpop.permute.xlu1 %1324 }
 0x66e   :  { %v1329_v62 = vmul.f32 %v7785_v40, %v1325_v56  ;;  %v1323_v1 = vpop.permute.xlu0 %1322 }
 0x66f   :  { %v1328_v4 = vmul.f32 %v7783_v39, %v1323_v1 }
 0x670   :  { %v1331_v8 = vadd.f32 %v1329_v62, %v1319_v60 }
 0x671   :  { %v1330_v9 = vadd.f32 %v1328_v4, %v1318_v2  ;;  %v1169_v6 = vpop.permute.xlu1 %1168 }
 0x672   :  { %v1339_v13 = vrot.slane %v1331_v8, 5  ;;  %v1174_v17 = vmul.f32 %v7060_v3, %v1169_v6 }
 0x673   :  { %v1338_v59 = vrot.slane %v1330_v9, 6 }
 0x675   :  { %v1340_v14 = vsel %vm840_vm5, %v1339_v13, %v1338_v59 }
 0x676   :  { %1341 = vrot.lane.b32.xlu1 %v1340_v14, %s7376_s18 }
 0x67a   :  { %1191 = vperm.xlu1 %6991, %v7729_v37  }
 0x67e   :  { %v1160_v21 = vpop.permute.xlu0 %1159 }
 0x67f   :  { %v1165_v40 = vmul.f32 %v1160_v21, %v1155_v24 }
 0x681   :  { %v1176_v31 = vadd.f32 %v1174_v17, %v1165_v40 }
 0x682   :  { %v7822_v22 = vpop.permute.xlu1 %1346 }
 0x683   :  { %v1184_v43 = vrot.slane %v1176_v31, 1  ;;  %v1349_v52 = vmul.f32 %v7822_v22, %v7747_v48 }
 0x686   :  { %v1162_v39 = vpop.permute.xlu1 %1161 }
 0x687   :  { %v1166_v35 = vmul.f32 %v1162_v39, %v1156_v15 }
 0x68f   :  { %v7824_v29 = vpop.permute.xlu0 %1333 }
 0x693   :  { %v1171_v7 = vpop.permute.xlu0 %1170 }
 0x694   :  { %v1175_v41 = vmul.f32 %v7791_v0, %v1171_v7 }
 0x696   :  { %v1177_v45 = vadd.f32 %v1175_v41, %v1166_v35 }
 0x697   :  { %v7845_v60 = vpop.permute.xlu0 %1179 }
 0x698   :  { %v1185_v47 = vsel %vm840_vm5, %v1177_v45, %v1184_v43 }
 0x699   :  { %1186 = vrot.lane.b32.xlu1 %v1185_v47, %s7376_s18 }
 0x6e8   :  { %v1342_v26 = vpop.permute.xlu1 %1341 }
 0x6e9   :  { %v1344_v3 = vmul.f32 %v1342_v26, %v7824_v29 }
 0x6eb   :  { %v7833_v56 = vadd.f32 %v1349_v52, %v1344_v3 }
 0x6ed   :  { %6248 = vmatmul.mubr.msk.f32.vlgmr.msra.gmra.mrb[12].mxu0 %vm152_vm1, %v7833_v56 }
 0x6ee   :  { %6698 = vmatpush3.bf16.msra.mxu0 %v7653_v16  ;;  %6269 = vmatprep.mubr.msk.f32.mxu0 %vm7374_vm10, %v9139_v46 }
 0x6ef   :  { %6699 = vmatprep.subr.bf16.mxu0 %v9137_v51 }
 0x6f2   :  { %6701 = vmatpush3.bf16.msra.mxu0 %v7663_v23 }
 0x6f3   :  { %6708 = vmatprep.subr.bf16.mxu0 %v9137_v51 }
 0x6f9   :  { %v7843_v0 = vpop.permute.xlu1 %1191 }
 0x6fa   :  { %v1194_v1 = vmul.f32 %v7843_v0, %v7763_v61 }
 0x70b   :  { %v1187_v62 = vpop.permute.xlu1 %1186 }
 0x70c   :  { %v1189_v2 = vmul.f32 %v1187_v62, %v7845_v60 }
 0x70e   :  { %v7850_v4 = vadd.f32 %v1194_v1, %v1189_v2 }
 0x710   :  { %6237 = vmatmul.mubr.msk.f32.vlgmr.msra.gmra.mrb[6].mxu1 %vm152_vm1, %v7850_v4 }
 0x711   :  { %6692 = vmatpush3.bf16.msra.mxu1 %v7511_v28  ;;  %6258 = vmatprep.mubr.msk.f32.mxu1 %vm7374_vm10, %v9139_v46 }
 0x712   :  { %6693 = vmatprep.subr.bf16.mxu1 %v9137_v51 }
 0x715   :  { %6695 = vmatpush3.bf16.msra.mxu1 %v7525_v33 }
 0x716   :  { %6702 = vmatprep.subr.bf16.mxu1 %v9137_v51 }
 0x7c0   :  { %v1577_v8 = vpop.f32.mrb[12].mxu0 }
 0x7c1   :  { %v1578_v9 = vadd.f32 %v1577_v8, %v7685_v38  ;;  %v6249_v13 = vpop.f32.mrb[13].mxu0 }
 0x7c3   :  { %v1582_v59 = vrot.slane %v1578_v9, 3  ;;  %v1583_v14 = vrot.slane %v1578_v9, 4 }
 0x7c5   :  { %1602 = vrot.lane.b32.xlu1 %v1583_v14, %s7369_s16  ;;  %1600 = vrot.lane.b32.xlu0 %v1582_v59, %s7369_s16  ;;  %v1586_v39 = vadd.f32 %v1582_v59, %v7694_v53  ;;  %v1587_v31 = vadd.f32 %v1583_v14, %v7696_v54 }
 0x7c7   :  { %v5843_v15 = vmul.f32 -1.442695, %v1586_v39  ;;  %v5844_v7 = vmul.f32 -1.442695, %v1587_v31 }
 0x7c9   :  { %7069 = vpow2.f32 %v5843_v15  ;;  %v7380_v15 = vmov 5  }
 0x7ca   :  { %7071 = vpow2.f32 %v5844_v7  ;;  %6993 = vset.pattern.permute.xlu1 %v7380_v15  ;;  %6992 = vset.pattern.permute.xlu0 %v7380_v15 }
 0x7d3   :  { %v7070_v35 = vpop.eup %7069 }
 0x7d4   :  { %v7072_v41 = vpop.eup %7071  ;;  %v1594_v43 = vadd.f32 1.0, %v7070_v35 }
 0x7d5   :  { %v1595_v45 = vadd.f32 1.0, %v7072_v41 }
 0x7d6   :  { %7073 = vrcp.f32 %v1594_v43 }
 0x7d7   :  { %7075 = vrcp.f32 %v1595_v45 }
 0x7e3   :  { %v1422_v6 = vpop.f32.mrb[6].mxu1 }
 0x7e4   :  { %v1423_v21 = vadd.f32 %v7612_v36, %v1422_v6  ;;  %v6238_v24 = vpop.f32.mrb[7].mxu1  ;;  %v7868_v36 = vpop.eup %7073 }
 0x7e5   :  { %v7871_v26 = vpop.eup %7075 }
 0x7e6   :  { %v1427_v40 = vrot.slane %v1423_v21, 6  ;;  %v1428_v17 = vrot.slane %v1423_v21, 7 }
 0x7e8   :  { %1447 = vrot.lane.b32.xlu1 %v1428_v17, %s7369_s16  ;;  %1445 = vrot.lane.b32.xlu0 %v1427_v40, %s7369_s16  ;;  %v1431_v47 = vadd.f32 %v1427_v40, %v7701_v57  ;;  %v1432_v52 = vadd.f32 %v1428_v17, %v7704_v58 }
 0x7ea   :  { %v5840_v8 = vmul.f32 -1.442695, %v1431_v47  ;;  %v5841_v9 = vmul.f32 -1.442695, %v1432_v52  ;;  %v1633_v52 = vrot.slane %v7833_v56, 4 }
 0x7ec   :  { %7077 = vpow2.f32 %v5840_v8 }
 0x7ed   :  { %7079 = vpow2.f32 %v5841_v9 }
 0x7f6   :  { %v7078_v13 = vpop.eup %7077 }
 0x7f7   :  { %v7080_v59 = vpop.eup %7079  ;;  %v1439_v14 = vadd.f32 1.0, %v7078_v13 }
 0x7f8   :  { %v1440_v6 = vadd.f32 1.0, %v7080_v59  ;;  %v1478_v59 = vrot.slane %v7850_v4, 7 }
 0x7f9   :  { %7081 = vrcp.f32 %v1439_v14  ;;  %v1477_v14 = vrot.slane %v7850_v4, 6 }
 0x7fa   :  { %7083 = vrcp.f32 %v1440_v6  ;;  %v7381_v6 = vmov 2  }
 0x803   :  { %v7878_v21 = vpop.eup %7081 }
 0x804   :  { %v7880_v24 = vpop.eup %7083 }
 0x837   :  { %v1603_v3 = vpop.permute.xlu1 %1602  ;;  %v1601_v62 = vpop.permute.xlu0 %1600 }
 0x838   :  { %v1607_v1 = vmul.f32 %v7871_v26, %v1603_v3  ;;  %v1606_v2 = vmul.f32 %v7868_v36, %v1601_v62  ;;  %v1632_v3 = vrot.slane %v7833_v56, 3 }
 0x83a   :  { %1612 = vrot.lane.b32.xlu1 %v1607_v1, %s7369_s16  ;;  %1610 = vrot.lane.b32.xlu0 %v1606_v2, %s7369_s16 }
 0x85a   :  { %v1448_v40 = vpop.permute.xlu1 %1447  ;;  %v1446_v17 = vpop.permute.xlu0 %1445 }
 0x85b   :  { %v1452_v39 = vmul.f32 %v7880_v24, %v1448_v40  ;;  %v1451_v31 = vmul.f32 %v7878_v21, %v1446_v17 }
 0x85d   :  { %1457 = vrot.lane.b32.xlu1 %v1452_v39, %s7369_s16  ;;  %1455 = vrot.lane.b32.xlu0 %v1451_v31, %s7369_s16  ;;  %v1621_v39 = vsub.f32 1.0, %v7871_v26  ;;  %v1620_v31 = vsub.f32 1.0, %v7868_v36 }
 0x8ac   :  { %v1613_v7 = vpop.permute.xlu1 %1612  ;;  %v1611_v35 = vpop.permute.xlu0 %1610 }
 0x8ad   :  { %v1617_v41 = vadd.f32 %v1613_v7, %v7696_v54  ;;  %v1616_v43 = vadd.f32 %v1611_v35, %v7694_v53 }
 0x8af   :  { %7085 = vtanh.f32 %v1617_v41 }
 0x8b0   :  { %7087 = vtanh.f32 %v1616_v43 }
 0x8b9   :  { %v7086_v45 = vpop.eup %7085 }
 0x8ba   :  { %v7088_v47 = vpop.eup %7087  ;;  %1626 = vrot.lane.b32.xlu1 %v7086_v45, %s7376_s18 }
 0x8bb   :  { %1624 = vrot.lane.b32.xlu0 %v7088_v47, %s7376_s18 }
 0x8be   :  { %1636 = vrot.lane.b32.xlu1 %v1633_v52, %s7370_s4 }
 0x8bf   :  { %1634 = vrot.lane.b32.xlu0 %v1632_v3, %s7370_s4 }
 0x8cf   :  { %v1458_v62 = vpop.permute.xlu1 %1457  ;;  %v1456_v1 = vpop.permute.xlu0 %1455 }
 0x8d0   :  { %v1462_v2 = vadd.f32 %v1458_v62, %v7704_v58  ;;  %v1461_v8 = vadd.f32 %v1456_v1, %v7701_v57 }
 0x8d2   :  { %7089 = vtanh.f32 %v1462_v2 }
 0x8d3   :  { %7091 = vtanh.f32 %v1461_v8 }
 0x8dc   :  { %v7090_v9 = vpop.eup %7089 }
 0x8dd   :  { %v7092_v13 = vpop.eup %7091  ;;  %1471 = vrot.lane.b32.xlu1 %v7090_v9, %s7376_s18  ;;  %v1466_v9 = vsub.f32 1.0, %v7880_v24 }
 0x8de   :  { %1469 = vrot.lane.b32.xlu0 %v7092_v13, %s7376_s18 }
 0x8e1   :  { %1481 = vrot.lane.b32.xlu1 %v1478_v59, %s7370_s4 }
 0x8e2   :  { %1479 = vrot.lane.b32.xlu0 %v1477_v14, %s7370_s4 }
 0x8e5   :  { %1658 = vperm.xlu1 %6993, %v7729_v37  }
 0x8e6   :  { %1645 = vperm.xlu0 %6992, %v7724_v55  }
 0x8e9   :  { %6995 = vset.pattern.permute.xlu1 %v7381_v6 }
 0x8ea   :  { %6994 = vset.pattern.permute.xlu0 %v7381_v6 }
 0x8eb   :  { %1490 = vperm.xlu0 %6994, %v7724_v55  }
 0x92c   :  { %v1627_v40 = vpop.permute.xlu1 %1626 }
 0x92d   :  { %v1625_v17 = vpop.permute.xlu0 %1624  ;;  %v1631_v7 = vmul.f32 %v1627_v40, %v1621_v39 }
 0x92e   :  { %v1630_v43 = vmul.f32 %v1625_v17, %v1620_v31 }
 0x930   :  { %v1637_v15 = vpop.permute.xlu1 %1636 }
 0x931   :  { %v1641_v35 = vmul.f32 %v7871_v26, %v1637_v15  ;;  %v1635_v41 = vpop.permute.xlu0 %1634  ;;  %v1465_v26 = vsub.f32 1.0, %v7878_v21 }
 0x932   :  { %v1640_v45 = vmul.f32 %v7868_v36, %v1635_v41 }
 0x933   :  { %v1643_v47 = vadd.f32 %v1641_v35, %v1631_v7 }
 0x934   :  { %v1642_v52 = vadd.f32 %v1640_v45, %v1630_v43 }
 0x935   :  { %v1651_v3 = vrot.slane %v1643_v47, 4 }
 0x936   :  { %v1650_v62 = vrot.slane %v1642_v52, 5 }
 0x938   :  { %v1652_v1 = vsel %vm840_vm5, %v1651_v3, %v1650_v62 }
 0x939   :  { %1653 = vrot.lane.b32.xlu1 %v1652_v1, %s7376_s18 }
 0x93d   :  { %1503 = vperm.xlu1 %6995, %v7729_v37  }
 0x94f   :  { %v1472_v2 = vpop.permute.xlu1 %1471 }
 0x950   :  { %v1470_v8 = vpop.permute.xlu0 %1469  ;;  %v1476_v59 = vmul.f32 %v1472_v2, %v1466_v9 }
 0x951   :  { %v1475_v6 = vmul.f32 %v1470_v8, %v1465_v26 }
 0x953   :  { %v1482_v13 = vpop.permute.xlu1 %1481 }
 0x954   :  { %v1486_v36 = vmul.f32 %v7880_v24, %v1482_v13  ;;  %v1480_v14 = vpop.permute.xlu0 %1479 }
 0x955   :  { %v1485_v40 = vmul.f32 %v7878_v21, %v1480_v14  ;;  %v7958_v14 = vld [vmem:[%s9132_s6 + $0x60] ss:$0 sm:$0xff] }
 0x956   :  { %v1488_v17 = vadd.f32 %v1486_v36, %v1476_v59 }
 0x957   :  { %v1487_v39 = vadd.f32 %v1485_v40, %v1475_v6 }
 0x958   :  { %v1496_v31 = vrot.slane %v1488_v17, 1 }
 0x959   :  { %v1495_v15 = vrot.slane %v1487_v39, 2 }
 0x95b   :  { %v1497_v7 = vsel %vm840_vm5, %v1496_v31, %v1495_v15 }
 0x95c   :  { %1498 = vrot.lane.b32.xlu1 %v1497_v7, %s7376_s18 }
 0x964   :  { %v7918_v35 = vpop.permute.xlu1 %1658 }
 0x965   :  { %v7920_v41 = vpop.permute.xlu0 %1645  ;;  %v1661_v24 = vmul.f32 %v7918_v35, %v7833_v56 }
 0x96a   :  { %v7937_v52 = vpop.permute.xlu0 %1490 }
 0x9ab   :  { %v1654_v43 = vpop.permute.xlu1 %1653 }
 0x9ac   :  { %v1656_v45 = vmul.f32 %v1654_v43, %v7920_v41 }
 0x9ae   :  { %v7925_v47 = vadd.f32 %v1661_v24, %v1656_v45 }
 0x9b0   :  { %6270 = vmatmul.mubr.msk.f32.vlgmr.msra.gmra.mrb[14].mxu0 %vm152_vm1, %v7925_v47 }
 0x9b1   :  { %6710 = vmatpush3.bf16.msra.mxu0 %v7653_v16  ;;  %6291 = vmatprep.mubr.msk.f32.mxu0 %vm7374_vm10, %v9139_v46 }
 0x9b2   :  { %6711 = vmatprep.subr.bf16.mxu0 %v9137_v51 }
 0x9b5   :  { %6713 = vmatpush3.bf16.msra.mxu0 %v7663_v23 }
 0x9b6   :  { %6720 = vmatprep.subr.bf16.mxu0 %v9137_v51 }
 0x9bc   :  { %v7935_v21 = vpop.permute.xlu1 %1503 }
 0x9bd   :  { %v1506_v62 = vmul.f32 %v7935_v21, %v7850_v4 }
 0x9ce   :  { %v1499_v3 = vpop.permute.xlu1 %1498 }
 0x9cf   :  { %v1501_v1 = vmul.f32 %v1499_v3, %v7937_v52 }
 0x9d1   :  { %v7942_v2 = vadd.f32 %v1506_v62, %v1501_v1 }
 0x9d3   :  { %6259 = vmatmul.mubr.msk.f32.vlgmr.msra.gmra.mrb[8].mxu1 %vm152_vm1, %v7942_v2 }
 0x9d4   :  { %6704 = vmatpush3.bf16.msra.mxu1 %v7511_v28  ;;  %6280 = vmatprep.mubr.msk.f32.mxu1 %vm7374_vm10, %v9139_v46 }
 0x9d5   :  { %6705 = vmatprep.subr.bf16.mxu1 %v9137_v51 }
 0x9d8   :  { %6707 = vmatpush3.bf16.msra.mxu1 %v7525_v33 }
 0x9d9   :  { %6714 = vmatprep.subr.bf16.mxu1 %v9137_v51 }
 0xa83   :  { %v1889_v8 = vpop.f32.mrb[14].mxu0 }
 0xa84   :  { %v1890_v9 = vadd.f32 %v1889_v8, %v7685_v38  ;;  %v6271_v26 = vpop.f32.mrb[15].mxu0 }
 0xa86   :  { %v1894_v13 = vrot.slane %v1890_v9, 4  ;;  %v1895_v59 = vrot.slane %v1890_v9, 5 }
 0xa88   :  { %1914 = vrot.lane.b32.xlu1 %v1895_v59, %s7369_s16  ;;  %1912 = vrot.lane.b32.xlu0 %v1894_v13, %s7369_s16  ;;  %v1898_v31 = vadd.f32 %v1894_v13, %v7694_v53  ;;  %v1899_v15 = vadd.f32 %v1895_v59, %v7696_v54 }
 0xa8a   :  { %v5849_v7 = vmul.f32 -1.442695, %v1898_v31  ;;  %v5850_v43 = vmul.f32 -1.442695, %v1899_v15 }
 0xa8c   :  { %7093 = vpow2.f32 %v5849_v7 }
 0xa8d   :  { %7095 = vpow2.f32 %v5850_v43 }
 0xa96   :  { %v7094_v24 = vpop.eup %7093 }
 0xa97   :  { %v7096_v45 = vpop.eup %7095  ;;  %v1906_v3 = vadd.f32 1.0, %v7094_v24 }
 0xa98   :  { %v1907_v62 = vadd.f32 1.0, %v7096_v45 }
 0xa99   :  { %7097 = vrcp.f32 %v1906_v3 }
 0xa9a   :  { %7099 = vrcp.f32 %v1907_v62 }
 0xaa3   :  { %v7965_v1 = vpop.eup %7097 }
 0xaa4   :  { %v7968_v9 = vpop.eup %7099 }
 0xaa6   :  { %v1734_v36 = vpop.f32.mrb[8].mxu1 }
 0xaa7   :  { %v1735_v6 = vadd.f32 %v7958_v14, %v1734_v36  ;;  %v6260_v40 = vpop.f32.mrb[9].mxu1 }
 0xaa9   :  { %v1739_v17 = vrot.slane %v1735_v6, 5  ;;  %v1740_v39 = vrot.slane %v1735_v6, 6 }
 0xaab   :  { %1759 = vrot.lane.b32.xlu1 %v1740_v39, %s7369_s16  ;;  %1757 = vrot.lane.b32.xlu0 %v1739_v17, %s7369_s16  ;;  %v1743_v8 = vadd.f32 %v1739_v17, %v7701_v57  ;;  %v1744_v26 = vadd.f32 %v1740_v39, %v7704_v58 }
 0xaad   :  { %v5846_v40 = vmul.f32 -1.442695, %v1743_v8  ;;  %v5847_v31 = vmul.f32 -1.442695, %v1744_v26  ;;  %v7382_v26 = vmov 4  }
 0xaae   :  { %6997 = vset.pattern.permute.xlu1 %v7382_v26  ;;  %6996 = vset.pattern.permute.xlu0 %v7382_v26 }
 0xaaf   :  { %7101 = vpow2.f32 %v5846_v40 }
 0xab0   :  { %7103 = vpow2.f32 %v5847_v31 }
 0xab9   :  { %v7102_v15 = vpop.eup %7101 }
 0xaba   :  { %v7104_v17 = vpop.eup %7103  ;;  %v1751_v7 = vadd.f32 1.0, %v7102_v15  ;;  %v1945_v15 = vrot.slane %v7925_v47, 5 }
 0xabb   :  { %v1752_v43 = vadd.f32 1.0, %v7104_v17  ;;  %v1944_v17 = vrot.slane %v7925_v47, 4 }
 0xabc   :  { %7105 = vrcp.f32 %v1751_v7 }
 0xabd   :  { %7107 = vrcp.f32 %v1752_v43 }
 0xac6   :  { %v7975_v39 = vpop.eup %7105 }
 0xac7   :  { %v7977_v24 = vpop.eup %7107 }
 0xafa   :  { %v1915_v13 = vpop.permute.xlu1 %1914  ;;  %v1913_v59 = vpop.permute.xlu0 %1912 }
 0xafb   :  { %v1919_v36 = vmul.f32 %v7968_v9, %v1915_v13  ;;  %v1918_v6 = vmul.f32 %v7965_v1, %v1913_v59 }
 0xafd   :  { %1924 = vrot.lane.b32.xlu1 %v1919_v36, %s7369_s16  ;;  %1922 = vrot.lane.b32.xlu0 %v1918_v6, %s7369_s16 }
 0xb1d   :  { %v1760_v45 = vpop.permute.xlu1 %1759  ;;  %v1758_v3 = vpop.permute.xlu0 %1757 }
 0xb1e   :  { %v1764_v62 = vmul.f32 %v7977_v24, %v1760_v45  ;;  %v1763_v8 = vmul.f32 %v7975_v39, %v1758_v3 }
 0xb20   :  { %1769 = vrot.lane.b32.xlu1 %v1764_v62, %s7369_s16  ;;  %1767 = vrot.lane.b32.xlu0 %v1763_v8, %s7369_s16 }
 0xb6f   :  { %v1925_v13 = vpop.permute.xlu1 %1924  ;;  %v1923_v59 = vpop.permute.xlu0 %1922 }
 0xb70   :  { %v1929_v36 = vadd.f32 %v1925_v13, %v7696_v54  ;;  %v1928_v6 = vadd.f32 %v1923_v59, %v7694_v53  ;;  %v1790_v13 = vrot.slane %v7942_v2, 6  ;;  %v1789_v59 = vrot.slane %v7942_v2, 5 }
 0xb72   :  { %7109 = vtanh.f32 %v1929_v36  ;;  %v7383_v36 = vmov 3  }
 0xb73   :  { %7111 = vtanh.f32 %v1928_v6 }
 0xb7c   :  { %v7110_v40 = vpop.eup %7109 }
 0xb7d   :  { %v7112_v31 = vpop.eup %7111  ;;  %1938 = vrot.lane.b32.xlu1 %v7110_v40, %s7376_s18 }
 0xb7e   :  { %1936 = vrot.lane.b32.xlu0 %v7112_v31, %s7376_s18  ;;  %v1933_v31 = vsub.f32 1.0, %v7968_v9 }
 0xb81   :  { %1948 = vrot.lane.b32.xlu1 %v1945_v15, %s7370_s4  ;;  %v1932_v15 = vsub.f32 1.0, %v7965_v1 }
 0xb82   :  { %1946 = vrot.lane.b32.xlu0 %v1944_v17, %s7370_s4 }
 0xb92   :  { %v1770_v7 = vpop.permute.xlu1 %1769  ;;  %v1768_v43 = vpop.permute.xlu0 %1767 }
 0xb93   :  { %v1774_v45 = vadd.f32 %v1770_v7, %v7704_v58  ;;  %v1773_v3 = vadd.f32 %v1768_v43, %v7701_v57 }
 0xb95   :  { %7113 = vtanh.f32 %v1774_v45 }
 0xb96   :  { %7115 = vtanh.f32 %v1773_v3 }
 0xb9f   :  { %v7114_v62 = vpop.eup %7113 }
 0xba0   :  { %v7116_v8 = vpop.eup %7115  ;;  %1783 = vrot.lane.b32.xlu1 %v7114_v62, %s7376_s18 }
 0xba1   :  { %1781 = vrot.lane.b32.xlu0 %v7116_v8, %s7376_s18 }
 0xba4   :  { %1793 = vrot.lane.b32.xlu1 %v1790_v13, %s7370_s4 }
 0xba5   :  { %1791 = vrot.lane.b32.xlu0 %v1789_v59, %s7370_s4 }
 0xba8   :  { %1970 = vperm.xlu1 %6997, %v7729_v37  }
 0xba9   :  { %1957 = vperm.xlu0 %6996, %v7724_v55  }
 0xbac   :  { %6999 = vset.pattern.permute.xlu1 %v7383_v36 }
 0xbad   :  { %6998 = vset.pattern.permute.xlu0 %v7383_v36 }
 0xbae   :  { %1802 = vperm.xlu0 %6998, %v7724_v55  }
 0xbb2   :  { %7020 = vset.pattern.permute.xlu0 %v7382_v26 }
 0xbef   :  { %v1939_v6 = vpop.permute.xlu1 %1938 }
 0xbf0   :  { %v1937_v40 = vpop.permute.xlu0 %1936  ;;  %v1943_v7 = vmul.f32 %v1939_v6, %v1933_v31  ;;  %v1778_v6 = vsub.f32 1.0, %v7977_v24 }
 0xbf1   :  { %v1942_v3 = vmul.f32 %v1937_v40, %v1932_v15 }
 0xbf3   :  { %v1949_v17 = vpop.permute.xlu1 %1948 }
 0xbf4   :  { %v1953_v43 = vmul.f32 %v7968_v9, %v1949_v17  ;;  %v1947_v45 = vpop.permute.xlu0 %1946  ;;  %v1777_v9 = vsub.f32 1.0, %v7975_v39 }
 0xbf5   :  { %v1952_v62 = vmul.f32 %v7965_v1, %v1947_v45 }
 0xbf6   :  { %v1955_v8 = vadd.f32 %v1953_v43, %v1943_v7 }
 0xbf7   :  { %v1954_v13 = vadd.f32 %v1952_v62, %v1942_v3 }
 0xbf8   :  { %v1963_v59 = vrot.slane %v1955_v8, 3 }
 0xbf9   :  { %v1962_v36 = vrot.slane %v1954_v13, 4 }
 0xbfb   :  { %v1964_v55 = vsel %vm840_vm5, %v1963_v59, %v1962_v36 }
 0xbfc   :  { %1965 = vrot.lane.b32.xlu1 %v1964_v55, %s7376_s18 }
 0xc00   :  { %1815 = vperm.xlu1 %6999, %v7729_v37  }
 0xc12   :  { %v1784_v26 = vpop.permute.xlu1 %1783 }
 0xc13   :  { %v1782_v51 = vpop.permute.xlu0 %1781  ;;  %v1788_v40 = vmul.f32 %v1784_v26, %v1778_v6 }
 0xc14   :  { %v1787_v17 = vmul.f32 %v1782_v51, %v1777_v9 }
 0xc16   :  { %v1794_v31 = vpop.permute.xlu1 %1793 }
 0xc17   :  { %v1798_v1 = vmul.f32 %v7977_v24, %v1794_v31  ;;  %v1792_v15 = vpop.permute.xlu0 %1791 }
 0xc18   :  { %v1797_v7 = vmul.f32 %v7975_v39, %v1792_v15  ;;  %v9156_v39 = vmov 0.0|0.0  }
 0xc19   :  { %v1800_v43 = vadd.f32 %v1798_v1, %v1788_v40 }
 0xc1a   :  { %v1799_v45 = vadd.f32 %v1797_v7, %v1787_v17 }
 0xc1b   :  { %v1808_v3 = vrot.slane %v1800_v43, 2 }
 0xc1c   :  { %v1807_v62 = vrot.slane %v1799_v45, 3 }
 0xc1e   :  { %v1809_v37 = vsel %vm840_vm5, %v1808_v3, %v1807_v62 }
 0xc1f   :  { %1810 = vrot.lane.b32.xlu1 %v1809_v37, %s7376_s18 }
 0xc27   :  { %v8015_v8 = vpop.permute.xlu1 %1970 }
 0xc28   :  { %v8017_v13 = vpop.permute.xlu0 %1957  ;;  %v1973_v24 = vmul.f32 %v8015_v8, %v7925_v47 }
 0xc2d   :  { %v8034_v26 = vpop.permute.xlu0 %1802 }
 0xc6e   :  { %v1966_v59 = vpop.permute.xlu1 %1965 }
 0xc6f   :  { %v1968_v51 = vmul.f32 %v1966_v59, %v8017_v13 }
 0xc71   :  { %v8022_v36 = vadd.f32 %v1973_v24, %v1968_v51 }
 0xc73   :  { %6292 = vmatmul.mubr.msk.f32.vlgmr.msra.gmra.mrb[16].mxu0 %vm152_vm1, %v8022_v36 }
 0xc74   :  { %6722 = vmatpush3.bf16.msra.mxu0 %v7653_v16  ;;  %6313 = vmatprep.mubr.msk.f32.mxu0 %vm7374_vm10, %v9139_v46 }
 0xc75   :  { %6723 = vmatprep.subr.bf16.mxu0 %v9156_v39 }
 0xc78   :  { %6725 = vmatpush3.bf16.msra.mxu0 %v7663_v23 }
 0xc79   :  { %6732 = vmatprep.subr.bf16.mxu0 %v9156_v39 }
 0xc7f   :  { %v8032_v55 = vpop.permute.xlu1 %1815 }
 0xc80   :  { %v1818_v9 = vmul.f32 %v8032_v55, %v7942_v2 }
 0xc91   :  { %v1811_v6 = vpop.permute.xlu1 %1810 }
 0xc92   :  { %v1813_v31 = vmul.f32 %v1811_v6, %v8034_v26 }
 0xc94   :  { %v8039_v40 = vadd.f32 %v1818_v9, %v1813_v31 }
 0xc96   :  { %6281 = vmatmul.mubr.msk.f32.vlgmr.msra.gmra.mrb[10].mxu1 %vm152_vm1, %v8039_v40 }
 0xc97   :  { %6716 = vmatpush3.bf16.msra.mxu1 %v7511_v28  ;;  %6302 = vmatprep.mubr.msk.f32.mxu1 %vm7374_vm10, %v9139_v46 }
 0xc98   :  { %6717 = vmatprep.subr.bf16.mxu1 %v9156_v39 }
 0xc9b   :  { %6719 = vmatpush3.bf16.msra.mxu1 %v7525_v33 }
 0xc9c   :  { %6726 = vmatprep.subr.bf16.mxu1 %v9156_v39 }
 0xd46   :  { %v2193_v1 = vpop.f32.mrb[16].mxu0 }
 0xd47   :  { %v2194_v15 = vadd.f32 %v2193_v1, %v7685_v38  ;;  %v6293_v17 = vpop.f32.mrb[17].mxu0 }
 0xd49   :  { %v2198_v7 = vrot.slane %v2194_v15, 5  ;;  %v2199_v43 = vrot.slane %v2194_v15, 6 }
 0xd4b   :  { %2218 = vrot.lane.b32.xlu1 %v2199_v43, %s7369_s16  ;;  %2216 = vrot.lane.b32.xlu0 %v2198_v7, %s7369_s16  ;;  %v2202_v24 = vadd.f32 %v2198_v7, %v7694_v53  ;;  %v2203_v51 = vadd.f32 %v2199_v43, %v7696_v54 }
 0xd4d   :  { %v5855_v6 = vmul.f32 -1.442695, %v2202_v24  ;;  %v5856_v9 = vmul.f32 -1.442695, %v2203_v51 }
 0xd4f   :  { %7117 = vpow2.f32 %v5855_v6 }
 0xd50   :  { %7119 = vpow2.f32 %v5856_v9 }
 0xd59   :  { %v7118_v31 = vpop.eup %7117 }
 0xd5a   :  { %v7120_v1 = vpop.eup %7119  ;;  %v2210_v15 = vadd.f32 1.0, %v7118_v31 }
 0xd5b   :  { %v2211_v17 = vadd.f32 1.0, %v7120_v1 }
 0xd5c   :  { %7121 = vrcp.f32 %v2210_v15 }
 0xd5d   :  { %7123 = vrcp.f32 %v2211_v17 }
 0xd69   :  { %v2046_v45 = vpop.f32.mrb[10].mxu1 }
 0xd6a   :  { %v2047_v3 = vadd.f32 %v7958_v14, %v2046_v45  ;;  %v6282_v62 = vpop.f32.mrb[11].mxu1  ;;  %v8057_v45 = vpop.eup %7121 }
 0xd6b   :  { %v7124_v62 = vpop.eup %7123 }
 0xd6c   :  { %v2051_v37 = vrot.slane %v2047_v3, 4  ;;  %v2052_v59 = vrot.slane %v2047_v3, 5 }
 0xd6e   :  { %2071 = vrot.lane.b32.xlu1 %v2052_v59, %s7369_s16  ;;  %2069 = vrot.lane.b32.xlu0 %v2051_v37, %s7369_s16  ;;  %v2055_v3 = vadd.f32 %v2051_v37, %v7701_v57  ;;  %v2056_v46 = vadd.f32 %v2052_v59, %v7704_v58 }
 0xd70   :  { %v5852_v51 = vmul.f32 -1.442695, %v2055_v3  ;;  %v5853_v6 = vmul.f32 -1.442695, %v2056_v46 }
 0xd72   :  { %7125 = vpow2.f32 %v5852_v51 }
 0xd73   :  { %7127 = vpow2.f32 %v5853_v6 }
 0xd7c   :  { %v7126_v9 = vpop.eup %7125 }
 0xd7d   :  { %v7128_v31 = vpop.eup %7127  ;;  %v2063_v1 = vadd.f32 1.0, %v7126_v9  ;;  %v2249_v9 = vrot.slane %v8022_v36, 6 }
 0xd7e   :  { %v2064_v37 = vadd.f32 1.0, %v7128_v31 }
 0xd7f   :  { %7129 = vrcp.f32 %v2063_v1 }
 0xd80   :  { %7131 = vrcp.f32 %v2064_v37 }
 0xd89   :  { %v7130_v59 = vpop.eup %7129 }
 0xd8a   :  { %v7132_v15 = vpop.eup %7131  ;;  %v2089_v11 = vsub.f32 1.0, %v7130_v59 }
 0xd8b   :  { %v2090_v12 = vsub.f32 1.0, %v7132_v15 }
 0xdbd   :  { %v2219_v7 = vpop.permute.xlu1 %2218  ;;  %v2217_v27 = vpop.permute.xlu0 %2216 }
 0xdbe   :  { %v2223_v43 = vmul.f32 %v7124_v62, %v2219_v7  ;;  %v2222_v24 = vmul.f32 %v8057_v45, %v2217_v27 }
 0xdc0   :  { %2228 = vrot.lane.b32.xlu1 %v2223_v43, %s7369_s16  ;;  %2226 = vrot.lane.b32.xlu0 %v2222_v24, %s7369_s16 }
 0xde0   :  { %v2072_v17 = vpop.permute.xlu1 %2071  ;;  %v2070_v7 = vpop.permute.xlu0 %2069 }
 0xde1   :  { %v2076_v20 = vmul.f32 %v7132_v15, %v2072_v17  ;;  %v2075_v27 = vmul.f32 %v7130_v59, %v2070_v7 }
 0xde3   :  { %2081 = vrot.lane.b32.xlu1 %v2076_v20, %s7369_s16  ;;  %2079 = vrot.lane.b32.xlu0 %v2075_v27, %s7369_s16  ;;  %v2248_v20 = vrot.slane %v8022_v36, 5 }
 0xe32   :  { %v2229_v3 = vpop.permute.xlu1 %2228  ;;  %v2227_v46 = vpop.permute.xlu0 %2226 }
 0xe33   :  { %v2233_v43 = vadd.f32 %v2229_v3, %v7696_v54  ;;  %v2232_v24 = vadd.f32 %v2227_v46, %v7694_v53  ;;  %v2102_v3 = vrot.slane %v8039_v40, 5  ;;  %v2101_v46 = vrot.slane %v8039_v40, 4 }
 0xe35   :  { %7133 = vtanh.f32 %v2233_v43 }
 0xe36   :  { %7135 = vtanh.f32 %v2232_v24 }
 0xe3f   :  { %v7134_v51 = vpop.eup %7133 }
 0xe40   :  { %v7136_v6 = vpop.eup %7135  ;;  %2242 = vrot.lane.b32.xlu1 %v7134_v51, %s7376_s18  ;;  %v2237_v51 = vsub.f32 1.0, %v7124_v62 }
 0xe41   :  { %2240 = vrot.lane.b32.xlu0 %v7136_v6, %s7376_s18  ;;  %v2236_v6 = vsub.f32 1.0, %v8057_v45 }
 0xe44   :  { %2252 = vrot.lane.b32.xlu1 %v2249_v9, %s7370_s4 }
 0xe45   :  { %2250 = vrot.lane.b32.xlu0 %v2248_v20, %s7370_s4 }
 0xe55   :  { %v2082_v31 = vpop.permute.xlu1 %2081  ;;  %v2080_v1 = vpop.permute.xlu0 %2079 }
 0xe56   :  { %v2086_v37 = vadd.f32 %v2082_v31, %v7704_v58  ;;  %v2085_v17 = vadd.f32 %v2080_v1, %v7701_v57 }
 0xe58   :  { %7137 = vtanh.f32 %v2086_v37 }
 0xe59   :  { %7139 = vtanh.f32 %v2085_v17 }
 0xe62   :  { %v7138_v7 = vpop.eup %7137 }
 0xe63   :  { %v7140_v27 = vpop.eup %7139  ;;  %2095 = vrot.lane.b32.xlu1 %v7138_v7, %s7376_s18 }
 0xe64   :  { %2093 = vrot.lane.b32.xlu0 %v7140_v27, %s7376_s18 }
 0xe67   :  { %2105 = vrot.lane.b32.xlu1 %v2102_v3, %s7370_s4 }
 0xe68   :  { %2103 = vrot.lane.b32.xlu0 %v2101_v46, %s7370_s4 }
 0xeb2   :  { %v2243_v43 = vpop.permute.xlu1 %2242 }
 0xeb3   :  { %v2241_v24 = vpop.permute.xlu0 %2240  ;;  %v2247_v20 = vmul.f32 %v2243_v43, %v2237_v51 }
 0xeb4   :  { %v2246_v37 = vmul.f32 %v2241_v24, %v2236_v6 }
 0xeb6   :  { %v2253_v9 = vpop.permute.xlu1 %2252 }
 0xeb7   :  { %v2257_v31 = vmul.f32 %v7124_v62, %v2253_v9  ;;  %v2251_v1 = vpop.permute.xlu0 %2250 }
 0xeb8   :  { %v2256_v17 = vmul.f32 %v8057_v45, %v2251_v1 }
 0xeb9   :  { %v2259_v7 = vadd.f32 %v2257_v31, %v2247_v20 }
 0xeba   :  { %v2258_v27 = vadd.f32 %v2256_v17, %v2246_v37 }
 0xebb   :  { %v2263_v19 = vrot.slane %v2259_v7, 2 }
 0xebc   :  { %v2262_v18 = vrot.slane %v2258_v27, 3 }
 0xebe   :  { %v2264_v3 = vsel %vm840_vm5, %v2263_v19, %v2262_v18  ;;  %v2269_v19 = vmul.f32 %v8022_v36, %v8032_v55 }
 0xebf   :  { %2265 = vrot.lane.b32.xlu0 %v2264_v3, %s7376_s18 }
 0xed5   :  { %v2096_v46 = vpop.permute.xlu1 %2095 }
 0xed6   :  { %v2094_v63 = vpop.permute.xlu0 %2093  ;;  %v2100_v34 = vmul.f32 %v2096_v46, %v2090_v12 }
 0xed7   :  { %v2099_v51 = vmul.f32 %v2094_v63, %v2089_v11  ;;  %v9157_v11 = vmov 0.0   ;;  %v2122_v63 = vmul.f32 %v8015_v8, %v8039_v40 }
 0xed9   :  { %v2106_v42 = vpop.permute.xlu1 %2105 }
 0xeda   :  { %v2110_v43 = vmul.f32 %v7132_v15, %v2106_v42  ;;  %v2104_v62 = vpop.permute.xlu0 %2103 }
 0xedb   :  { %v2109_v24 = vmul.f32 %v7130_v59, %v2104_v62 }
 0xedc   :  { %v2112_v6 = vadd.f32 %v2110_v43, %v2100_v34 }
 0xedd   :  { %v2111_v45 = vadd.f32 %v2109_v24, %v2099_v51 }
 0xede   :  { %v2116_v9 = vrot.slane %v2112_v6, 3 }
 0xedf   :  { %v2115_v20 = vrot.slane %v2111_v45, 4 }
 0xee1   :  { %v2117_v31 = vsel %vm840_vm5, %v2116_v9, %v2115_v20 }
 0xee2   :  { %2118 = vrot.lane.b32.xlu1 %v2117_v31, %s7376_s18 }
 0xf31   :  { %v2266_v18 = vpop.permute.xlu0 %2265 }
 0xf32   :  { %v2268_v1 = vmul.f32 %v2266_v18, %v8034_v26 }
 0xf34   :  { %v8091_v37 = vadd.f32 %v2269_v19, %v2268_v1 }
 0xf36   :  { %6314 = vmatmul.mubr.msk.f32.vlgmr.msra.gmra.mrb[18].mxu0 %vm152_vm1, %v8091_v37 }
 0xf37   :  { %6734 = vmatpush3.bf16.msra.mxu0 %v7653_v16  ;;  %6335 = vmatprep.mubr.msk.f32.mxu0 %vm7374_vm10, %v9157_v11 }
 0xf38   :  { %6735 = vmatprep.subr.bf16.mxu0 %v9156_v39 }
 0xf3b   :  { %6737 = vmatpush3.bf16.msra.mxu0 %v7663_v23 }
 0xf3c   :  { %6744 = vmatprep.subr.bf16.mxu0 %v9156_v39 }
 0xf54   :  { %v2119_v42 = vpop.permute.xlu1 %2118 }
 0xf55   :  { %v2121_v12 = vmul.f32 %v2119_v42, %v8017_v13 }
 0xf57   :  { %v8104_v34 = vadd.f32 %v2122_v63, %v2121_v12 }
 0xf59   :  { %6303 = vmatmul.mubr.msk.f32.vlgmr.msra.gmra.mrb[12].mxu1 %vm152_vm1, %v8104_v34 }
 0xf5a   :  { %6728 = vmatpush3.bf16.msra.mxu1 %v7511_v28  ;;  %6324 = vmatprep.mubr.msk.f32.mxu1 %vm7374_vm10, %v9157_v11 }
 0xf5b   :  { %6729 = vmatprep.subr.bf16.mxu1 %v9156_v39 }
 0xf5e   :  { %6731 = vmatpush3.bf16.msra.mxu1 %v7525_v33 }
 0xf5f   :  { %6738 = vmatprep.subr.bf16.mxu1 %v9156_v39 }
0x1009   :  { %v2489_v55 = vpop.f32.mrb[18].mxu0 }
0x100a   :  { %v2490_v8 = vadd.f32 %v2489_v55, %v7685_v38  ;;  %v6315_v59 = vpop.f32.mrb[19].mxu0 }
0x100c   :  { %v2494_v15 = vrot.slane %v2490_v8, 6  ;;  %v2495_v17 = vrot.slane %v2490_v8, 7 }
0x100e   :  { %2514 = vrot.lane.b32.xlu1 %v2495_v17, %s7369_s16  ;;  %2512 = vrot.lane.b32.xlu0 %v2494_v15, %s7369_s16  ;;  %v2498_v62 = vadd.f32 %v2494_v15, %v7694_v53  ;;  %v2499_v51 = vadd.f32 %v2495_v17, %v7696_v54 }
0x1010   :  { %v5861_v24 = vmul.f32 -1.442695, %v2498_v62  ;;  %v5862_v6 = vmul.f32 -1.442695, %v2499_v51 }
0x1012   :  { %7141 = vpow2.f32 %v5861_v24 }
0x1013   :  { %7143 = vpow2.f32 %v5862_v6 }
0x101c   :  { %v7142_v45 = vpop.eup %7141 }
0x101d   :  { %v7144_v9 = vpop.eup %7143  ;;  %v2506_v20 = vadd.f32 1.0, %v7142_v45 }
0x101e   :  { %v2507_v31 = vadd.f32 1.0, %v7144_v9 }
0x101f   :  { %7145 = vrcp.f32 %v2506_v20 }
0x1020   :  { %7147 = vrcp.f32 %v2507_v31 }
0x1029   :  { %v8122_v18 = vpop.eup %7145 }
0x102a   :  { %v7148_v1 = vpop.eup %7147 }
0x102c   :  { %v2342_v7 = vpop.f32.mrb[12].mxu1 }
0x102d   :  { %v2343_v27 = vadd.f32 %v7958_v14, %v2342_v7  ;;  %v6304_v3 = vpop.f32.mrb[13].mxu1 }
0x102f   :  { %v2347_v46 = vrot.slane %v2343_v27, 3  ;;  %v2348_v43 = vrot.slane %v2343_v27, 4 }
0x1031   :  { %2367 = vrot.lane.b32.xlu1 %v2348_v43, %s7369_s16  ;;  %2365 = vrot.lane.b32.xlu0 %v2347_v46, %s7369_s16  ;;  %v2351_v19 = vadd.f32 %v2347_v46, %v7701_v57  ;;  %v2352_v42 = vadd.f32 %v2348_v43, %v7704_v58 }
0x1033   :  { %v5858_v59 = vmul.f32 -1.442695, %v2351_v19  ;;  %v5859_v15 = vmul.f32 -1.442695, %v2352_v42 }
0x1035   :  { %7149 = vpow2.f32 %v5858_v59 }
0x1036   :  { %7151 = vpow2.f32 %v5859_v15 }
0x103f   :  { %v7150_v17 = vpop.eup %7149 }
0x1040   :  { %v7152_v7 = vpop.eup %7151  ;;  %v2359_v27 = vadd.f32 1.0, %v7150_v17 }
0x1041   :  { %v2360_v3 = vadd.f32 1.0, %v7152_v7 }
0x1042   :  { %7153 = vrcp.f32 %v2359_v27  ;;  %v2398_v27 = vrot.slane %v8104_v34, 4 }
0x1043   :  { %7155 = vrcp.f32 %v2360_v3  ;;  %v2397_v3 = vrot.slane %v8104_v34, 3 }
0x104c   :  { %v7154_v46 = vpop.eup %7153 }
0x104d   :  { %v7156_v43 = vpop.eup %7155 }
0x1080   :  { %v2515_v63 = vpop.permute.xlu1 %2514  ;;  %v2513_v12 = vpop.permute.xlu0 %2512 }
0x1081   :  { %v2519_v55 = vmul.f32 %v7148_v1, %v2515_v63  ;;  %v2518_v8 = vmul.f32 %v8122_v18, %v2513_v12  ;;  %v2545_v63 = vrot.slane %v8091_v37, 7  ;;  %v2544_v12 = vrot.slane %v8091_v37, 6 }
0x1083   :  { %2524 = vrot.lane.b32.xlu1 %v2519_v55, %s7369_s16  ;;  %2522 = vrot.lane.b32.xlu0 %v2518_v8, %s7369_s16 }
0x10a3   :  { %v2368_v62 = vpop.permute.xlu1 %2367  ;;  %v2366_v51 = vpop.permute.xlu0 %2365 }
0x10a4   :  { %v2372_v24 = vmul.f32 %v7156_v43, %v2368_v62  ;;  %v2371_v6 = vmul.f32 %v7154_v46, %v2366_v51 }
0x10a6   :  { %2377 = vrot.lane.b32.xlu1 %v2372_v24, %s7369_s16  ;;  %2375 = vrot.lane.b32.xlu0 %v2371_v6, %s7369_s16  ;;  %v2533_v24 = vsub.f32 1.0, %v7148_v1  ;;  %v2532_v6 = vsub.f32 1.0, %v8122_v18 }
0x10f5   :  { %v2525_v45 = vpop.permute.xlu1 %2524  ;;  %v2523_v9 = vpop.permute.xlu0 %2522 }
0x10f6   :  { %v2529_v20 = vadd.f32 %v2525_v45, %v7696_v54  ;;  %v2528_v31 = vadd.f32 %v2523_v9, %v7694_v53 }
0x10f8   :  { %7157 = vtanh.f32 %v2529_v20 }
0x10f9   :  { %7159 = vtanh.f32 %v2528_v31 }
0x1102   :  { %v7158_v19 = vpop.eup %7157 }
0x1103   :  { %v7160_v42 = vpop.eup %7159  ;;  %2538 = vrot.lane.b32.xlu1 %v7158_v19, %s7376_s18 }
0x1104   :  { %2536 = vrot.lane.b32.xlu0 %v7160_v42, %s7376_s18 }
0x1107   :  { %2548 = vrot.lane.b32.xlu1 %v2545_v63, %s7370_s4 }
0x1108   :  { %2546 = vrot.lane.b32.xlu0 %v2544_v12, %s7370_s4 }
0x1118   :  { %v2378_v55 = vpop.permute.xlu1 %2377  ;;  %v2376_v8 = vpop.permute.xlu0 %2375 }
0x1119   :  { %v2382_v59 = vadd.f32 %v2378_v55, %v7704_v58  ;;  %v2381_v15 = vadd.f32 %v2376_v8, %v7701_v57 }
0x111b   :  { %7161 = vtanh.f32 %v2382_v59 }
0x111c   :  { %7163 = vtanh.f32 %v2381_v15 }
0x1125   :  { %v7162_v17 = vpop.eup %7161 }
0x1126   :  { %v7164_v7 = vpop.eup %7163  ;;  %2391 = vrot.lane.b32.xlu1 %v7162_v17, %s7376_s18 }
0x1127   :  { %2389 = vrot.lane.b32.xlu0 %v7164_v7, %s7376_s18  ;;  %v2386_v7 = vsub.f32 1.0, %v7156_v43 }
0x112a   :  { %2401 = vrot.lane.b32.xlu1 %v2398_v27, %s7370_s4  ;;  %v2385_v27 = vsub.f32 1.0, %v7154_v46 }
0x112b   :  { %2399 = vrot.lane.b32.xlu0 %v2397_v3, %s7370_s4 }
0x1175   :  { %v2539_v62 = vpop.permute.xlu1 %2538 }
0x1176   :  { %v2537_v51 = vpop.permute.xlu0 %2536  ;;  %v2543_v9 = vmul.f32 %v2539_v62, %v2533_v24 }
0x1177   :  { %v2542_v19 = vmul.f32 %v2537_v51, %v2532_v6 }
0x1179   :  { %v2549_v45 = vpop.permute.xlu1 %2548 }
0x117a   :  { %v2553_v20 = vmul.f32 %v7148_v1, %v2549_v45  ;;  %v2547_v31 = vpop.permute.xlu0 %2546 }
0x117b   :  { %v2552_v42 = vmul.f32 %v8122_v18, %v2547_v31 }
0x117c   :  { %v2555_v63 = vadd.f32 %v2553_v20, %v2543_v9 }
0x117d   :  { %v2554_v12 = vadd.f32 %v2552_v42, %v2542_v19  ;;  %v2565_v19 = vmul.f32 %v8091_v37, %v7935_v21  ;;  %v2418_v21 = vmul.f32 %v8104_v34, %v7918_v35 }
0x117e   :  { %v2559_v55 = vrot.slane %v2555_v63, 1 }
0x117f   :  { %v2558_v8 = vrot.slane %v2554_v12, 2 }
0x1181   :  { %v2560_v59 = vsel %vm840_vm5, %v2559_v55, %v2558_v8 }
0x1182   :  { %2561 = vrot.lane.b32.xlu0 %v2560_v59, %s7376_s18 }
0x1198   :  { %v2392_v15 = vpop.permute.xlu1 %2391 }
0x1199   :  { %v2390_v17 = vpop.permute.xlu0 %2389  ;;  %v2396_v50 = vmul.f32 %v2392_v15, %v2386_v7 }
0x119a   :  { %v2395_v24 = vmul.f32 %v2390_v17, %v2385_v27 }
0x119c   :  { %v2402_v3 = vpop.permute.xlu1 %2401 }
0x119d   :  { %v2406_v62 = vmul.f32 %v7156_v43, %v2402_v3  ;;  %v2400_v1 = vpop.permute.xlu0 %2399 }
0x119e   :  { %v2405_v51 = vmul.f32 %v7154_v46, %v2400_v1 }
0x119f   :  { %v2408_v6 = vadd.f32 %v2406_v62, %v2396_v50 }
0x11a0   :  { %v2407_v18 = vadd.f32 %v2405_v51, %v2395_v24 }
0x11a1   :  { %v2412_v45 = vrot.slane %v2408_v6, 4 }
0x11a2   :  { %v2411_v9 = vrot.slane %v2407_v18, 5 }
0x11a4   :  { %v2413_v20 = vsel %vm840_vm5, %v2412_v45, %v2411_v9 }
0x11a5   :  { %2414 = vrot.lane.b32.xlu1 %v2413_v20, %s7376_s18 }
0x11f4   :  { %v2562_v31 = vpop.permute.xlu0 %2561 }
0x11f5   :  { %v2564_v42 = vmul.f32 %v2562_v31, %v7937_v52 }
0x11f7   :  { %v8156_v63 = vadd.f32 %v2565_v19, %v2564_v42 }
0x11f9   :  { %6336 = vmatmul.mubr.msk.f32.vlgmr.msra.gmra.mrb[20].mxu0 %vm152_vm1, %v8156_v63 }
0x11fa   :  { %6746 = vmatpush3.bf16.msra.mxu0 %v7653_v16  ;;  %6357 = vmatprep.mubr.msk.f32.mxu0 %vm7374_vm10, %v9157_v11 }
0x11fb   :  { %6747 = vmatprep.subr.bf16.mxu0 %v9156_v39 }
0x11fe   :  { %6749 = vmatpush3.bf16.msra.mxu0 %v7663_v23 }
0x1217   :  { %v2415_v50 = vpop.permute.xlu1 %2414 }
0x1218   :  { %v2417_v46 = vmul.f32 %v2415_v50, %v7920_v41 }
0x121a   :  { %v8168_v43 = vadd.f32 %v2418_v21, %v2417_v46 }
0x121c   :  { %6325 = vmatmul.mubr.msk.f32.vlgmr.msra.gmra.mrb[14].mxu1 %vm152_vm1, %v8168_v43 }
0x121d   :  { %6740 = vmatpush3.bf16.msra.mxu1 %v7511_v28  ;;  %6346 = vmatprep.mubr.msk.f32.mxu1 %vm7374_vm10, %v9157_v11 }
0x121e   :  { %6741 = vmatprep.subr.bf16.mxu1 %v9156_v39 }
0x1221   :  { %6743 = vmatpush3.bf16.msra.mxu1 %v7525_v33 }
0x1222   :  { %6750 = vmatprep.subr.bf16.mxu1 %v9156_v39 }
0x12cc   :  { %v2785_v16 = vpop.f32.mrb[20].mxu0 }
0x12cd   :  { %v2786_v23 = vadd.f32 %v2785_v16, %v7685_v38  ;;  %v6337_v35 = vpop.f32.mrb[21].mxu0 }
0x12cf   :  { %v2790_v12 = vrot.slane %v2786_v23, 7  ;;  %2809 = vrot.lane.b32.xlu1 %v2786_v23, %s7369_s16  ;;  %v2794_v33 = vadd.f32 %v2786_v23, %v7696_v54 }
0x12d1   :  { %2807 = vrot.lane.b32.xlu0 %v2790_v12, %s7369_s16  ;;  %v2793_v17 = vadd.f32 %v2790_v12, %v7694_v53  ;;  %v5868_v7 = vmul.f32 -1.442695, %v2794_v33 }
0x12d3   :  { %v5867_v27 = vmul.f32 -1.442695, %v2793_v17  ;;  %7165 = vpow2.f32 %v5868_v7 }
0x12d5   :  { %7167 = vpow2.f32 %v5867_v27 }
0x12dd   :  { %v7166_v3 = vpop.eup %7165 }
0x12de   :  { %v2802_v1 = vadd.f32 1.0, %v7166_v3 }
0x12df   :  { %v7168_v62 = vpop.eup %7167 }
0x12e0   :  { %v2801_v24 = vadd.f32 1.0, %v7168_v62  ;;  %7169 = vrcp.f32 %v2802_v1 }
0x12e2   :  { %7171 = vrcp.f32 %v2801_v24 }
0x12ef   :  { %v2638_v55 = vpop.f32.mrb[14].mxu1 }
0x12f0   :  { %v2639_v28 = vadd.f32 %v7958_v14, %v2638_v55  ;;  %v6326_v8 = vpop.f32.mrb[15].mxu1  ;;  %v8186_v14 = vpop.eup %7169 }
0x12f1   :  { %v7172_v45 = vpop.eup %7171 }
0x12f2   :  { %v2643_v59 = vrot.slane %v2639_v28, 2  ;;  %v2644_v15 = vrot.slane %v2639_v28, 3 }
0x12f4   :  { %2663 = vrot.lane.b32.xlu1 %v2644_v15, %s7369_s16  ;;  %2661 = vrot.lane.b32.xlu0 %v2643_v59, %s7369_s16  ;;  %v2647_v6 = vadd.f32 %v2643_v59, %v7701_v57  ;;  %v2648_v9 = vadd.f32 %v2644_v15, %v7704_v58  ;;  %v2839_v59 = vrot.slane %v8156_v63, 7 }
0x12f6   :  { %v5864_v19 = vmul.f32 -1.442695, %v2647_v6  ;;  %v5865_v42 = vmul.f32 -1.442695, %v2648_v9  ;;  %v2694_v9 = vrot.slane %v8168_v43, 3 }
0x12f8   :  { %7173 = vpow2.f32 %v5864_v19  ;;  %v2827_v19 = vsub.f32 1.0, %v7172_v45 }
0x12f9   :  { %7175 = vpow2.f32 %v5865_v42 }
0x1302   :  { %v7174_v50 = vpop.eup %7173 }
0x1303   :  { %v7176_v21 = vpop.eup %7175  ;;  %v2655_v46 = vadd.f32 1.0, %v7174_v50 }
0x1304   :  { %v2656_v16 = vadd.f32 1.0, %v7176_v21 }
0x1305   :  { %7177 = vrcp.f32 %v2655_v46 }
0x1306   :  { %7179 = vrcp.f32 %v2656_v16 }
0x130f   :  { %v7178_v23 = vpop.eup %7177 }
0x1310   :  { %v7180_v35 = vpop.eup %7179 }
0x1341   :  { %v2810_v51 = vpop.permute.xlu1 %2809 }
0x1342   :  { %v2814_v18 = vmul.f32 %v8186_v14, %v2810_v51 }
0x1343   :  { %v2808_v20 = vpop.permute.xlu0 %2807 }
0x1344   :  { %v2813_v31 = vmul.f32 %v7172_v45, %v2808_v20  ;;  %2819 = vrot.lane.b32.xlu1 %v2814_v18, %s7369_s16  ;;  %v2693_v20 = vrot.slane %v8168_v43, 2 }
0x1346   :  { %2817 = vrot.lane.b32.xlu0 %v2813_v31, %s7369_s16 }
0x1366   :  { %v2664_v12 = vpop.permute.xlu1 %2663  ;;  %v2662_v55 = vpop.permute.xlu0 %2661 }
0x1367   :  { %v2668_v28 = vmul.f32 %v7180_v35, %v2664_v12  ;;  %v2667_v8 = vmul.f32 %v7178_v23, %v2662_v55  ;;  %v2828_v12 = vsub.f32 1.0, %v8186_v14 }
0x1369   :  { %2673 = vrot.lane.b32.xlu1 %v2668_v28, %s7369_s16  ;;  %2671 = vrot.lane.b32.xlu0 %v2667_v8, %s7369_s16 }
0x136d   :  { %2840 = vrot.lane.b32.xlu1 %v2839_v59, %s7370_s4 }
0x1371   :  { %2842 = vrot.lane.b32.xlu1 %v8156_v63, %s7370_s4 }
0x13b6   :  { %v2820_v15 = vpop.permute.xlu1 %2819 }
0x13b7   :  { %v2824_v7 = vadd.f32 %v2820_v15, %v7696_v54 }
0x13b8   :  { %v2818_v33 = vpop.permute.xlu0 %2817 }
0x13b9   :  { %v2823_v17 = vadd.f32 %v2818_v33, %v7694_v53 }
0x13bb   :  { %7181 = vtanh.f32 %v2823_v17 }
0x13bc   :  { %7183 = vtanh.f32 %v2824_v7 }
0x13c5   :  { %v7182_v27 = vpop.eup %7181 }
0x13c6   :  { %2831 = vrot.lane.b32.xlu0 %v7182_v27, %s7376_s18  ;;  %v7184_v3 = vpop.eup %7183  ;;  %v2682_v27 = vsub.f32 1.0, %v7180_v35 }
0x13ca   :  { %2833 = vrot.lane.b32.xlu0 %v7184_v3, %s7376_s18  ;;  %v2681_v3 = vsub.f32 1.0, %v7178_v23 }
0x13db   :  { %v2674_v62 = vpop.permute.xlu1 %2673  ;;  %v2672_v1 = vpop.permute.xlu0 %2671 }
0x13dc   :  { %v2678_v24 = vadd.f32 %v2674_v62, %v7704_v58  ;;  %v2677_v51 = vadd.f32 %v2672_v1, %v7701_v57 }
0x13de   :  { %7185 = vtanh.f32 %v2678_v24 }
0x13df   :  { %7187 = vtanh.f32 %v2677_v51  ;;  %v2841_v31 = vpop.permute.xlu1 %2840 }
0x13e0   :  { %v2846_v50 = vmul.f32 %v7172_v45, %v2841_v31 }
0x13e3   :  { %v2843_v46 = vpop.permute.xlu1 %2842 }
0x13e4   :  { %v2847_v28 = vmul.f32 %v8186_v14, %v2843_v46 }
0x13e8   :  { %v7186_v6 = vpop.eup %7185 }
0x13e9   :  { %v7188_v18 = vpop.eup %7187  ;;  %2687 = vrot.lane.b32.xlu1 %v7186_v6, %s7376_s18 }
0x13ea   :  { %2685 = vrot.lane.b32.xlu0 %v7188_v18, %s7376_s18 }
0x13ed   :  { %2697 = vrot.lane.b32.xlu1 %v2694_v9, %s7370_s4 }
0x13ee   :  { %2695 = vrot.lane.b32.xlu0 %v2693_v20, %s7370_s4 }
0x1438   :  { %v2832_v42 = vpop.permute.xlu0 %2831 }
0x1439   :  { %v2837_v21 = vmul.f32 %v2832_v42, %v2827_v19  ;;  %v2858_v42 = vmul.f32 %v8156_v63, %v7843_v0 }
0x143b   :  { %v2848_v16 = vadd.f32 %v2846_v50, %v2837_v21 }
0x143c   :  { %v2834_v55 = vpop.permute.xlu0 %2833 }
0x143d   :  { %v2838_v8 = vmul.f32 %v2834_v55, %v2828_v12  ;;  %v2852_v59 = vrot.slane %v2848_v16, 1 }
0x143f   :  { %v2849_v15 = vadd.f32 %v2847_v28, %v2838_v8  ;;  %v7336_v8 = vld [vmem:[%s9132_s6 + $0x60] ss:$0 sm:$0xff] }
0x1441   :  { %v2853_v33 = vsel %vm840_vm5, %v2849_v15, %v2852_v59 }
0x1442   :  { %2854 = vrot.lane.b32.xlu0 %v2853_v33, %s7376_s18 }
0x145b   :  { %v2688_v17 = vpop.permute.xlu1 %2687 }
0x145c   :  { %v2686_v7 = vpop.permute.xlu0 %2685  ;;  %v2692_v62 = vmul.f32 %v2688_v17, %v2682_v27 }
0x145d   :  { %v2691_v51 = vmul.f32 %v2686_v7, %v2681_v3 }
0x145f   :  { %v2698_v45 = vpop.permute.xlu1 %2697 }
0x1460   :  { %v2702_v1 = vmul.f32 %v7180_v35, %v2698_v45  ;;  %v2696_v24 = vpop.permute.xlu0 %2695  ;;  %v2714_v35 = vmul.f32 %v8168_v43, %v7822_v22 }
0x1461   :  { %v2701_v6 = vmul.f32 %v7178_v23, %v2696_v24 }
0x1462   :  { %v2704_v18 = vadd.f32 %v2702_v1, %v2692_v62 }
0x1463   :  { %v2703_v9 = vadd.f32 %v2701_v6, %v2691_v51 }
0x1464   :  { %v2708_v14 = vrot.slane %v2704_v18, 5 }
0x1465   :  { %v2707_v20 = vrot.slane %v2703_v9, 6 }
0x1467   :  { %v2709_v31 = vsel %vm840_vm5, %v2708_v14, %v2707_v20 }
0x1468   :  { %2710 = vrot.lane.b32.xlu1 %v2709_v31, %s7376_s18 }
0x14b4   :  { %v2855_v19 = vpop.permute.xlu0 %2854 }
0x14b5   :  { %v2857_v50 = vmul.f32 %v2855_v19, %v7845_v60 }
0x14b7   :  { %v8220_v21 = vadd.f32 %v2858_v42, %v2857_v50 }
0x14b9   :  { %6358 = vmatmul.mubr.msk.f32.vlgmr.msra.gmra.mrb[22].mxu0 %vm152_vm1, %v8220_v21 }
0x14da   :  { %v2711_v23 = vpop.permute.xlu1 %2710 }
0x14db   :  { %v2713_v46 = vmul.f32 %v2711_v23, %v7824_v29 }
0x14dd   :  { %v8227_v16 = vadd.f32 %v2714_v35, %v2713_v46 }
0x14df   :  { %6347 = vmatmul.mubr.msk.f32.vlgmr.msra.gmra.mrb[16].mxu1 %vm152_vm1, %v8227_v16 }
0x14e0   :  { %6376 = vmatprep.mubr.msk.f32.mxu1 %vm7374_vm10, %v9157_v11 }
0x158c   :  { %v3078_v0 = vpop.f32.mrb[22].mxu0 }
0x158d   :  { %v3079_v12 = vadd.f32 %v3078_v0, %v7685_v38  ;;  %v6359_v55 = vpop.f32.mrb[23].mxu0 }
0x158f   :  { %v3083_v28 = vrot.slane %v3079_v12, 1  ;;  %3100 = vrot.lane.b32.xlu1 %v3079_v12, %s7369_s16  ;;  %v3086_v38 = vadd.f32 %v3079_v12, %v7694_v53 }
0x1591   :  { %3102 = vrot.lane.b32.xlu0 %v3083_v28, %s7369_s16  ;;  %v3087_v7 = vadd.f32 %v3083_v28, %v7696_v54  ;;  %v5873_v27 = vmul.f32 -1.442695, %v3086_v38 }
0x1593   :  { %v5874_v3 = vmul.f32 -1.442695, %v3087_v7  ;;  %7189 = vpow2.f32 %v5873_v27 }
0x1595   :  { %7191 = vpow2.f32 %v5874_v3 }
0x159d   :  { %v7190_v45 = vpop.eup %7189 }
0x159e   :  { %v3094_v1 = vadd.f32 1.0, %v7190_v45 }
0x159f   :  { %v7192_v62 = vpop.eup %7191 }
0x15a0   :  { %v3095_v24 = vadd.f32 1.0, %v7192_v62  ;;  %7193 = vrcp.f32 %v3094_v1 }
0x15a2   :  { %7195 = vrcp.f32 %v3095_v24 }
0x15aa   :  { %v8243_v51 = vpop.eup %7193 }
0x15ac   :  { %v7196_v9 = vpop.eup %7195 }
0x15b2   :  { %v2931_v22 = vpop.f32.mrb[16].mxu1 }
0x15b3   :  { %v2932_v59 = vadd.f32 %v7336_v8, %v2931_v22  ;;  %v6348_v15 = vpop.f32.mrb[17].mxu1 }
0x15b4   :  { %v3132_v15 = vrot.slane %v8220_v21, 1 }
0x15b5   :  { %v2936_v33 = vrot.slane %v2932_v59, 1  ;;  %v2937_v17 = vrot.slane %v2932_v59, 2 }
0x15b7   :  { %2956 = vrot.lane.b32.xlu1 %v2937_v17, %s7369_s16  ;;  %2954 = vrot.lane.b32.xlu0 %v2936_v33, %s7369_s16  ;;  %v2940_v31 = vadd.f32 %v2936_v33, %v7701_v57  ;;  %v2941_v19 = vadd.f32 %v2937_v17, %v7704_v58 }
0x15b9   :  { %v5870_v42 = vmul.f32 -1.442695, %v2940_v31  ;;  %v5871_v50 = vmul.f32 -1.442695, %v2941_v19 }
0x15bb   :  { %7197 = vpow2.f32 %v5870_v42 }
0x15bc   :  { %7199 = vpow2.f32 %v5871_v50  ;;  %v3120_v50 = vsub.f32 1.0, %v8243_v51 }
0x15c5   :  { %v7198_v23 = vpop.eup %7197 }
0x15c6   :  { %v7200_v35 = vpop.eup %7199  ;;  %v2948_v46 = vadd.f32 1.0, %v7198_v23 }
0x15c7   :  { %v2949_v0 = vadd.f32 1.0, %v7200_v35 }
0x15c8   :  { %7201 = vrcp.f32 %v2948_v46 }
0x15c9   :  { %7203 = vrcp.f32 %v2949_v0 }
0x15d2   :  { %v7202_v12 = vpop.eup %7201 }
0x15d3   :  { %v7204_v55 = vpop.eup %7203 }
0x1601   :  { %v3101_v6 = vpop.permute.xlu1 %3100 }
0x1602   :  { %v3106_v18 = vmul.f32 %v8243_v51, %v3101_v6 }
0x1603   :  { %v3103_v14 = vpop.permute.xlu0 %3102 }
0x1604   :  { %v3107_v20 = vmul.f32 %v7196_v9, %v3103_v14  ;;  %3110 = vrot.lane.b32.xlu1 %v3106_v18, %s7369_s16  ;;  %v2986_v18 = vrot.slane %v8227_v16, 1 }
0x1606   :  { %3112 = vrot.lane.b32.xlu0 %v3107_v20, %s7369_s16 }
0x1629   :  { %v2957_v28 = vpop.permute.xlu1 %2956  ;;  %v2955_v22 = vpop.permute.xlu0 %2954 }
0x162a   :  { %v2961_v8 = vmul.f32 %v7204_v55, %v2957_v28  ;;  %v2960_v59 = vmul.f32 %v7202_v12, %v2955_v22 }
0x162c   :  { %2966 = vrot.lane.b32.xlu1 %v2961_v8, %s7369_s16  ;;  %2964 = vrot.lane.b32.xlu0 %v2960_v59, %s7369_s16 }
0x1630   :  { %3135 = vrot.lane.b32.xlu1 %v3132_v15, %s7370_s4  ;;  %v2975_v15 = vsub.f32 1.0, %v7204_v55 }
0x1634   :  { %3133 = vrot.lane.b32.xlu1 %v8220_v21, %s7370_s4 }
0x1676   :  { %v3111_v33 = vpop.permute.xlu1 %3110 }
0x1677   :  { %v3116_v7 = vadd.f32 %v3111_v33, %v7694_v53  ;;  %v2987_v53 = vrot.slane %v8227_v16, 2  ;;  %v2974_v33 = vsub.f32 1.0, %v7202_v12 }
0x1678   :  { %v3113_v17 = vpop.permute.xlu0 %3112 }
0x1679   :  { %v3117_v38 = vadd.f32 %v3113_v17, %v7696_v54 }
0x167b   :  { %7205 = vtanh.f32 %v3117_v38 }
0x167c   :  { %7207 = vtanh.f32 %v3116_v7 }
0x1685   :  { %v7206_v27 = vpop.eup %7205 }
0x1686   :  { %3126 = vrot.lane.b32.xlu0 %v7206_v27, %s7376_s18  ;;  %v7208_v3 = vpop.eup %7207 }
0x168a   :  { %3124 = vrot.lane.b32.xlu0 %v7208_v3, %s7376_s18 }
0x169e   :  { %v2967_v45 = vpop.permute.xlu1 %2966  ;;  %v2965_v62 = vpop.permute.xlu0 %2964 }
0x169f   :  { %v2971_v1 = vadd.f32 %v2967_v45, %v7704_v58  ;;  %v2970_v24 = vadd.f32 %v2965_v62, %v7701_v57  ;;  %v3121_v58 = vsub.f32 1.0, %v7196_v9 }
0x16a1   :  { %7209 = vtanh.f32 %v2971_v1  ;;  %v55_v1 = vld [vmem:[%s9132_s6 + $0x10] sm:$0xff] }
0x16a2   :  { %7211 = vtanh.f32 %v2970_v24  ;;  %v3136_v14 = vpop.permute.xlu1 %3135 }
0x16a3   :  { %v3140_v57 = vmul.f32 %v7196_v9, %v3136_v14  ;;  %v2861_v14 = vmul.f32 %v8220_v21, %v7845_v60 }
0x16a6   :  { %v3134_v19 = vpop.permute.xlu1 %3133 }
0x16a7   :  { %v3139_v35 = vmul.f32 %v8243_v51, %v3134_v19  ;;  %v71_v19 = vld [vmem:[%s9133_s7 + $0x18] sm:$0xff] }
0x16ab   :  { %v7210_v6 = vpop.eup %7209 }
0x16ac   :  { %v7212_v54 = vpop.eup %7211  ;;  %2980 = vrot.lane.b32.xlu1 %v7210_v6, %s7376_s18 }
0x16ad   :  { %2978 = vrot.lane.b32.xlu0 %v7212_v54, %s7376_s18  ;;  %v7337_v54 = vld [vmem:[%s9132_s6 + $0x8] sm:$0xff] }
0x16b0   :  { %2990 = vrot.lane.b32.xlu1 %v2987_v53, %s7370_s4  ;;  %v7000_v53 = vpack.i.bf16 %v55_v1, %v7337_v54  ;;  %v80_v1 = vld [vmem:[%s9134_s8 + $0x18] sm:$0xff]  ;;  %v81_v54 = vld [vmem:[%s9134_s8 + $0x20] sm:$0xff] }
0x16b1   :  { %2988 = vrot.lane.b32.xlu0 %v2986_v18, %s7370_s4 }
0x16f8   :  { %v3127_v20 = vpop.permute.xlu0 %3126 }
0x16f9   :  { %v3131_v31 = vmul.f32 %v3127_v20, %v3121_v58  ;;  %v68_v58 = vld [vmem:[%s9133_s7] sm:$0xff]  ;;  %v69_v20 = vld [vmem:[%s9133_s7 + $0x8] sm:$0xff] }
0x16fb   :  { %v3142_v42 = vadd.f32 %v3140_v57, %v3131_v31  ;;  %v70_v57 = vld [vmem:[%s9133_s7 + $0x10] sm:$0xff]  ;;  %v6751_v31 = vpack.c.bf16 %v69_v20, %v68_v58  ;;  %v1043_v20 = vmul.f32 %v7747_v48, %v7737_v30 }
0x16fc   :  { %v3125_v23 = vpop.permute.xlu0 %3124 }
0x16fd   :  { %v3130_v46 = vmul.f32 %v3125_v23, %v3120_v50  ;;  %v3145_v0 = vrot.slane %v3142_v42, 7  ;;  %6752 = vmatpush3.bf16.msra.mxu1 %v6751_v31  ;;  %v6754_v42 = vpack.c.bf16 %v71_v19, %v70_v57  ;;  %v1976_v50 = vmul.f32 %v8022_v36, %v8017_v13  ;;  %v72_v23 = vld [vmem:[%s9133_s7 + $0x20] sm:$0xff]  ;;  %v74_v36 = vld [vmem:[%s9133_s7 + $0x30] sm:$0xff] }
0x16fe   :  { %6753 = vmatprep.subr.bf16.mxu1 %v9156_v39  ;;  %v5879_v57 = vld [vmem:[%s9132_s6 + $0x70] ss:$0 sm:$0xff] }
0x16ff   :  { %v3141_v28 = vadd.f32 %v3139_v35, %v3130_v46  ;;  %v73_v35 = vld [vmem:[%s9133_s7 + $0x28] sm:$0xff] }
0x1700   :  { %v6757_v46 = vpack.c.bf16 %v73_v35, %v72_v23  ;;  %v7384_v23 = vmov 1966171168  }
0x1701   :  { %v3146_v22 = vsel %vm840_vm5, %v3145_v0, %v3141_v28  ;;  %6755 = vmatpush3.bf16.msra.mxu1 %v6754_v42  ;;  %v75_v0 = vld [vmem:[%s9133_s7 + $0x38] sm:$0xff]  ;;  %v3197_v35 = vunpack.c.l.s4 %v7384_v23 }
0x1702   :  { %3147 = vrot.lane.b32.xlu0 %v3146_v22, %s7376_s18  ;;  %6756 = vmatprep.subr.bf16.mxu1 %v9156_v39  ;;  %v6760_v28 = vpack.c.bf16 %v75_v0, %v74_v36 }
0x1705   :  { %6758 = vmatpush3.bf16.msra.mxu1 %v6757_v46  ;;  %v3007_v46 = vmul.f32 %v8227_v16, %v7743_v44 }
0x1706   :  { %6759 = vmatprep.subr.bf16.mxu1 %v9156_v39 }
0x1709   :  { %6761 = vmatpush3.bf16.msra.mxu1 %v6760_v28 }
0x170a   :  { %6778 = vmatprep.subr.bf16.mxu1 %v9156_v39 }
0x171e   :  { %v2981_v8 = vpop.permute.xlu1 %2980 }
0x171f   :  { %v2979_v59 = vpop.permute.xlu0 %2978  ;;  %v2985_v17 = vmul.f32 %v2981_v8, %v2975_v15  ;;  %v3151_v8 = vmul.f32 %v8220_v21, %v7757_v25  ;;  %v58_v15 = vld [vmem:[%s9132_s6 + $0x28] sm:$0xff]  ;;  %v64_v25 = vld [vmem:[%s9132_s6 + $0x58] sm:$0xff]  ;;  %v77_v21 = vld [vmem:[%s9134_s8] sm:$0xff] }
0x1720   :  { %v2984_v27 = vmul.f32 %v2979_v59, %v2974_v33 }
0x1722   :  { %v2991_v9 = vpop.permute.xlu1 %2990 }
0x1723   :  { %v2995_v38 = vmul.f32 %v7204_v55, %v2991_v9  ;;  %v2989_v7 = vpop.permute.xlu0 %2988  ;;  %v7338_v55 = vld [vmem:[%s9132_s6 + $0x38] sm:$0xff]  ;;  %v7339_v9 = vld [vmem:[%s9132_s6 + $0x20] sm:$0xff] }
0x1724   :  { %v2994_v3 = vmul.f32 %v7202_v12, %v2989_v7  ;;  %v61_v12 = vld [vmem:[%s9132_s6 + $0x40] sm:$0xff]  ;;  %v78_v7 = vld [vmem:[%s9134_s8 + $0x8] sm:$0xff] }
0x1725   :  { %v2997_v45 = vadd.f32 %v2995_v38, %v2985_v17  ;;  %v7010_v18 = vpack.i.bf16 %v61_v12, %v7338_v55  ;;  %v7005_v17 = vpack.i.bf16 %v58_v15, %v7339_v9  ;;  %v7342_v55 = vld [vmem:[%s9131_s5 + $0x38] ss:$0 sm:$0xff] }
0x1726   :  { %v2996_v62 = vadd.f32 %v2994_v3, %v2984_v27  ;;  %v7340_v27 = vld [vmem:[%s9132_s6 + $0x50] sm:$0xff] }
0x1727   :  { %v3001_v51 = vrot.slane %v2997_v45, 6  ;;  %v7015_v3 = vpack.i.bf16 %v64_v25, %v7340_v27  ;;  %v1352_v45 = vmul.f32 %v7833_v56, %v7824_v29  ;;  %v7341_v56 = vld [vmem:[%s9132_s6 + $0x68] ss:$0 sm:$0xff] }
0x1728   :  { %v3000_v24 = vrot.slane %v2996_v62, 7  ;;  %v6762_v62 = vpack.c.bf16 %v78_v7, %v77_v21 }
0x172a   :  { %v3002_v6 = vsel %vm840_vm5, %v3001_v51, %v3000_v24  ;;  %6763 = vmatprep.subr.bf16.mxu0 %v6762_v62  ;;  %v79_v51 = vld [vmem:[%s9134_s8 + $0x10] sm:$0xff] }
0x172b   :  { %3003 = vrot.lane.b32.xlu1 %v3002_v6, %s7376_s18  ;;  %6765 = vmatpush3.bf16.msra.mxu0 %v6762_v62  ;;  %v6766_v24 = vpack.c.bf16 %v80_v1, %v79_v51  ;;  %v2568_v6 = vmul.f32 %v8156_v63, %v7937_v52  ;;  %v2272_v63 = vmul.f32 %v8091_v37, %v8034_v26 }
0x172c   :  { %v1664_v37 = vmul.f32 %v7925_v47, %v7920_v41  ;;  %v5824_v47 = vld [vmem:[%s9131_s5 + $0x40] ss:$0 sm:$0xff] }
0x172d   :  { %6767 = vmatprep.subr.bf16.mxu0 %v6766_v24 }
0x172f   :  { %7001 = vrot.lane.b32.xlu1 %v7000_v53, %s7369_s16  ;;  %6769 = vmatpush3.bf16.msra.mxu0 %v6766_v24  ;;  %v82_v53 = vld [vmem:[%s9134_s8 + $0x28] sm:$0xff] }
0x1730   :  { %v6770_v12 = vpack.c.bf16 %v82_v53, %v81_v54 }
0x1732   :  { %6771 = vmatprep.subr.bf16.mxu0 %v6770_v12 }
0x1733   :  { %7011 = vrot.lane.b32.xlu1 %v7010_v18, %s7369_s16  ;;  %6773 = vmatpush3.bf16.msra.mxu0 %v6770_v12  ;;  %v83_v18 = vld [vmem:[%s9134_s8 + $0x30] sm:$0xff]  ;;  %v1663_v12 = vmul.f32 %v7942_v2, %v7937_v52  ;;  %v2567_v52 = vmul.f32 %v8168_v43, %v7920_v41 }
0x1737   :  { %3161 = vrot.lane.b32.xlu1 %v2861_v14, %s7370_s4  ;;  %v84_v14 = vld [vmem:[%s9134_s8 + $0x38] sm:$0xff] }
0x1738   :  { %v6774_v58 = vpack.c.bf16 %v84_v14, %v83_v18 }
0x173a   :  { %6775 = vmatprep.subr.bf16.mxu0 %v6774_v58 }
0x173b   :  { %3176 = vrot.lane.b32.xlu1 %v1976_v50, %s7370_s4  ;;  %6777 = vmatpush3.bf16.msra.mxu0 %v6774_v58 }
0x173c   :  { %6784 = vmatprep.subr.bf16.mxu0 %v9156_v39 }
0x1774   :  { %v3148_v22 = vpop.permute.xlu0 %3147 }
0x1775   :  { %v3150_v59 = vmul.f32 %v3148_v22, %v7759_v49  ;;  %v3198_v22 = vunpack.c.0.s8 %v3197_v35 }
0x1777   :  { %v3152_v33 = vadd.f32 %v3151_v8, %v3150_v59 }
0x1779   :  { %v3154_v38 = vmul.f32 %v3152_v33, %v7759_v49  ;;  %3472 = vrot.lane.b32.xlu0 %v3152_v33, %s7370_s4  ;;  %v1351_v33 = vmul.f32 %v7850_v4, %v7845_v60  ;;  %v1042_v60 = vmul.f32 %v7763_v61, %v7759_v49 }
0x177b   :  { %3156 = vrot.lane.b32.xlu1 %v3154_v38, %s7370_s4 }
0x177d   :  { %7006 = vrot.lane.b32.xlu0 %v7005_v17, %s7369_s16  ;;  %v8412_v17 = vsub.s32 %v3198_v22, %v7458_v5 }
0x177f   :  { %3186 = vrot.lane.b32.xlu1 %v1352_v45, %s7370_s4  ;;  %v2271_v45 = vmul.f32 %v8104_v34, %v8017_v13 }
0x1781   :  { %7016 = vrot.lane.b32.xlu0 %v7015_v3, %s7369_s16 }
0x1783   :  { %3667 = vrot.lane.b32.xlu1 %v7341_v56, %s7369_s16 }
0x1785   :  { %3166 = vrot.lane.b32.xlu0 %v2568_v6, %s7370_s4 }
0x1787   :  { %581 = vrot.lane.b32.xlu1 %v7342_v55, %s7369_s16  ;;  %v2860_v55 = vmul.f32 %v8227_v16, %v7824_v29 }
0x1789   :  { %3171 = vrot.lane.b32.xlu0 %v2272_v63, %s7370_s4 }
0x178d   :  { %3181 = vrot.lane.b32.xlu0 %v1664_v37, %s7370_s4  ;;  %v1975_v37 = vmul.f32 %v8039_v40, %v8034_v26 }
0x1791   :  { %3191 = vrot.lane.b32.xlu0 %v1043_v20, %s7370_s4 }
0x1795   :  { %3669 = vrot.lane.b32.xlu0 %v5879_v57, %s7369_s16 }
0x1799   :  { %583 = vrot.lane.b32.xlu0 %v5824_v47, %s7369_s16 }
0x179d   :  { %v3004_v31 = vpop.permute.xlu1 %3003 }
0x179e   :  { %v3006_v50 = vmul.f32 %v3004_v31, %v7737_v30 }
0x17a0   :  { %v8401_v36 = vadd.f32 %v3007_v46, %v3006_v50 }
0x17a1   :  { %v7002_v19 = vpop.permute.xlu1 %7001 }
0x17a2   :  { %v7004_v0 = vunpack.i.h.bf16 %v7002_v19  ;;  %v7003_v28 = vunpack.i.l.bf16 %v7002_v19  ;;  %v3153_v23 = vmul.f32 %v8401_v36, %v7737_v30 }
0x17a4   :  { %v3658_v44 = vsel %vm575_vm8, %v7003_v28, %v7004_v0 }
0x17a5   :  { %v7012_v42 = vpop.permute.xlu1 %7011 }
0x17a6   :  { %v7014_v9 = vunpack.i.h.bf16 %v7012_v42  ;;  %v7013_v25 = vunpack.i.l.bf16 %v7012_v42 }
0x17a8   :  { %v3660_v56 = vsel %vm575_vm8, %v7013_v25, %v7014_v9 }
0x17a9   :  { %v3162_v48 = vpop.permute.xlu1 %3161 }
0x17aa   :  { %v3164_v21 = vsel %vm152_vm1, %v1351_v33, %v3162_v48 }
0x17ab   :  { %v3227_v62 = vrot.slane %v3164_v21, %v8412_v17 }
0x17ad   :  { %v3177_v59 = vpop.permute.xlu1 %3176  ;;  %v3228_v63 = vcombine.high %v3227_v62, %v3227_v62  ;;  %v3235_v16 = vrot.slane %v3227_v62, %v8412_v17 }
0x17ae   :  { %v3179_v51 = vsel %vm152_vm1, %v2271_v45, %v3177_v59 }
0x17af   :  { %v3296_v13 = vrot.slane %v3179_v51, %v8412_v17  ;;  %v3242_v26 = vrot.slane %v3228_v63, %v8412_v17  ;;  %v3384_v28 = vrot.slane %v3235_v16, %v7471_v10 }
0x17b1   :  { %v3297_v2 = vcombine.high %v3296_v13, %v3296_v13  ;;  %v3304_v19 = vrot.slane %v3296_v13, %v8412_v17  ;;  %v3388_v22 = vrot.slane %v3242_v26, %v7471_v10 }
0x17b3   :  { %v3311_v35 = vrot.slane %v3297_v2, %v8412_v17  ;;  %v3414_v33 = vrot.slane %v3304_v19, %v7471_v10 }
0x17eb   :  { %v3473_v8 = vpop.permute.xlu0 %3472 }
0x17ec   :  { %v3475_v15 = vsel %vm152_vm1, %v8401_v36, %v3473_v8 }
0x17ed   :  { %6377 = vmatmul.mubr.msk.f32.vlgmr.msra.gmra.mrb[18].mxu1 %vm575_vm8, %v3475_v15  ;;  %v3157_v7 = vpop.permute.xlu1 %3156 }
0x17ee   :  { %6406 = vmatprep.mubr.msk.f32.mxu1 %vm7374_vm10, %v9157_v11  ;;  %v3159_v1 = vsel %vm152_vm1, %v1042_v60, %v3157_v7  ;;  %v3418_v7 = vrot.slane %v3311_v35, %v7471_v10 }
0x17ef   :  { %v7007_v38 = vpop.permute.xlu0 %7006  ;;  %v3202_v49 = vrot.slane %v3159_v1, %v8412_v17 }
0x17f0   :  { %v7009_v27 = vunpack.i.h.bf16 %v7007_v38  ;;  %v7008_v3 = vunpack.i.l.bf16 %v7007_v38 }
0x17f1   :  { %v3187_v61 = vpop.permute.xlu1 %3186  ;;  %v3203_v29 = vcombine.high %v3202_v49, %v3202_v49  ;;  %v3210_v42 = vrot.slane %v3202_v49, %v8412_v17 }
0x17f2   :  { %v3659_v4 = vsel %vm575_vm8, %v7008_v3, %v7009_v27  ;;  %v3189_v20 = vsel %vm152_vm1, %v2860_v55, %v3187_v61 }
0x17f3   :  { %v8423_v24 = vpack.c.bf16 %v3659_v4, %v3658_v44  ;;  %v7017_v6 = vpop.permute.xlu0 %7016  ;;  %v3342_v41 = vrot.slane %v3189_v20, %v8412_v17  ;;  %v3217_v46 = vrot.slane %v3203_v29, %v8412_v17  ;;  %v3451_v36 = vsel %vm149_vm4, %v3210_v42, %v3384_v28 }
0x17f4   :  { %v7019_v54 = vunpack.i.h.bf16 %v7017_v6  ;;  %v7018_v53 = vunpack.i.l.bf16 %v7017_v6 }
0x17f5   :  { %6780 = vmatpush3.bf16.msra.mxu1 %v8423_v24  ;;  %v3343_v44 = vcombine.high %v3342_v41, %v3342_v41  ;;  %v3452_v27 = vsel %vm149_vm4, %v3217_v46, %v3388_v22  ;;  %v3350_v3 = vrot.slane %v3342_v41, %v8412_v17  ;;  %v3668_v6 = vpop.permute.xlu1 %3667  ;;  %vm4266_vm4 = vcmask 1042434  }
0x17f6   :  { %v3661_v34 = vsel %vm575_vm8, %v7018_v53, %v7019_v54  ;;  %6781 = vmatprep.subr.bf16.mxu1 %v9156_v39 }
0x17f7   :  { %v8435_v18 = vpack.c.bf16 %v3661_v34, %v3660_v56  ;;  %v3167_v14 = vpop.permute.xlu0 %3166  ;;  %v3357_v56 = vrot.slane %v3343_v44, %v8412_v17  ;;  %v3434_v63 = vrot.slane %v3350_v3, %v7471_v10  ;;  %v9159_v44 = vld [vmem:[#allocation14_spill] sm:$0xff] }
0x17f8   :  { %v3169_v58 = vsel %vm152_vm1, %v1663_v12, %v3167_v14 }
0x17f9   :  { %v3250_v57 = vrot.slane %v3169_v58, %v8412_v17  ;;  %6783 = vmatpush3.bf16.msra.mxu1 %v8435_v18 }
0x17fa   :  { %6802 = vmatprep.subr.bf16.mxu1 %v9156_v39 }
0x17fb   :  { %v3251_v40 = vcombine.high %v3250_v57, %v3250_v57  ;;  %v3258_v47 = vrot.slane %v3250_v57, %v8412_v17  ;;  %v3172_v31 = vpop.permute.xlu0 %3171 }
0x17fc   :  { %v3174_v43 = vsel %vm152_vm1, %v1975_v37, %v3172_v31 }
0x17fd   :  { %v3265_v50 = vrot.slane %v3251_v40, %v8412_v17  ;;  %v3273_v48 = vrot.slane %v3174_v43, %v8412_v17  ;;  %v3394_v0 = vrot.slane %v3258_v47, %v7471_v10  ;;  %v582_v40 = vpop.permute.xlu1 %581 }
0x17ff   :  { %v3274_v8 = vcombine.high %v3273_v48, %v3273_v48  ;;  %v3281_v59 = vrot.slane %v3273_v48, %v8412_v17  ;;  %v3182_v15 = vpop.permute.xlu0 %3181  ;;  %v3398_v9 = vrot.slane %v3265_v50, %v7471_v10  ;;  %v3454_v45 = vsel %vm3453_vm11, %v3451_v36, %v3394_v0 }
0x1800   :  { %v3184_v30 = vsel %vm152_vm1, %v2567_v52, %v3182_v15  ;;  %v3438_v52 = vrot.slane %v3357_v56, %v7471_v10 }
0x1801   :  { %v3288_v38 = vrot.slane %v3274_v8, %v8412_v17  ;;  %v3404_v25 = vrot.slane %v3281_v59, %v7471_v10  ;;  %v3319_v21 = vrot.slane %v3184_v30, %v8412_v17  ;;  %v3455_v54 = vsel %vm3453_vm11, %v3452_v27, %v3398_v9  ;;  %v9158_v59 = vld [vmem:[#allocation7_spill] sm:$0xff] }
0x1803   :  { %v3408_v60 = vrot.slane %v3288_v38, %v7471_v10  ;;  %v3457_v4 = vsel %vm3456_vm12, %v3454_v45, %v3404_v25  ;;  %v3320_v62 = vcombine.high %v3319_v21, %v3319_v21  ;;  %v3327_v51 = vrot.slane %v3319_v21, %v8412_v17  ;;  %v3192_v1 = vpop.permute.xlu0 %3191 }
0x1804   :  { %v3460_v53 = vsel %vm3459_vm13, %v3457_v4, %v3414_v33  ;;  %v3194_v13 = vsel %vm152_vm1, %v3153_v23, %v3192_v1 }
0x1805   :  { %v3458_v49 = vsel %vm3456_vm12, %v3455_v54, %v3408_v60  ;;  %v3334_v61 = vrot.slane %v3320_v62, %v8412_v17  ;;  %v3424_v34 = vrot.slane %v3327_v51, %v7471_v10  ;;  %v3365_v12 = vrot.slane %v3194_v13, %v8412_v17 }
0x1806   :  { %v3461_v55 = vsel %vm3459_vm13, %v3458_v49, %v3418_v7  ;;  %vm5764_vm12 = vcmask 42024   ;;  %vm4030_vm13 = vcmask 1024  }
0x1807   :  { %v3428_v14 = vrot.slane %v3334_v61, %v7471_v10  ;;  %v3463_v58 = vsel %vm3462_vm14, %v3460_v53, %v3424_v34  ;;  %v3366_v37 = vcombine.high %v3365_v12, %v3365_v12  ;;  %v3373_v20 = vrot.slane %v3365_v12, %v8412_v17  ;;  %v3670_v57 = vpop.permute.xlu0 %3669 }
0x1808   :  { %v3466_v2 = vsel %vm3465_vm15, %v3463_v58, %v3434_v63  ;;  %v8524_v0 = vsel %vm575_vm8, %v3668_v6, %v3670_v57 }
0x1809   :  { %v3464_v29 = vsel %vm3462_vm14, %v3461_v55, %v3428_v14  ;;  %v3380_v16 = vrot.slane %v3366_v37, %v8412_v17  ;;  %v3444_v26 = vrot.slane %v3373_v20, %v7471_v10  ;;  %v5875_v17 = vld [vmem:[%s9133_s7 + $0x40] ss:$0 sm:$0xff] }
0x180a   :  { %v3467_v47 = vsel %vm3465_vm15, %v3464_v29, %v3438_v52 }
0x180b   :  { %v3448_v31 = vrot.slane %v3380_v16, %v7471_v10  ;;  %v8497_v19 = vsel %vm3468_vm0, %v3466_v2, %v3444_v26  ;;  %v584_v41 = vpop.permute.xlu0 %583 }
0x180c   :  { %v585_v43 = vsel %vm575_vm8, %v582_v40, %v584_v41  ;;  %6395 = vmatprep.mubr.msk.f32.mxu0 %vm575_vm8, %v8497_v19 }
0x180d   :  { %v8503_v42 = vadd.f32 %v7680_v32, %v585_v43  ;;  %v8505_v50 = vsel %vm3468_vm0, %v3467_v47, %v3448_v31  ;;  %v660_v9 = vadd.f32 %v9159_v44, %v585_v43 }
0x180e   :  { %6396 = vmatmul.mubr.msk.f32.vlgmr.msra.gmra.mrb[24].mxu0 %vm575_vm8, %v8505_v50 }
0x180f   :  { %6433 = vmatprep.mubr.msk.f32.mxu0 %vm7374_vm10, %v9157_v11  ;;  %v670_v30 = vcombine.high %v660_v9, %v660_v9  ;;  %v8535_v38 = vrot.slane %v660_v9, %v9158_v59 }
0x1811   :  { %v8532_v36 = vrot.slane %v670_v30, %v9158_v59 }
0x1813   :  { %v8539_v25 = vcombine.high %v8532_v36, %v8532_v36 }
0x18c0   :  { %v3549_v48 = vpop.f32.mrb[18].mxu1 }
0x18c1   :  { %v3550_v23 = vadd.f32 %v5875_v17, %v3549_v48  ;;  %v6378_v35 = vpop.f32.mrb[19].mxu1 }
0x18c3   :  { %6407 = vmatmul.mubr.msk.f32.vlgmr.msra.gmra.mrb[20].mxu1 %vm152_vm1, %v3550_v23  ;;  %v3809_v63 = vrot.slane %v3550_v23, %v9158_v59 }
0x18c4   :  { %6804 = vmatpush3.bf16.msra.mxu1 %v8423_v24  ;;  %6444 = vmatprep.mubr.msk.f32.mxu1 %vm7374_vm10, %v9157_v11 }
0x18c5   :  { %6805 = vmatprep.subr.bf16.mxu1 %v9156_v39  ;;  %v3810_v14 = vrot.slane %v3809_v63, 1 }
0x18c8   :  { %6807 = vmatpush3.bf16.msra.mxu1 %v8435_v18 }
0x18c9   :  { %6808 = vmatprep.subr.bf16.mxu1 %v9156_v39 }
0x18e1   :  { %v8521_v32 = vpop.f32.mrb[24].mxu0 }
0x18e2   :  { %v3625_v46 = vpop.f32.mrb[25].mxu0 }
0x1996   :  { %v3742_v28 = vpop.f32.mrb[20].mxu1 }
0x1997   :  { %v3743_v22 = vadd.f32 %v3742_v28, %v8524_v0  ;;  %v6408_v8 = vpop.f32.mrb[21].mxu1 }
0x1999   :  { %v3753_v15 = vrot.slane %v3743_v22, %v9158_v59 }
0x199b   :  { %v3754_v33 = vrot.slane %v3753_v15, 1  ;;  %3771 = vrot.lane.b32.xlu1 %v3753_v15, %s7369_s16  ;;  %v3757_v21 = vadd.f32 %v3753_v15, %v8535_v38 }
0x199d   :  { %3773 = vrot.lane.b32.xlu0 %v3754_v33, %s7369_s16  ;;  %v3758_v7 = vadd.f32 %v3754_v33, %v8539_v25  ;;  %v5881_v27 = vmul.f32 -1.442695, %v3757_v21  ;;  %v9160_v21 = vld [vmem:[#allocation6_spill] sm:$0xff] }
0x199f   :  { %v5882_v3 = vmul.f32 -1.442695, %v3758_v7  ;;  %7213 = vpow2.f32 %v5881_v27  ;;  %v8586_v7 = vsub.s32 %v9160_v21, %v7458_v5 }
0x19a1   :  { %7215 = vpow2.f32 %v5882_v3 }
0x19a9   :  { %v7214_v45 = vpop.eup %7213 }
0x19aa   :  { %v3765_v4 = vadd.f32 1.0, %v7214_v45 }
0x19ab   :  { %v7216_v60 = vpop.eup %7215 }
0x19ac   :  { %v3766_v62 = vadd.f32 1.0, %v7216_v60  ;;  %7217 = vrcp.f32 %v3765_v4  ;;  %v8593_v4 = vld [vmem:[%s9128_s2] sm:$0x3] }
0x19ad   :  { %vm3853_vm2 = vcmp.gt.f32.partialorder %v8593_v4, 0.0 }
0x19ae   :  { %7219 = vrcp.f32 %v3766_v62 }
0x19b6   :  { %v7218_v51 = vpop.eup %7217 }
0x19b7   :  { %v3791_v20 = vsub.f32 1.0, %v7218_v51 }
0x19b8   :  { %v7220_v56 = vpop.eup %7219 }
0x19b9   :  { %v3792_v2 = vsub.f32 1.0, %v7220_v56 }
0x1a0d   :  { %v3772_v1 = vpop.permute.xlu1 %3771 }
0x1a0e   :  { %v3777_v6 = vmul.f32 %v7218_v51, %v3772_v1 }
0x1a0f   :  { %v3774_v54 = vpop.permute.xlu0 %3773 }
0x1a10   :  { %v3778_v53 = vmul.f32 %v7220_v56, %v3774_v54  ;;  %3781 = vrot.lane.b32.xlu1 %v3777_v6, %s7369_s16 }
0x1a12   :  { %3783 = vrot.lane.b32.xlu0 %v3778_v53, %s7369_s16 }
0x1a82   :  { %v3782_v13 = vpop.permute.xlu1 %3781 }
0x1a83   :  { %v3787_v49 = vadd.f32 %v3782_v13, %v8535_v38 }
0x1a84   :  { %v3784_v61 = vpop.permute.xlu0 %3783 }
0x1a85   :  { %7221 = vtanh.f32 %v3787_v49  ;;  %v3788_v34 = vadd.f32 %v3784_v61, %v8539_v25 }
0x1a87   :  { %7223 = vtanh.f32 %v3788_v34 }
0x1a8f   :  { %v7222_v12 = vpop.eup %7221 }
0x1a90   :  { %3795 = vrot.lane.b32.xlu1 %v7222_v12, %s7376_s18 }
0x1a91   :  { %v7224_v55 = vpop.eup %7223 }
0x1a92   :  { %3797 = vrot.lane.b32.xlu0 %v7224_v55, %s7376_s18 }
0x1a94   :  { %3811 = vrot.lane.b32.xlu1 %v3809_v63, %s7370_s4 }
0x1a96   :  { %3813 = vrot.lane.b32.xlu0 %v3810_v14, %s7370_s4 }
0x1a9a   :  { %3831 = vrot.lane.b32.xlu0 %v3625_v46, %s7370_s4 }
0x1b02   :  { %v3796_v58 = vpop.permute.xlu1 %3795 }
0x1b03   :  { %v3801_v52 = vmul.f32 %v3796_v58, %v3791_v20 }
0x1b04   :  { %v3798_v37 = vpop.permute.xlu0 %3797 }
0x1b05   :  { %v3802_v26 = vmul.f32 %v3798_v37, %v3792_v2 }
0x1b06   :  { %v3812_v57 = vpop.permute.xlu1 %3811 }
0x1b07   :  { %v3817_v29 = vmul.f32 %v7218_v51, %v3812_v57 }
0x1b08   :  { %v3814_v16 = vpop.permute.xlu0 %3813 }
0x1b09   :  { %v8553_v40 = vadd.f32 %v3817_v29, %v3801_v52  ;;  %v3818_v47 = vmul.f32 %v7220_v56, %v3814_v16 }
0x1b0b   :  { %v3824_v31 = vrot.slane %v8553_v40, %v7471_v10  ;;  %v8557_v41 = vadd.f32 %v3818_v47, %v3802_v26 }
0x1b0c   :  { %v8559_v43 = vpop.permute.xlu0 %3831 }
0x1b0d   :  { %v3828_v17 = vrot.slane %v8557_v41, %v7471_v10  ;;  %v3837_v48 = vmul.f32 %v8559_v43, %v3824_v31 }
0x1b0f   :  { %3841 = vrot.lane.b32.xlu0 %v3837_v48, %s7376_s18  ;;  %v3921_v23 = vsel %vm840_vm5, %v3828_v17, %v3824_v31 }
0x1b10   :  { %3922 = vrot.lane.b32.xlu1 %v3921_v23, %s7376_s18 }
0x1b14   :  { %3833 = vrot.lane.b32.xlu1 %v8521_v32, %s7370_s4 }
0x1b81   :  { %v3842_v35 = vpop.permute.xlu0 %3841 }
0x1b82   :  { %v8569_v46 = vpop.permute.xlu1 %3922  ;;  %v3847_v28 = vsel %vm152_vm1, %v3842_v35, 0.0 }
0x1b83   :  { %6445 = vmatmul.mubr.msk.f32.vlgmr.msra.gmra.mrb[22].mxu1 %vm152_vm1, %v8569_v46  ;;  %3848 = vadd.xlane.f32.xlu0 %v3847_v28 }
0x1b84   :  { %6471 = vmatprep.mubr.msk.f32.mxu1 %vm7374_vm10, %v9157_v11 }
0x1b86   :  { %v8576_v22 = vpop.permute.xlu1 %3833 }
0x1b87   :  { %v3838_v8 = vmul.f32 %v8576_v22, %v3828_v17 }
0x1b89   :  { %3843 = vrot.lane.b32.xlu1 %v3838_v8, %s7376_s18 }
0x1bfb   :  { %v3844_v15 = vpop.permute.xlu1 %3843 }
0x1bfc   :  { %v3850_v32 = vsel %vm152_vm1, %v3844_v15, 0.0  ;;  %v9161_v15 = vld [vmem:[#allocation5_spill] sm:$0xff] }
0x1bfd   :  { %3851 = vadd.xlane.f32.xlu1 %v3850_v32 }
0x1c10   :  { %v3849_v27 = vpop.xlane.xlu0 %3848 }
0x1c11   :  { %v3859_v45 = vrot.slane %v3849_v27, %v8586_v7  ;;  %v88_v27 = vld [vmem:[%s9135_s9 + $0x18] sm:$0xff] }
0x1c56   :  { %v4107_v33 = vpop.f32.mrb[22].mxu1 }
0x1c57   :  { %v4108_v44 = vadd.f32 %v4107_v33, %v8524_v0  ;;  %v6446_v9 = vpop.f32.mrb[23].mxu1 }
0x1c58   :  { %v85_v9 = vld [vmem:[%s9135_s9] sm:$0xff] }
0x1c59   :  { %v4118_v30 = vrot.slane %v4108_v44, %v9158_v59 }
0x1c5b   :  { %4138 = vrot.lane.b32.xlu1 %v4118_v30, %s7369_s16  ;;  %v4119_v1 = vrot.slane %v4118_v30, 7  ;;  %v4123_v56 = vadd.f32 %v4118_v30, %v8539_v25  ;;  %v87_v30 = vld [vmem:[%s9135_s9 + $0x10] sm:$0xff] }
0x1c5d   :  { %v4122_v6 = vadd.f32 %v4119_v1, %v8535_v38  ;;  %v5887_v53 = vmul.f32 -1.442695, %v4123_v56  ;;  %v94_v56 = vld [vmem:[%s9135_s9 + $0x48] sm:$0xff] }
0x1c5f   :  { %v5886_v54 = vmul.f32 -1.442695, %v4122_v6  ;;  %v93_v6 = vld [vmem:[%s9135_s9 + $0x40] sm:$0xff] }
0x1c61   :  { %7225 = vpow2.f32 %v5886_v54  ;;  %v8670_v54 = vpack.c.bf16 %v94_v56, %v93_v6 }
0x1c62   :  { %7227 = vpow2.f32 %v5887_v53  ;;  %v95_v53 = vld [vmem:[%s9135_s9 + $0x50] sm:$0xff] }
0x1c6b   :  { %v7226_v13 = vpop.eup %7225 }
0x1c6c   :  { %v4130_v49 = vadd.f32 1.0, %v7226_v13  ;;  %v7228_v61 = vpop.eup %7227  ;;  %v96_v13 = vld [vmem:[%s9135_s9 + $0x58] sm:$0xff] }
0x1c6d   :  { %v4131_v34 = vadd.f32 1.0, %v7228_v61 }
0x1c6e   :  { %7229 = vrcp.f32 %v4130_v49  ;;  %v8682_v49 = vpack.c.bf16 %v96_v13, %v95_v53 }
0x1c6f   :  { %7231 = vrcp.f32 %v4131_v34 }
0x1c78   :  { %v8603_v14 = vpop.eup %7229 }
0x1c79   :  { %v8607_v57 = vpop.eup %7231 }
0x1c8a   :  { %v3852_v3 = vpop.xlane.xlu1 %3851 }
0x1c8b   :  { %v3863_v60 = vrot.slane %v3852_v3, %v8586_v7  ;;  %v8634_v3 = vpack.c.bf16 %v88_v27, %v87_v30 }
0x1c8d   :  { %v3864_v62 = vsel %vm840_vm5, %v3863_v60, %v3859_v45  ;;  %v89_v45 = vld [vmem:[%s9135_s9 + $0x20] sm:$0xff]  ;;  %v90_v60 = vld [vmem:[%s9135_s9 + $0x28] sm:$0xff] }
0x1c8e   :  { %v3866_v5 = vsel %vm3853_vm2, %v3864_v62, -1e+30  ;;  %v8646_v62 = vpack.c.bf16 %v90_v60, %v89_v45 }
0x1c8f   :  { %v3868_v51 = vsel %vm3867_vm3, %v3866_v5, -inf }
0x1c90   :  { %3869 = vmax.xlane.f32.xlu0 %v3868_v51  ;;  %v92_v51 = vld [vmem:[%s9135_s9 + $0x38] sm:$0xff] }
0x1ca6   :  { %4136 = vrot.lane.b32.xlu0 %v4119_v1, %s7369_s16 }
0x1ccd   :  { %v4139_v20 = vpop.permute.xlu1 %4138 }
0x1cce   :  { %v4143_v52 = vmul.f32 %v8607_v57, %v4139_v20 }
0x1d1d   :  { %v3870_v12 = vpop.xlane.xlu0 %3869 }
0x1d1e   :  { %v3871_v63 = vsub.f32 %v3866_v5, %v3870_v12  ;;  %v91_v5 = vld [vmem:[%s9135_s9 + $0x30] sm:$0xff] }
0x1d1f   :  { %v8658_v1 = vpack.c.bf16 %v92_v51, %v91_v5 }
0x1d20   :  { %v3872_v55 = vmul.f32 1.442695, %v3871_v63 }
0x1d21   :  { %v4137_v58 = vpop.permute.xlu0 %4136 }
0x1d22   :  { %7233 = vpow2.f32 %v3872_v55  ;;  %v4142_v37 = vmul.f32 %v8603_v14, %v4137_v58 }
0x1d24   :  { %4146 = vrot.lane.b32.xlu0 %v4142_v37, %s7369_s16 }
0x1d28   :  { %4148 = vrot.lane.b32.xlu0 %v4143_v52, %s7369_s16  ;;  %v4156_v52 = vsub.f32 1.0, %v8603_v14 }
0x1d2c   :  { %v7234_v2 = vpop.eup %7233 }
0x1d2d   :  { %v3874_v29 = vmul.f32 %v8593_v4, %v7234_v2 }
0x1d2f   :  { %v3875_v16 = vsel %vm3867_vm3, %v3874_v29, 0.0 }
0x1d30   :  { %3876 = vadd.xlane.f32.xlu1 %v3875_v16 }
0x1d96   :  { %v4147_v31 = vpop.permute.xlu0 %4146 }
0x1d97   :  { %v4152_v17 = vadd.f32 %v4147_v31, %v8535_v38 }
0x1d9a   :  { %v4149_v48 = vpop.permute.xlu0 %4148 }
0x1d9b   :  { %v4153_v28 = vadd.f32 %v4149_v48, %v8539_v25  ;;  %v86_v25 = vld [vmem:[%s9135_s9 + $0x8] sm:$0xff]  ;;  %v4169_v48 = vrot.slane %v8557_v41, 7 }
0x1d9c   :  { %v8628_v21 = vpack.c.bf16 %v86_v25, %v85_v9 }
0x1d9e   :  { %6786 = vmatpush3.bf16.msra.mxu0 %v8628_v21  ;;  %6810 = vmatpush3.bf16.msra.mxu1 %v8628_v21 }
0x1d9f   :  { %6787 = vmatprep.subr.bf16.mxu0 %v9156_v39  ;;  %6811 = vmatprep.subr.bf16.mxu1 %v9156_v39 }
0x1da2   :  { %6789 = vmatpush3.bf16.msra.mxu0 %v8634_v3  ;;  %6813 = vmatpush3.bf16.msra.mxu1 %v8634_v3 }
0x1da3   :  { %6790 = vmatprep.subr.bf16.mxu0 %v9156_v39  ;;  %6814 = vmatprep.subr.bf16.mxu1 %v9156_v39 }
0x1da6   :  { %6792 = vmatpush3.bf16.msra.mxu0 %v8646_v62  ;;  %6816 = vmatpush3.bf16.msra.mxu1 %v8646_v62 }
0x1da7   :  { %6793 = vmatprep.subr.bf16.mxu0 %v9156_v39  ;;  %6817 = vmatprep.subr.bf16.mxu1 %v9156_v39 }
0x1daa   :  { %6795 = vmatpush3.bf16.msra.mxu0 %v8658_v1  ;;  %6819 = vmatpush3.bf16.msra.mxu1 %v8658_v1 }
0x1dab   :  { %6796 = vmatprep.subr.bf16.mxu0 %v9156_v39  ;;  %6820 = vmatprep.subr.bf16.mxu1 %v9156_v39 }
0x1dae   :  { %6798 = vmatpush3.bf16.msra.mxu0 %v8670_v54  ;;  %6822 = vmatpush3.bf16.msra.mxu1 %v8670_v54 }
0x1daf   :  { %6799 = vmatprep.subr.bf16.mxu0 %v9156_v39  ;;  %6823 = vmatprep.subr.bf16.mxu1 %v9156_v39 }
0x1db2   :  { %6801 = vmatpush3.bf16.msra.mxu0 %v8682_v49  ;;  %6825 = vmatpush3.bf16.msra.mxu1 %v8682_v49 }
0x1db3   :  { %6826 = vmatprep.subr.bf16.mxu0 %v9156_v39  ;;  %6850 = vmatprep.subr.bf16.mxu1 %v9156_v39 }
0x1dbd   :  { %v3877_v26 = vpop.xlane.xlu1 %3876 }
0x1dbe   :  { %v3878_v47 = vmax.f32 %v3877_v26, 1e-09  ;;  %v4168_v26 = vrot.slane %v8553_v40, 7 }
0x1dc0   :  { %7235 = vrcp.f32 %v3878_v47 }
0x1dc1   :  { %7237 = vtanh.f32 %v4152_v17 }
0x1dc2   :  { %7239 = vtanh.f32 %v4153_v28 }
0x1dca   :  { %v7236_v23 = vpop.eup %7235 }
0x1dcb   :  { %v3880_v35 = vmul.f32 %v7236_v23, %v3874_v29  ;;  %v7238_v33 = vpop.eup %7237  ;;  %v4172_v23 = vmul.f32 %v8603_v14, %v4168_v26 }
0x1dcc   :  { %v7240_v44 = vpop.eup %7239 }
0x1dcd   :  { %v3884_v8 = vrot.slane %v3880_v35, %v7471_v10  ;;  %v3891_v32 = vrot.slane %v3880_v35, %v9161_v15  ;;  %v4157_v35 = vsub.f32 1.0, %v8607_v57 }
0x1dcf   :  { %3886 = vbcast.lane.b32.xlu0 %v3884_v8, 256 }
0x1dd3   :  { %3893 = vbcast.lane.b32.xlu0 %v3891_v32, 256 }
0x1dd7   :  { %4160 = vrot.lane.b32.xlu0 %v7238_v33, %s7376_s18  ;;  %v4173_v33 = vmul.f32 %v8607_v57, %v4169_v48 }
0x1ddb   :  { %4162 = vrot.lane.b32.xlu0 %v7240_v44, %s7376_s18 }
0x1e41   :  { %v3887_v61 = vpop.permute.xlu0 %3886 }
0x1e42   :  { %v3895_v34 = vmul.f32 %v3887_v61, %v8497_v19 }
0x1e44   :  { %v3897_v12 = vsel %vm575_vm8, %v3895_v34, 0.0 }
0x1e45   :  { %v3898_v63 = vrot.slane %v3897_v12, 4  ;;  %v3894_v55 = vpop.permute.xlu0 %3893 }
0x1e46   :  { %v3896_v58 = vmul.f32 %v3894_v55, %v8505_v50 }
0x1e47   :  { %v3899_v37 = vadd.f32 %v3898_v63, %v3897_v12 }
0x1e48   :  { %v3904_v20 = vsel %vm575_vm8, %v3896_v58, 0.0 }
0x1e49   :  { %v3900_v2 = vrot.slane %v3899_v37, 2  ;;  %v3905_v29 = vrot.slane %v3904_v20, 4  ;;  %v4161_v16 = vpop.permute.xlu0 %4160 }
0x1e4a   :  { %v4166_v47 = vmul.f32 %v4161_v16, %v4156_v52 }
0x1e4b   :  { %v3901_v31 = vadd.f32 %v3900_v2, %v3899_v37  ;;  %v3906_v17 = vadd.f32 %v3905_v29, %v3904_v20 }
0x1e4c   :  { %v8700_v32 = vadd.f32 %v4172_v23, %v4166_v47 }
0x1e4d   :  { %v3907_v28 = vrot.slane %v3906_v17, 2  ;;  %v4163_v8 = vpop.permute.xlu0 %4162  ;;  %v3902_v9 = vrot.slane %v3901_v31, 1 }
0x1e4e   :  { %v4167_v44 = vmul.f32 %v4163_v8, %v4157_v35  ;;  %v4179_v41 = vrot.slane %v8700_v32, %v9161_v15  ;;  %v8760_v8 = vcombine.high %v8535_v38, %v8535_v38 }
0x1e4f   :  { %v3908_v25 = vadd.f32 %v3907_v28, %v3906_v17  ;;  %v3903_v27 = vadd.f32 %v3902_v9, %v3901_v31 }
0x1e50   :  { %v8703_v30 = vadd.f32 %v4173_v33, %v4167_v44  ;;  %v4184_v6 = vmul.f32 %v4179_v41, %v8559_v43  ;;  %v8765_v44 = vrot.slane %v8503_v42, %v9158_v59 }
0x1e51   :  { %v3909_v40 = vrot.slane %v3908_v25, 1 }
0x1e52   :  { %v4183_v14 = vrot.slane %v8703_v30, %v9161_v15 }
0x1e53   :  { %v3910_v45 = vadd.f32 %v3909_v40, %v3908_v25 }
0x1e54   :  { %v4185_v60 = vmul.f32 %v4183_v14, %v8576_v22  ;;  %v4385_v5 = vsel %vm840_vm5, %v4183_v14, %v4179_v41  ;;  %v8712_v57 = vsel %vm4266_vm4, %v4183_v14, %v4179_v41 }
0x1e55   :  { %v3927_v51 = vsel %vm840_vm5, %v3910_v45, %v3903_v27 }
0x1e56   :  { %3928 = vrot.lane.b32.xlu0 %v3927_v51, %s7370_s4  ;;  %4190 = vrot.lane.b32.xlu1 %v4185_v60, %s7376_s18 }
0x1e5a   :  { %4386 = vrot.lane.b32.xlu0 %v4385_v5, %s7376_s18 }
0x1e5e   :  { %4188 = vrot.lane.b32.xlu0 %v4184_v6, %s7376_s18 }
0x1ec8   :  { %v4191_v56 = vpop.permute.xlu1 %4190  ;;  %v3929_v53 = vpop.permute.xlu0 %3928 }
0x1ec9   :  { %v3931_v13 = vsel %vm152_vm1, %v8569_v46, %v3929_v53  ;;  %v4197_v61 = vsel %vm152_vm1, %v4191_v56, 0.0 }
0x1eca   :  { %4198 = vadd.xlane.f32.xlu1 %v4197_v61  ;;  %6434 = vmatmul.mubr.msk.f32.vlgmr.msra.gmra.mrb[26].mxu0 %vm3936_vm6, %v3931_v13 }
0x1ecb   :  { %6828 = vmatpush3.bf16.msra.mxu0 %v8423_v24  ;;  %6482 = vmatprep.mubr.msk.f32.mxu0 %vm7374_vm10, %v9157_v11 }
0x1ecc   :  { %v4387_v34 = vpop.permute.xlu0 %4386  ;;  %6829 = vmatprep.subr.bf16.mxu0 %v9156_v39 }
0x1ecf   :  { %6831 = vmatpush3.bf16.msra.mxu0 %v8435_v18 }
0x1ed0   :  { %v4189_v12 = vpop.permute.xlu0 %4188  ;;  %6832 = vmatprep.subr.bf16.mxu0 %v9156_v39 }
0x1ed1   :  { %v4194_v46 = vsel %vm152_vm1, %v4189_v12, 0.0 }
0x1ed2   :  { %6483 = vmatmul.mubr.msk.f32.vlgmr.msra.gmra.mrb[28].mxu0 %vm152_vm1, %v4387_v34  ;;  %4195 = vadd.xlane.f32.xlu0 %v4194_v46 }
0x1ed3   :  { %6834 = vmatpush3.bf16.msra.mxu0 %v8628_v21  ;;  %6509 = vmatprep.mubr.msk.f32.mxu0 %vm7374_vm10, %v9157_v11 }
0x1ed4   :  { %6835 = vmatprep.subr.bf16.mxu0 %v9156_v39 }
0x1ed7   :  { %6837 = vmatpush3.bf16.msra.mxu0 %v8634_v3 }
0x1ed8   :  { %6838 = vmatprep.subr.bf16.mxu0 %v9156_v39 }
0x1edb   :  { %6840 = vmatpush3.bf16.msra.mxu0 %v8646_v62 }
0x1edc   :  { %6841 = vmatprep.subr.bf16.mxu0 %v9156_v39 }
0x1edf   :  { %6843 = vmatpush3.bf16.msra.mxu0 %v8658_v1 }
0x1ee0   :  { %6844 = vmatprep.subr.bf16.mxu0 %v9156_v39 }
0x1ee3   :  { %6846 = vmatpush3.bf16.msra.mxu0 %v8670_v54 }
0x1ee4   :  { %6847 = vmatprep.subr.bf16.mxu0 %v9156_v39 }
0x1ee7   :  { %6849 = vmatpush3.bf16.msra.mxu0 %v8682_v49 }
0x1ee8   :  { %6874 = vmatprep.subr.bf16.mxu0 %v9156_v39 }
0x1f57   :  { %v4199_v63 = vpop.xlane.xlu1 %4198 }
0x1f58   :  { %v4209_v58 = vrot.slane %v4199_v63, %v8586_v7 }
0x1f5f   :  { %v4196_v55 = vpop.xlane.xlu0 %4195 }
0x1f60   :  { %v4205_v37 = vrot.slane %v4196_v55, %v8586_v7 }
0x1f62   :  { %v4210_v20 = vsel %vm840_vm5, %v4209_v58, %v4205_v37 }
0x1f63   :  { %v4212_v52 = vsel %vm3853_vm2, %v4210_v20, -1e+30 }
0x1f64   :  { %v4213_v2 = vsel %vm3867_vm3, %v4212_v52, -inf }
0x1f65   :  { %4214 = vmax.xlane.f32.xlu0 %v4213_v2 }
0x1f9d   :  { %v8752_v29 = vpop.f32.mrb[26].mxu0 }
0x1f9e   :  { %v6435_v16 = vpop.f32.mrb[27].mxu0 }
0x1fa5   :  { %v4456_v26 = vpop.f32.mrb[28].mxu0 }
0x1fa6   :  { %v4457_v47 = vadd.f32 %v4456_v26, %v8524_v0  ;;  %v6484_v31 = vpop.f32.mrb[29].mxu0 }
0x1fa8   :  { %v4467_v17 = vrot.slane %v4457_v47, %v9158_v59 }
0x1faa   :  { %v4468_v48 = vrot.slane %v4467_v17, 1  ;;  %4485 = vrot.lane.b32.xlu0 %v4467_v17, %s7369_s16  ;;  %v4471_v33 = vadd.f32 %v4467_v17, %v8760_v8 }
0x1fac   :  { %4487 = vrot.lane.b32.xlu1 %v4468_v48, %s7369_s16  ;;  %v4472_v9 = vadd.f32 %v4468_v48, %v8765_v44  ;;  %v5890_v25 = vmul.f32 -1.442695, %v4471_v33 }
0x1fae   :  { %v5891_v41 = vmul.f32 -1.442695, %v4472_v9 }
0x1ff2   :  { %v4215_v23 = vpop.xlane.xlu0 %4214 }
0x1ff3   :  { %v4216_v35 = vsub.f32 %v4212_v52, %v4215_v23 }
0x1ff5   :  { %v4217_v28 = vmul.f32 1.442695, %v4216_v35 }
0x1ff7   :  { %7241 = vpow2.f32 %v4217_v28 }
0x1ff8   :  { %7243 = vpow2.f32 %v5890_v25 }
0x1ff9   :  { %7245 = vpow2.f32 %v5891_v41 }
0x2001   :  { %v7242_v40 = vpop.eup %7241 }
0x2002   :  { %v4219_v14 = vmul.f32 %v8593_v4, %v7242_v40  ;;  %v7244_v38 = vpop.eup %7243  ;;  %v5892_v40 = vrot.slane %v8700_v32, 9 }
0x2003   :  { %v4479_v45 = vadd.f32 1.0, %v7244_v38  ;;  %v7246_v60 = vpop.eup %7245  ;;  %v5893_v38 = vrot.slane %v8703_v30, 9 }
0x2004   :  { %v4220_v27 = vsel %vm3867_vm3, %v4219_v14, 0.0  ;;  %v4480_v5 = vadd.f32 1.0, %v7246_v60 }
0x2005   :  { %4221 = vadd.xlane.f32.xlu0 %v4220_v27  ;;  %7247 = vrcp.f32 %v4479_v45 }
0x2006   :  { %7249 = vrcp.f32 %v4480_v5 }
0x200f   :  { %v7248_v42 = vpop.eup %7247 }
0x2010   :  { %v7250_v53 = vpop.eup %7249  ;;  %v4505_v28 = vsub.f32 1.0, %v7248_v42  ;;  %v4523_v45 = vmul.f32 %v7248_v42, %v5892_v40 }
0x2011   :  { %v4506_v60 = vsub.f32 1.0, %v7250_v53 }
0x201b   :  { %4268 = vrot.lane.b32.xlu0 %v8712_v57, %s7376_s18 }
0x201c   :  { %v4486_v51 = vpop.permute.xlu0 %4485 }
0x201d   :  { %v4491_v6 = vmul.f32 %v7248_v42, %v4486_v51 }
0x201e   :  { %v4488_v56 = vpop.permute.xlu1 %4487 }
0x201f   :  { %4495 = vrot.lane.b32.xlu1 %v4491_v6, %s7369_s16  ;;  %v4492_v13 = vmul.f32 %v7250_v53, %v4488_v56  ;;  %v4524_v56 = vmul.f32 %v7250_v53, %v5893_v38 }
0x2023   :  { %4497 = vrot.lane.b32.xlu1 %v4492_v13, %s7369_s16 }
0x2091   :  { %v4496_v12 = vpop.permute.xlu1 %4495 }
0x2092   :  { %v4222_v61 = vpop.xlane.xlu0 %4221  ;;  %v4501_v46 = vadd.f32 %v4496_v12, %v8760_v8 }
0x2093   :  { %v4223_v34 = vmax.f32 %v4222_v61, 1e-09 }
0x2095   :  { %7251 = vrcp.f32 %v4223_v34  ;;  %v4498_v63 = vpop.permute.xlu1 %4497 }
0x2096   :  { %7253 = vtanh.f32 %v4501_v46  ;;  %v4502_v57 = vadd.f32 %v4498_v63, %v8765_v44 }
0x2098   :  { %7255 = vtanh.f32 %v4502_v57 }
0x209f   :  { %v7252_v55 = vpop.eup %7251 }
0x20a0   :  { %v4225_v58 = vmul.f32 %v7252_v55, %v4219_v14  ;;  %v7254_v52 = vpop.eup %7253 }
0x20a2   :  { %v4229_v37 = vrot.slane %v4225_v58, %v7471_v10  ;;  %v4236_v20 = vrot.slane %v4225_v58, %v9161_v15  ;;  %v7256_v2 = vpop.eup %7255 }
0x20a4   :  { %4231 = vbcast.lane.b32.xlu1 %v4229_v37, 256  ;;  %v4269_v37 = vpop.permute.xlu0 %4268 }
0x20a8   :  { %4238 = vbcast.lane.b32.xlu1 %v4236_v20, 256 }
0x20ac   :  { %4509 = vrot.lane.b32.xlu1 %v7254_v52, %s7376_s18 }
0x20b0   :  { %4511 = vrot.lane.b32.xlu1 %v7256_v2, %s7376_s18 }
0x2116   :  { %v4232_v16 = vpop.permute.xlu1 %4231 }
0x2117   :  { %v4240_v26 = vmul.f32 %v4232_v16, %v8497_v19 }
0x2119   :  { %v4242_v47 = vsel %vm575_vm8, %v4240_v26, 0.0 }
0x211a   :  { %v4243_v31 = vrot.slane %v4242_v47, 4  ;;  %v4239_v17 = vpop.permute.xlu1 %4238 }
0x211b   :  { %v4241_v48 = vmul.f32 %v4239_v17, %v8505_v50 }
0x211c   :  { %v4244_v23 = vadd.f32 %v4243_v31, %v4242_v47 }
0x211d   :  { %v4249_v35 = vsel %vm575_vm8, %v4241_v48, 0.0 }
0x211e   :  { %v4245_v33 = vrot.slane %v4244_v23, 2  ;;  %v4250_v9 = vrot.slane %v4249_v35, 4  ;;  %v4510_v25 = vpop.permute.xlu1 %4509 }
0x211f   :  { %v4515_v41 = vmul.f32 %v4510_v25, %v4505_v28 }
0x2120   :  { %v4246_v14 = vadd.f32 %v4245_v33, %v4244_v23  ;;  %v4251_v27 = vadd.f32 %v4250_v9, %v4249_v35 }
0x2121   :  { %v8786_v6 = vadd.f32 %v4523_v45, %v4515_v41 }
0x2122   :  { %v4252_v5 = vrot.slane %v4251_v27, 2  ;;  %v4512_v51 = vpop.permute.xlu1 %4511  ;;  %v4247_v61 = vrot.slane %v4246_v14, 1 }
0x2123   :  { %v4516_v13 = vmul.f32 %v4512_v51, %v4506_v60  ;;  %v4530_v32 = vrot.slane %v8786_v6, %v7471_v10 }
0x2124   :  { %v4253_v34 = vadd.f32 %v4252_v5, %v4251_v27  ;;  %v4248_v30 = vadd.f32 %v4247_v61, %v4246_v14 }
0x2125   :  { %v8788_v12 = vadd.f32 %v4524_v56, %v4516_v13  ;;  %v4535_v53 = vmul.f32 %v4530_v32, %v8559_v43 }
0x2126   :  { %v4254_v46 = vrot.slane %v4253_v34, 1 }
0x2127   :  { %v4534_v63 = vrot.slane %v8788_v12, %v7471_v10 }
0x2128   :  { %v4255_v42 = vadd.f32 %v4254_v46, %v4253_v34 }
0x2129   :  { %v4617_v55 = vsel %vm840_vm5, %v4534_v63, %v4530_v32  ;;  %v4536_v57 = vmul.f32 %v4534_v63, %v8576_v22 }
0x212a   :  { %v4273_v58 = vsel %vm4266_vm4, %v4255_v42, %v4248_v30 }
0x212b   :  { %4274 = vrot.lane.b32.xlu1 %v4273_v58, %s7370_s4 }
0x212f   :  { %4618 = vrot.lane.b32.xlu1 %v4617_v55, %s7376_s18 }
0x2133   :  { %4539 = vrot.lane.b32.xlu1 %v4535_v53, %s7376_s18 }
0x2137   :  { %4541 = vrot.lane.b32.xlu1 %v4536_v57, %s7376_s18 }
0x219d   :  { %v4275_v20 = vpop.permute.xlu1 %4274 }
0x219e   :  { %v4277_v52 = vsel %vm152_vm1, %v4269_v37, %v4275_v20 }
0x219f   :  { %v4279_v2 = vrot.slane %v4277_v52, 1 }
0x21a1   :  { %v8803_v16 = vpop.permute.xlu1 %4618  ;;  %6472 = vmatmul.mubr.msk.f32.vlgmr.msra.gmra.mrb[24].mxu1 %vm3936_vm6, %v4279_v2 }
0x21a2   :  { %6852 = vmatpush3.bf16.msra.mxu1 %v8423_v24  ;;  %6520 = vmatprep.mubr.msk.f32.mxu1 %vm7374_vm10, %v9157_v11 }
0x21a3   :  { %6853 = vmatprep.subr.bf16.mxu1 %v9156_v39 }
0x21a5   :  { %v4540_v26 = vpop.permute.xlu1 %4539 }
0x21a6   :  { %v4545_v47 = vsel %vm152_vm1, %v4540_v26, 0.0  ;;  %6855 = vmatpush3.bf16.msra.mxu1 %v8435_v18 }
0x21a7   :  { %4546 = vadd.xlane.f32.xlu1 %v4545_v47  ;;  %6856 = vmatprep.subr.bf16.mxu1 %v9156_v39 }
0x21a9   :  { %6521 = vmatmul.mubr.msk.f32.vlgmr.msra.gmra.mrb[26].mxu1 %vm152_vm1, %v8803_v16  ;;  %v4542_v31 = vpop.permute.xlu1 %4541 }
0x21aa   :  { %v4548_v17 = vsel %vm152_vm1, %v4542_v31, 0.0  ;;  %6858 = vmatpush3.bf16.msra.mxu1 %v8628_v21  ;;  %6547 = vmatprep.mubr.msk.f32.mxu1 %vm7374_vm10, %v9157_v11 }
0x21ab   :  { %4549 = vadd.xlane.f32.xlu0 %v4548_v17  ;;  %6859 = vmatprep.subr.bf16.mxu1 %v9156_v39 }
0x21ae   :  { %6861 = vmatpush3.bf16.msra.mxu1 %v8634_v3 }
0x21af   :  { %6862 = vmatprep.subr.bf16.mxu1 %v9156_v39 }
0x21b2   :  { %6864 = vmatpush3.bf16.msra.mxu1 %v8646_v62 }
0x21b3   :  { %6865 = vmatprep.subr.bf16.mxu1 %v9156_v39 }
0x21b6   :  { %6867 = vmatpush3.bf16.msra.mxu1 %v8658_v1 }
0x21b7   :  { %6868 = vmatprep.subr.bf16.mxu1 %v9156_v39 }
0x21ba   :  { %6870 = vmatpush3.bf16.msra.mxu1 %v8670_v54 }
0x21bb   :  { %6871 = vmatprep.subr.bf16.mxu1 %v9156_v39 }
0x21be   :  { %6873 = vmatpush3.bf16.msra.mxu1 %v8682_v49 }
0x21bf   :  { %6898 = vmatprep.subr.bf16.mxu1 %v9156_v39 }
0x2234   :  { %v4547_v48 = vpop.xlane.xlu1 %4546 }
0x2235   :  { %v4556_v35 = vrot.slane %v4547_v48, %v8586_v7 }
0x2238   :  { %v4550_v23 = vpop.xlane.xlu0 %4549 }
0x2239   :  { %v4560_v28 = vrot.slane %v4550_v23, %v8586_v7 }
0x223b   :  { %v4561_v33 = vsel %vm840_vm5, %v4560_v28, %v4556_v35 }
0x223c   :  { %v4563_v9 = vsel %vm3853_vm2, %v4561_v33, -1e+30 }
0x223d   :  { %v4564_v25 = vsel %vm3867_vm3, %v4563_v9, -inf }
0x223e   :  { %4565 = vmax.xlane.f32.xlu0 %v4564_v25 }
0x2274   :  { %v8836_v40 = vpop.f32.mrb[24].mxu1 }
0x2275   :  { %v6473_v41 = vpop.f32.mrb[25].mxu1 }
0x227c   :  { %v4803_v14 = vpop.f32.mrb[26].mxu1 }
0x227d   :  { %v4804_v27 = vadd.f32 %v4803_v14, %v8524_v0  ;;  %v6522_v38 = vpop.f32.mrb[27].mxu1 }
0x227f   :  { %v4814_v45 = vrot.slane %v4804_v27, %v9158_v59 }
0x2281   :  { %v4815_v60 = vrot.slane %v4814_v45, 7  ;;  %4834 = vrot.lane.b32.xlu0 %v4814_v45, %s7369_s16  ;;  %v4819_v61 = vadd.f32 %v4814_v45, %v8765_v44 }
0x2283   :  { %4832 = vrot.lane.b32.xlu1 %v4815_v60, %s7369_s16  ;;  %v4818_v13 = vadd.f32 %v4815_v60, %v8760_v8  ;;  %v5897_v32 = vmul.f32 -1.442695, %v4819_v61 }
0x2285   :  { %v5896_v34 = vmul.f32 -1.442695, %v4818_v13 }
0x22cb   :  { %v4566_v5 = vpop.xlane.xlu0 %4565 }
0x22cc   :  { %v4567_v51 = vsub.f32 %v4563_v9, %v4566_v5 }
0x22ce   :  { %v4568_v56 = vmul.f32 1.442695, %v4567_v51 }
0x22d0   :  { %7257 = vpow2.f32 %v4568_v56  ;;  %v4864_v56 = vrot.slane %v8786_v6, 7 }
0x22d1   :  { %7259 = vpow2.f32 %v5896_v34 }
0x22d2   :  { %7261 = vpow2.f32 %v5897_v32 }
0x22da   :  { %v7258_v46 = vpop.eup %7257 }
0x22db   :  { %v4570_v63 = vmul.f32 %v8593_v4, %v7258_v46  ;;  %v7260_v42 = vpop.eup %7259 }
0x22dc   :  { %v4826_v55 = vadd.f32 1.0, %v7260_v42  ;;  %v7262_v58 = vpop.eup %7261 }
0x22dd   :  { %v4571_v30 = vsel %vm3867_vm3, %v4570_v63, 0.0  ;;  %v4827_v53 = vadd.f32 1.0, %v7262_v58  ;;  %v4865_v58 = vrot.slane %v8788_v12, 7 }
0x22de   :  { %4572 = vadd.xlane.f32.xlu1 %v4571_v30  ;;  %7263 = vrcp.f32 %v4826_v55 }
0x22df   :  { %7265 = vrcp.f32 %v4827_v53 }
0x22e8   :  { %v7264_v57 = vpop.eup %7263 }
0x22e9   :  { %v7266_v2 = vpop.eup %7265  ;;  %v4852_v61 = vsub.f32 1.0, %v7264_v57 }
0x22f3   :  { %v4835_v52 = vpop.permute.xlu0 %4834 }
0x22f4   :  { %v4839_v26 = vmul.f32 %v7266_v2, %v4835_v52 }
0x22f5   :  { %v4833_v37 = vpop.permute.xlu1 %4832 }
0x22f6   :  { %v4838_v20 = vmul.f32 %v7264_v57, %v4833_v37  ;;  %v4853_v37 = vsub.f32 1.0, %v7266_v2 }
0x22f8   :  { %4842 = vrot.lane.b32.xlu0 %v4838_v20, %s7369_s16 }
0x22fc   :  { %4844 = vrot.lane.b32.xlu0 %v4839_v26, %s7369_s16  ;;  %v4869_v26 = vmul.f32 %v7266_v2, %v4865_v58 }
0x236a   :  { %v4843_v17 = vpop.permute.xlu0 %4842 }
0x236b   :  { %v4573_v47 = vpop.xlane.xlu1 %4572  ;;  %v4848_v48 = vadd.f32 %v4843_v17, %v8760_v8 }
0x236c   :  { %v4574_v31 = vmax.f32 %v4573_v47, 1e-09 }
0x236e   :  { %7267 = vrcp.f32 %v4574_v31  ;;  %v4845_v23 = vpop.permute.xlu0 %4844 }
0x236f   :  { %7269 = vtanh.f32 %v4848_v48  ;;  %v4849_v33 = vadd.f32 %v4845_v23, %v8765_v44 }
0x2371   :  { %7271 = vtanh.f32 %v4849_v33 }
0x2378   :  { %v7268_v35 = vpop.eup %7267 }
0x2379   :  { %v4576_v28 = vmul.f32 %v7268_v35, %v4570_v63  ;;  %v7270_v41 = vpop.eup %7269  ;;  %v4868_v63 = vmul.f32 %v7264_v57, %v4864_v56 }
0x237b   :  { %v4580_v9 = vrot.slane %v4576_v28, %v7471_v10  ;;  %v4587_v25 = vrot.slane %v4576_v28, %v9161_v15  ;;  %v7272_v14 = vpop.eup %7271 }
0x237d   :  { %4582 = vbcast.lane.b32.xlu0 %v4580_v9, 256 }
0x2381   :  { %4589 = vbcast.lane.b32.xlu0 %v4587_v25, 256 }
0x2385   :  { %4856 = vrot.lane.b32.xlu0 %v7270_v41, %s7376_s18 }
0x2389   :  { %4858 = vrot.lane.b32.xlu0 %v7272_v14, %s7376_s18 }
0x23ef   :  { %v4583_v8 = vpop.permute.xlu0 %4582 }
0x23f0   :  { %v4591_v27 = vmul.f32 %v4583_v8, %v8497_v19 }
0x23f2   :  { %v4593_v38 = vsel %vm575_vm8, %v4591_v27, 0.0 }
0x23f3   :  { %v4594_v45 = vrot.slane %v4593_v38, 4  ;;  %v4590_v60 = vpop.permute.xlu0 %4589 }
0x23f4   :  { %v4592_v5 = vmul.f32 %v4590_v60, %v8505_v50 }
0x23f5   :  { %v4595_v51 = vadd.f32 %v4594_v45, %v4593_v38 }
0x23f6   :  { %v4600_v13 = vsel %vm575_vm8, %v4592_v5, 0.0 }
0x23f7   :  { %v4596_v34 = vrot.slane %v4595_v51, 2  ;;  %v4601_v46 = vrot.slane %v4600_v13, 4  ;;  %v4857_v32 = vpop.permute.xlu0 %4856 }
0x23f8   :  { %v4862_v30 = vmul.f32 %v4857_v32, %v4852_v61 }
0x23f9   :  { %v4597_v42 = vadd.f32 %v4596_v34, %v4595_v51  ;;  %v4602_v55 = vadd.f32 %v4601_v46, %v4600_v13 }
0x23fa   :  { %v8860_v53 = vadd.f32 %v4868_v63, %v4862_v30 }
0x23fb   :  { %v4603_v20 = vrot.slane %v4602_v55, 2  ;;  %v4859_v52 = vpop.permute.xlu0 %4858  ;;  %v4598_v31 = vrot.slane %v4597_v42, 1 }
0x23fc   :  { %v4875_v6 = vrot.slane %v8860_v53, %v9161_v15  ;;  %v4863_v47 = vmul.f32 %v4859_v52, %v4853_v37 }
0x23fd   :  { %v4604_v17 = vadd.f32 %v4603_v20, %v4602_v55  ;;  %v4599_v35 = vadd.f32 %v4598_v31, %v4597_v42 }
0x23fe   :  { %v8864_v48 = vadd.f32 %v4869_v26, %v4863_v47  ;;  %v4880_v57 = vmul.f32 %v4875_v6, %v8559_v43  ;;  %v8919_v26 = vcombine.high %v8765_v44, %v8765_v44 }
0x23ff   :  { %v4605_v23 = vrot.slane %v4604_v17, 1 }
0x2400   :  { %v4879_v12 = vrot.slane %v8864_v48, %v9161_v15  ;;  %4884 = vrot.lane.b32.xlu1 %v4880_v57, %s7376_s18 }
0x2401   :  { %v4606_v28 = vadd.f32 %v4605_v23, %v4604_v17 }
0x2402   :  { %v5081_v33 = vsel %vm840_vm5, %v4879_v12, %v4875_v6  ;;  %v8872_v9 = vsel %vm4266_vm4, %v4879_v12, %v4875_v6  ;;  %v4881_v25 = vmul.f32 %v4879_v12, %v8576_v22 }
0x2403   :  { %v4623_v2 = vsel %vm840_vm5, %v4606_v28, %v4599_v35 }
0x2404   :  { %4624 = vrot.lane.b32.xlu0 %v4623_v2, %s7370_s4 }
0x2408   :  { %5082 = vrot.lane.b32.xlu0 %v5081_v33, %s7376_s18 }
0x240c   :  { %4886 = vrot.lane.b32.xlu0 %v4881_v25, %s7376_s18 }
0x2472   :  { %v4885_v41 = vpop.permute.xlu1 %4884 }
0x2473   :  { %v4890_v14 = vsel %vm152_vm1, %v4885_v41, 0.0 }
0x2474   :  { %4891 = vadd.xlane.f32.xlu0 %v4890_v14 }
0x2476   :  { %v4625_v8 = vpop.permute.xlu0 %4624 }
0x2477   :  { %v4627_v27 = vsel %vm152_vm1, %v8803_v16, %v4625_v8 }
0x2478   :  { %6510 = vmatmul.mubr.msk.f32.vlgmr.msra.gmra.mrb[30].mxu0 %vm3936_vm6, %v4627_v27 }
0x2479   :  { %6876 = vmatpush3.bf16.msra.mxu0 %v8423_v24  ;;  %6558 = vmatprep.mubr.msk.f32.mxu0 %vm7374_vm10, %v9157_v11 }
0x247a   :  { %v5083_v38 = vpop.permute.xlu0 %5082  ;;  %6877 = vmatprep.subr.bf16.mxu0 %v9156_v39 }
0x247d   :  { %6879 = vmatpush3.bf16.msra.mxu0 %v8435_v18 }
0x247e   :  { %v4887_v45 = vpop.permute.xlu0 %4886  ;;  %6880 = vmatprep.subr.bf16.mxu0 %v9156_v39 }
0x247f   :  { %v4893_v60 = vsel %vm152_vm1, %v4887_v45, 0.0 }
0x2480   :  { %6559 = vmatmul.mubr.msk.f32.vlgmr.msra.gmra.mrb[32].mxu0 %vm152_vm1, %v5083_v38  ;;  %4894 = vadd.xlane.f32.xlu1 %v4893_v60 }
0x2481   :  { %6882 = vmatpush3.bf16.msra.mxu0 %v8628_v21  ;;  %6585 = vmatprep.mubr.msk.f32.mxu0 %vm7374_vm10, %v9157_v11 }
0x2482   :  { %6883 = vmatprep.subr.bf16.mxu0 %v9156_v39 }
0x2485   :  { %6885 = vmatpush3.bf16.msra.mxu0 %v8634_v3 }
0x2486   :  { %6886 = vmatprep.subr.bf16.mxu0 %v9156_v39 }
0x2489   :  { %6888 = vmatpush3.bf16.msra.mxu0 %v8646_v62 }
0x248a   :  { %6889 = vmatprep.subr.bf16.mxu0 %v9156_v39 }
0x248d   :  { %6891 = vmatpush3.bf16.msra.mxu0 %v8658_v1 }
0x248e   :  { %6892 = vmatprep.subr.bf16.mxu0 %v9156_v39 }
0x2491   :  { %6894 = vmatpush3.bf16.msra.mxu0 %v8670_v54 }
0x2492   :  { %6895 = vmatprep.subr.bf16.mxu0 %v9156_v39 }
0x2495   :  { %6897 = vmatpush3.bf16.msra.mxu0 %v8682_v49 }
0x2501   :  { %v4892_v16 = vpop.xlane.xlu0 %4891 }
0x2502   :  { %v4901_v51 = vrot.slane %v4892_v16, %v8586_v7 }
0x250d   :  { %v4895_v5 = vpop.xlane.xlu1 %4894 }
0x250e   :  { %v4905_v56 = vrot.slane %v4895_v5, %v8586_v7 }
0x2510   :  { %v4906_v13 = vsel %vm840_vm5, %v4905_v56, %v4901_v51 }
0x2511   :  { %v4908_v61 = vsel %vm3853_vm2, %v4906_v13, -1e+30 }
0x2512   :  { %v4909_v34 = vsel %vm3867_vm3, %v4908_v61, -inf }
0x2513   :  { %4910 = vmax.xlane.f32.xlu0 %v4909_v34 }
0x254b   :  { %v8910_v46 = vpop.f32.mrb[30].mxu0 }
0x254c   :  { %v6511_v32 = vpop.f32.mrb[31].mxu0 }
0x2553   :  { %v5152_v63 = vpop.f32.mrb[32].mxu0 }
0x2554   :  { %v5153_v30 = vadd.f32 %v5152_v63, %v8524_v0  ;;  %v6560_v42 = vpop.f32.mrb[33].mxu0 }
0x2556   :  { %v5163_v55 = vrot.slane %v5153_v30, %v9158_v59 }
0x2558   :  { %v5164_v58 = vrot.slane %v5163_v55, 1  ;;  %5181 = vrot.lane.b32.xlu0 %v5163_v55, %s7369_s16  ;;  %v5167_v6 = vadd.f32 %v5163_v55, %v8532_v36 }
0x255a   :  { %5183 = vrot.lane.b32.xlu1 %v5164_v58, %s7369_s16  ;;  %v5168_v47 = vadd.f32 %v5164_v58, %v8919_v26  ;;  %v5900_v31 = vmul.f32 -1.442695, %v5167_v6 }
0x255c   :  { %v5901_v57 = vmul.f32 -1.442695, %v5168_v47 }
0x25a0   :  { %v4911_v37 = vpop.xlane.xlu0 %4910 }
0x25a1   :  { %v4912_v20 = vsub.f32 %v4908_v61, %v4911_v37 }
0x25a3   :  { %v4913_v52 = vmul.f32 1.442695, %v4912_v20 }
0x25a5   :  { %7273 = vpow2.f32 %v4913_v52 }
0x25a6   :  { %7275 = vpow2.f32 %v5900_v31 }
0x25a7   :  { %7277 = vpow2.f32 %v5901_v57 }
0x25af   :  { %v7274_v17 = vpop.eup %7273 }
0x25b0   :  { %v4915_v23 = vmul.f32 %v8593_v4, %v7274_v17  ;;  %v7276_v35 = vpop.eup %7275 }
0x25b1   :  { %v5175_v28 = vadd.f32 1.0, %v7276_v35  ;;  %v7278_v33 = vpop.eup %7277 }
0x25b2   :  { %v4916_v12 = vsel %vm3867_vm3, %v4915_v23, 0.0  ;;  %v5176_v2 = vadd.f32 1.0, %v7278_v33 }
0x25b3   :  { %4917 = vadd.xlane.f32.xlu0 %v4916_v12  ;;  %7279 = vrcp.f32 %v5175_v28  ;;  %v5903_v28 = vrot.slane %v8864_v48, 9 }
0x25b4   :  { %7281 = vrcp.f32 %v5176_v2 }
0x25bd   :  { %v7280_v44 = vpop.eup %7279 }
0x25be   :  { %v7282_v8 = vpop.eup %7281  ;;  %v5201_v47 = vsub.f32 1.0, %v7280_v44 }
0x25bf   :  { %v5202_v2 = vsub.f32 1.0, %v7282_v8 }
0x25ca   :  { %v5182_v25 = vpop.permute.xlu0 %5181 }
0x25cb   :  { %v5187_v41 = vmul.f32 %v7280_v44, %v5182_v25 }
0x25cc   :  { %v5184_v14 = vpop.permute.xlu1 %5183 }
0x25cd   :  { %5191 = vrot.lane.b32.xlu1 %v5187_v41, %s7369_s16  ;;  %v5188_v27 = vmul.f32 %v7282_v8, %v5184_v14 }
0x25d1   :  { %5193 = vrot.lane.b32.xlu1 %v5188_v27, %s7369_s16  ;;  %v5220_v27 = vmul.f32 %v7282_v8, %v5903_v28 }
0x263f   :  { %v5192_v60 = vpop.permute.xlu1 %5191 }
0x2640   :  { %v4918_v38 = vpop.xlane.xlu0 %4917  ;;  %v5197_v16 = vadd.f32 %v5192_v60, %v8532_v36 }
0x2641   :  { %v4919_v45 = vmax.f32 %v4918_v38, 1e-09 }
0x2643   :  { %7283 = vrcp.f32 %v4919_v45  ;;  %v5194_v5 = vpop.permute.xlu1 %5193 }
0x2644   :  { %7285 = vtanh.f32 %v5197_v16  ;;  %v5198_v13 = vadd.f32 %v5194_v5, %v8919_v26 }
0x2646   :  { %7287 = vtanh.f32 %v5198_v13 }
0x264d   :  { %v7284_v51 = vpop.eup %7283 }
0x264e   :  { %v4921_v56 = vmul.f32 %v7284_v51, %v4915_v23  ;;  %v7286_v32 = vpop.eup %7285  ;;  %v5902_v23 = vrot.slane %v8860_v53, 9 }
0x2650   :  { %v4925_v61 = vrot.slane %v4921_v56, %v7471_v10  ;;  %v4932_v34 = vrot.slane %v4921_v56, %v9161_v15  ;;  %v7288_v63 = vpop.eup %7287  ;;  %v5219_v33 = vmul.f32 %v7280_v44, %v5902_v23 }
0x2652   :  { %4927 = vbcast.lane.b32.xlu1 %v4925_v61, 256 }
0x2656   :  { %4934 = vbcast.lane.b32.xlu1 %v4932_v34, 256 }
0x265a   :  { %5205 = vrot.lane.b32.xlu1 %v7286_v32, %s7376_s18 }
0x265e   :  { %5207 = vrot.lane.b32.xlu1 %v7288_v63, %s7376_s18 }
0x2662   :  { %4963 = vrot.lane.b32.xlu1 %v8872_v9, %s7376_s18 }
0x26c4   :  { %v4928_v30 = vpop.permute.xlu1 %4927 }
0x26c5   :  { %v4936_v42 = vmul.f32 %v4928_v30, %v8497_v19 }
0x26c7   :  { %v4938_v55 = vsel %vm575_vm8, %v4936_v42, 0.0 }
0x26c8   :  { %v4939_v58 = vrot.slane %v4938_v55, 4  ;;  %v4935_v37 = vpop.permute.xlu1 %4934 }
0x26c9   :  { %v4937_v20 = vmul.f32 %v4935_v37, %v8505_v50 }
0x26ca   :  { %v4940_v52 = vadd.f32 %v4939_v58, %v4938_v55 }
0x26cb   :  { %v4945_v6 = vsel %vm575_vm8, %v4937_v20, 0.0 }
0x26cc   :  { %v4941_v31 = vrot.slane %v4940_v52, 2  ;;  %v4946_v17 = vrot.slane %v4945_v6, 4  ;;  %v5206_v57 = vpop.permute.xlu1 %5205 }
0x26cd   :  { %v5211_v12 = vmul.f32 %v5206_v57, %v5201_v47 }
0x26ce   :  { %v4942_v9 = vadd.f32 %v4941_v31, %v4940_v52  ;;  %v4947_v35 = vadd.f32 %v4946_v17, %v4945_v6 }
0x26cf   :  { %v8940_v14 = vadd.f32 %v5219_v33, %v5211_v12 }
0x26d0   :  { %v4948_v25 = vrot.slane %v4947_v35, 2  ;;  %v5208_v41 = vpop.permute.xlu1 %5207  ;;  %v4943_v45 = vrot.slane %v4942_v9, 1 }
0x26d1   :  { %v5212_v38 = vmul.f32 %v5208_v41, %v5202_v2  ;;  %v8946_v53 = vrot.slane %v8940_v14, %v7471_v10 }
0x26d2   :  { %v4949_v60 = vadd.f32 %v4948_v25, %v4947_v35  ;;  %v4944_v44 = vadd.f32 %v4943_v45, %v4942_v9 }
0x26d3   :  { %v8942_v16 = vadd.f32 %v5220_v27, %v5212_v38  ;;  %v5231_v9 = vmul.f32 %v8946_v53, %v8559_v43 }
0x26d4   :  { %v4950_v5 = vrot.slane %v4949_v60, 1  ;;  %v4964_v13 = vpop.permute.xlu1 %4963 }
0x26d5   :  { %v8950_v48 = vrot.slane %v8942_v16, %v7471_v10  ;;  %v5561_v41 = vrot.slane %v8942_v16, 7 }
0x26d6   :  { %v4951_v51 = vadd.f32 %v4950_v5, %v4949_v60 }
0x26d7   :  { %v5313_v8 = vsel %vm840_vm5, %v8950_v48, %v8946_v53  ;;  %v5232_v28 = vmul.f32 %v8950_v48, %v8576_v22 }
0x26d8   :  { %5314 = vrot.lane.b32.xlu1 %v5313_v8, %s7376_s18  ;;  %v4968_v56 = vsel %vm4266_vm4, %v4951_v51, %v4944_v44 }
0x26d9   :  { %4969 = vrot.lane.b32.xlu0 %v4968_v56, %s7370_s4 }
0x274a   :  { %v8966_v63 = vpop.permute.xlu1 %5314 }
0x274b   :  { %v4970_v61 = vpop.permute.xlu0 %4969 }
0x274c   :  { %v4972_v34 = vsel %vm152_vm1, %v4964_v13, %v4970_v61 }
0x274d   :  { %v4974_v32 = vrot.slane %v4972_v34, 1 }
0x274f   :  { %6548 = vmatmul.mubr.msk.f32.vlgmr.msra.gmra.mrb[28].mxu1 %vm3936_vm6, %v4974_v32 }
0x2750   :  { %6900 = vmatpush3.bf16.msra.mxu1 %v8423_v24  ;;  %6596 = vmatprep.mubr.msk.f32.mxu1 %vm7374_vm10, %v9157_v11 }
0x2751   :  { %6901 = vmatprep.subr.bf16.mxu1 %v9156_v39 }
0x2754   :  { %6903 = vmatpush3.bf16.msra.mxu1 %v8435_v18 }
0x2755   :  { %6904 = vmatprep.subr.bf16.mxu1 %v9156_v39 }
0x2757   :  { %6597 = vmatmul.mubr.msk.f32.vlgmr.msra.gmra.mrb[30].mxu1 %vm152_vm1, %v8966_v63 }
0x2758   :  { %6906 = vmatpush3.bf16.msra.mxu1 %v8628_v21  ;;  %6623 = vmatprep.mubr.msk.f32.mxu1 %vm7374_vm10, %v9157_v11  ;;  %vm5418_vm10 = vcmask 33824  }
0x2759   :  { %6907 = vmatprep.subr.bf16.mxu1 %v9156_v39 }
0x275c   :  { %6909 = vmatpush3.bf16.msra.mxu1 %v8634_v3 }
0x275d   :  { %6910 = vmatprep.subr.bf16.mxu1 %v9156_v39 }
0x2760   :  { %6912 = vmatpush3.bf16.msra.mxu1 %v8646_v62 }
0x2761   :  { %6913 = vmatprep.subr.bf16.mxu1 %v9156_v39 }
0x2764   :  { %6915 = vmatpush3.bf16.msra.mxu1 %v8658_v1 }
0x2765   :  { %6916 = vmatprep.subr.bf16.mxu1 %v9156_v39 }
0x2768   :  { %6918 = vmatpush3.bf16.msra.mxu1 %v8670_v54 }
0x2769   :  { %6919 = vmatprep.subr.bf16.mxu1 %v9156_v39 }
0x276c   :  { %6921 = vmatpush3.bf16.msra.mxu1 %v8682_v49 }
0x2822   :  { %v8983_v11 = vpop.f32.mrb[28].mxu1 }
0x2823   :  { %v6549_v24 = vpop.f32.mrb[29].mxu1 }
0x282a   :  { %v5499_v18 = vpop.f32.mrb[30].mxu1 }
0x282b   :  { %v5500_v21 = vadd.f32 %v5499_v18, %v8524_v0  ;;  %v6598_v3 = vpop.f32.mrb[31].mxu1 }
0x282d   :  { %v5510_v62 = vrot.slane %v5500_v21, %v9158_v59 }
0x282f   :  { %v5511_v30 = vrot.slane %v5510_v62, 7  ;;  %v5515_v39 = vadd.f32 %v5510_v62, %v8919_v26 }
0x2831   :  { %5528 = vrot.lane.b32.xlu1 %v5511_v30, %s7369_s16  ;;  %v5514_v1 = vadd.f32 %v5511_v30, %v8532_v36  ;;  %v5907_v49 = vmul.f32 -1.442695, %v5515_v39 }
0x2833   :  { %v5906_v54 = vmul.f32 -1.442695, %v5514_v1 }
0x2835   :  { %5530 = vrot.lane.b32.xlu1 %v5510_v62, %s7369_s16  ;;  %7289 = vpow2.f32 %v5906_v54 }
0x2836   :  { %7291 = vpow2.f32 %v5907_v49 }
0x283f   :  { %v7290_v42 = vpop.eup %7289 }
0x2840   :  { %v5522_v55 = vadd.f32 1.0, %v7290_v42  ;;  %v7292_v58 = vpop.eup %7291 }
0x2841   :  { %v5523_v0 = vadd.f32 1.0, %v7292_v58 }
0x2842   :  { %7293 = vrcp.f32 %v5522_v55 }
0x2843   :  { %7295 = vrcp.f32 %v5523_v0 }
0x284c   :  { %v7294_v59 = vpop.eup %7293 }
0x284d   :  { %v7296_v52 = vpop.eup %7295 }
0x284e   :  { %v5549_v38 = vsub.f32 1.0, %v7296_v52  ;;  %v5565_v5 = vmul.f32 %v7296_v52, %v5561_v41 }
0x28a3   :  { %v5529_v37 = vpop.permute.xlu1 %5528 }
0x28a4   :  { %v5534_v20 = vmul.f32 %v7294_v59, %v5529_v37 }
0x28a6   :  { %5538 = vrot.lane.b32.xlu1 %v5534_v20, %s7369_s16 }
0x28a7   :  { %v5531_v6 = vpop.permute.xlu1 %5530 }
0x28a8   :  { %v5535_v47 = vmul.f32 %v7296_v52, %v5531_v6  ;;  %v7344_v6 = vld [vmem:[%s9128_s2] sm:$0x3] }
0x28aa   :  { %5540 = vrot.lane.b32.xlu1 %v5535_v47, %s7369_s16 }
0x2918   :  { %v5539_v31 = vpop.permute.xlu1 %5538 }
0x2919   :  { %v5544_v17 = vadd.f32 %v5539_v31, %v8532_v36  ;;  %v5560_v36 = vrot.slane %v8940_v14, 7 }
0x291b   :  { %7297 = vtanh.f32 %v5544_v17  ;;  %v5564_v2 = vmul.f32 %v7294_v59, %v5560_v36 }
0x291c   :  { %v5541_v57 = vpop.permute.xlu1 %5540 }
0x291d   :  { %v5545_v23 = vadd.f32 %v5541_v57, %v8919_v26  ;;  %v5548_v26 = vsub.f32 1.0, %v7294_v59 }
0x291f   :  { %7299 = vtanh.f32 %v5545_v23 }
0x2925   :  { %v7298_v12 = vpop.eup %7297 }
0x2926   :  { %5552 = vrot.lane.b32.xlu0 %v7298_v12, %s7376_s18 }
0x2929   :  { %v7300_v35 = vpop.eup %7299 }
0x292a   :  { %5235 = vrot.lane.b32.xlu0 %v5231_v9, %s7376_s18  ;;  %5554 = vrot.lane.b32.xlu1 %v7300_v35, %s7376_s18 }
0x292e   :  { %5237 = vrot.lane.b32.xlu1 %v5232_v28, %s7376_s18 }
0x2998   :  { %v5553_v33 = vpop.permute.xlu0 %5552 }
0x2999   :  { %v5558_v25 = vmul.f32 %v5553_v33, %v5548_v26 }
0x299b   :  { %v5566_v27 = vadd.f32 %v5564_v2, %v5558_v25 }
0x299c   :  { %v5555_v45 = vpop.permute.xlu1 %5554  ;;  %v5236_v16 = vpop.permute.xlu0 %5235 }
0x299d   :  { %v5571_v60 = vrot.slane %v5566_v27, %v9161_v15  ;;  %v5559_v53 = vmul.f32 %v5555_v45, %v5549_v38  ;;  %v5241_v56 = vsel %vm152_vm1, %v5236_v16, 0.0 }
0x299f   :  { %v5576_v44 = vmul.f32 %v5571_v60, %v8559_v43  ;;  %v5567_v48 = vadd.f32 %v5565_v5, %v5559_v53 }
0x29a0   :  { %v5238_v13 = vpop.permute.xlu1 %5237 }
0x29a1   :  { %v5575_v51 = vrot.slane %v5567_v48, %v9161_v15  ;;  %5580 = vrot.lane.b32.xlu0 %v5576_v44, %s7376_s18  ;;  %v5244_v61 = vsel %vm152_vm1, %v5238_v13, 0.0 }
0x29a3   :  { %v5577_v14 = vmul.f32 %v5575_v51, %v8576_v22  ;;  %v9011_v8 = vsel %vm4266_vm4, %v5575_v51, %v5571_v60 }
0x29a5   :  { %5582 = vrot.lane.b32.xlu1 %v5577_v14, %s7376_s18 }
0x29c0   :  { %5242 = vadd.xlane.f32.xlu0 %v5241_v56 }
0x29c9   :  { %5245 = vadd.xlane.f32.xlu1 %v5244_v61 }
0x2a13   :  { %v5581_v43 = vpop.permute.xlu0 %5580 }
0x2a14   :  { %v5586_v34 = vsel %vm152_vm1, %v5581_v43, 0.0 }
0x2a15   :  { %5587 = vadd.xlane.f32.xlu0 %v5586_v34 }
0x2a17   :  { %v5583_v32 = vpop.permute.xlu1 %5582 }
0x2a18   :  { %v5589_v22 = vsel %vm152_vm1, %v5583_v32, 0.0 }
0x2a19   :  { %5590 = vadd.xlane.f32.xlu0 %v5589_v22 }
0x2a4d   :  { %v5243_v24 = vpop.xlane.xlu0 %5242 }
0x2a4e   :  { %v5252_v21 = vrot.slane %v5243_v24, %v8586_v7 }
0x2a56   :  { %v5246_v18 = vpop.xlane.xlu1 %5245 }
0x2a57   :  { %v5256_v3 = vrot.slane %v5246_v18, %v8586_v7 }
0x2a59   :  { %v5257_v62 = vsel %vm840_vm5, %v5256_v3, %v5252_v21 }
0x2a5a   :  { %v5259_v30 = vsel %vm3853_vm2, %v5257_v62, -1e+30 }
0x2a5b   :  { %v5260_v1 = vsel %vm3867_vm3, %v5259_v30, -inf }
0x2a5c   :  { %5261 = vmax.xlane.f32.xlu1 %v5260_v1 }
0x2aa2   :  { %v5588_v39 = vpop.xlane.xlu0 %5587 }
0x2aa3   :  { %v5597_v49 = vrot.slane %v5588_v39, %v8586_v7 }
0x2aa6   :  { %v5591_v54 = vpop.xlane.xlu0 %5590 }
0x2aa7   :  { %v5601_v42 = vrot.slane %v5591_v54, %v8586_v7 }
0x2aa9   :  { %v5602_v55 = vsel %vm840_vm5, %v5601_v42, %v5597_v49 }
0x2aaa   :  { %v5604_v58 = vsel %vm3853_vm2, %v5602_v55, -1e+30 }
0x2aab   :  { %v5605_v0 = vsel %vm3867_vm3, %v5604_v58, -inf }
0x2aac   :  { %5606 = vmax.xlane.f32.xlu0 %v5605_v0 }
0x2ae9   :  { %v5262_v59 = vpop.xlane.xlu1 %5261 }
0x2aea   :  { %v5263_v37 = vsub.f32 %v5259_v30, %v5262_v59 }
0x2aec   :  { %v5264_v20 = vmul.f32 1.442695, %v5263_v37 }
0x2aee   :  { %7301 = vpow2.f32 %v5264_v20 }
0x2af8   :  { %v7302_v52 = vpop.eup %7301 }
0x2af9   :  { %v5266_v47 = vmul.f32 %v7344_v6, %v7302_v52 }
0x2afb   :  { %v5267_v7 = vsel %vm3867_vm3, %v5266_v47, 0.0 }
0x2afc   :  { %5268 = vadd.xlane.f32.xlu1 %v5267_v7 }
0x2b39   :  { %v5607_v31 = vpop.xlane.xlu0 %5606 }
0x2b3a   :  { %v5608_v17 = vsub.f32 %v5604_v58, %v5607_v31 }
0x2b3c   :  { %v5609_v4 = vmul.f32 1.442695, %v5608_v17 }
0x2b3e   :  { %7303 = vpow2.f32 %v5609_v4 }
0x2b48   :  { %v7304_v57 = vpop.eup %7303 }
0x2b49   :  { %v5611_v23 = vmul.f32 %v7344_v6, %v7304_v57 }
0x2b4b   :  { %v5612_v12 = vsel %vm3867_vm3, %v5611_v23, 0.0 }
0x2b4c   :  { %5613 = vadd.xlane.f32.xlu0 %v5612_v12 }
0x2b89   :  { %v5269_v9 = vpop.xlane.xlu1 %5268 }
0x2b8a   :  { %v5270_v35 = vmax.f32 %v5269_v9, 1e-09 }
0x2b8c   :  { %7305 = vrcp.f32 %v5270_v35 }
0x2b96   :  { %v7306_v28 = vpop.eup %7305 }
0x2b97   :  { %v5272_v36 = vmul.f32 %v7306_v28, %v5266_v47 }
0x2b99   :  { %v5283_v26 = vrot.slane %v5272_v36, %v9161_v15  ;;  %v5276_v33 = vrot.slane %v5272_v36, %v7471_v10 }
0x2b9b   :  { %5285 = vbcast.lane.b32.xlu0 %v5283_v26, 256  ;;  %5278 = vbcast.lane.b32.xlu1 %v5276_v33, 256 }
0x2bd9   :  { %v5614_v2 = vpop.xlane.xlu0 %5613 }
0x2bda   :  { %v5615_v25 = vmax.f32 %v5614_v2, 1e-09 }
0x2bdc   :  { %7307 = vrcp.f32 %v5615_v25 }
0x2be6   :  { %v7308_v41 = vpop.eup %7307 }
0x2be7   :  { %v5617_v27 = vmul.f32 %v7308_v41, %v5611_v23 }
0x2be9   :  { %v5621_v38 = vrot.slane %v5617_v27, %v7471_v10  ;;  %v5628_v45 = vrot.slane %v5617_v27, %v9161_v15  ;;  %v9048_v10 = vld [vmem:[%s9135_s9 + $0x60] ss:$0 sm:$0xff] }
0x2bea   :  { %v5044_v31 = vadd.f32 %v9048_v10, %v8983_v11  ;;  %v4007_v2 = vadd.f32 %v9048_v10, %v8752_v29 }
0x2beb   :  { %5623 = vbcast.lane.b32.xlu1 %v5621_v38, 256 }
0x2bec   :  { %v5047_v23 = vsel %vm4010_vm7, %v5044_v31, -inf  ;;  %v4011_v41 = vsel %vm4010_vm7, %v4007_v2, -inf }
0x2bef   :  { %5630 = vbcast.lane.b32.xlu1 %v5628_v45, 256 }
0x2bf3   :  { %5659 = vrot.lane.b32.xlu1 %v9011_v8, %s7376_s18  ;;  %v9052_v8 = vadd.f32 %v9048_v10, %v8836_v40  ;;  %s7386_s18 = smov 125  }
0x2bf5   :  { %v4352_v43 = vsel %vm4010_vm7, %v9052_v8, -inf }
0x2c0d   :  { %v5286_v60 = vpop.permute.xlu0 %5285  ;;  %v5279_v5 = vpop.permute.xlu1 %5278 }
0x2c0e   :  { %v5288_v53 = vmul.f32 %v5286_v60, %v8505_v50  ;;  %v5287_v44 = vmul.f32 %v5279_v5, %v8497_v19 }
0x2c10   :  { %v5296_v48 = vsel %vm575_vm8, %v5288_v53, 0.0  ;;  %v5289_v51 = vsel %vm575_vm8, %v5287_v44, 0.0 }
0x2c11   :  { %v5297_v15 = vrot.slane %v5296_v48, 4  ;;  %v5290_v14 = vrot.slane %v5289_v51, 4 }
0x2c13   :  { %v5298_v16 = vadd.f32 %v5297_v15, %v5296_v48  ;;  %v5291_v56 = vadd.f32 %v5290_v14, %v5289_v51 }
0x2c15   :  { %v5299_v13 = vrot.slane %v5298_v16, 2  ;;  %v5292_v61 = vrot.slane %v5291_v56, 2 }
0x2c17   :  { %v5300_v34 = vadd.f32 %v5299_v13, %v5298_v16  ;;  %v5293_v32 = vadd.f32 %v5292_v61, %v5291_v56  ;;  %4353 = vmax.xlane.f32.xlu1 %v4352_v43 }
0x2c19   :  { %v5301_v22 = vrot.slane %v5300_v34, 1  ;;  %v5294_v24 = vrot.slane %v5293_v32, 1 }
0x2c1b   :  { %v5302_v18 = vadd.f32 %v5301_v22, %v5300_v34  ;;  %v5295_v21 = vadd.f32 %v5294_v24, %v5293_v32 }
0x2c1d   :  { %v5319_v3 = vsel %vm840_vm5, %v5302_v18, %v5295_v21  ;;  %vm5068_vm5 = vcmask 25624  }
0x2c1e   :  { %5320 = vrot.lane.b32.xlu0 %v5319_v3, %s7370_s4 }
0x2c5d   :  { %v5624_v40 = vpop.permute.xlu1 %5623 }
0x2c5e   :  { %v5632_v62 = vmul.f32 %v5624_v40, %v8497_v19 }
0x2c60   :  { %v5634_v30 = vsel %vm575_vm8, %v5632_v62, 0.0 }
0x2c61   :  { %v5635_v1 = vrot.slane %v5634_v30, 4  ;;  %v5631_v39 = vpop.permute.xlu1 %5630 }
0x2c62   :  { %v5633_v54 = vmul.f32 %v5631_v39, %v8505_v50  ;;  %v4698_v50 = vadd.f32 %v9048_v10, %v8910_v46  ;;  %v9162_v39 = vld [vmem:[#allocation9_spill] sm:$0xff] }
0x2c63   :  { %v5636_v49 = vadd.f32 %v5635_v1, %v5634_v30 }
0x2c64   :  { %v5641_v42 = vsel %vm575_vm8, %v5633_v54, 0.0  ;;  %v4701_v4 = vsel %vm4010_vm7, %v4698_v50, -inf  ;;  %vm4722_vm8 = vcmask 17424  }
0x2c65   :  { %v5637_v55 = vrot.slane %v5636_v49, 2  ;;  %v5642_v58 = vrot.slane %v5641_v42, 4  ;;  %v5660_v12 = vpop.permute.xlu1 %5659 }
0x2c67   :  { %v5638_v0 = vadd.f32 %v5637_v55, %v5636_v49  ;;  %v5643_v59 = vadd.f32 %v5642_v58, %v5641_v42 }
0x2c69   :  { %v5644_v37 = vrot.slane %v5643_v59, 2  ;;  %v5639_v20 = vrot.slane %v5638_v0, 1 }
0x2c6b   :  { %v5645_v52 = vadd.f32 %v5644_v37, %v5643_v59  ;;  %v5640_v47 = vadd.f32 %v5639_v20, %v5638_v0 }
0x2c6d   :  { %v5646_v6 = vrot.slane %v5645_v52, 1 }
0x2c6f   :  { %v5647_v7 = vadd.f32 %v5646_v6, %v5645_v52 }
0x2c71   :  { %v5664_v19 = vsel %vm4266_vm4, %v5647_v7, %v5640_v47 }
0x2c72   :  { %5665 = vrot.lane.b32.xlu0 %v5664_v19, %s7370_s4 }
0x2c90   :  { %v5321_v17 = vpop.permute.xlu0 %5320 }
0x2c91   :  { %v5323_v57 = vsel %vm152_vm1, %v8966_v63, %v5321_v17  ;;  %4702 = vmax.xlane.f32.xlu0 %v4701_v4 }
0x2c92   :  { %6586 = vmatmul.mubr.msk.f32.vlgmr.msra.gmra.mrb[34].mxu0 %vm3936_vm6, %v5323_v57  ;;  %v9164_v57 = vld [vmem:[#allocation10_spill] sm:$0xff] }
0x2c95   :  { %5048 = vmax.xlane.f32.xlu0 %v5047_v23 }
0x2ca4   :  { %v4354_v45 = vpop.xlane.xlu1 %4353 }
0x2ca5   :  { %v4355_v60 = vsub.f32 %v9052_v8, %v4354_v45 }
0x2ca7   :  { %v4356_v53 = vmul.f32 1.442695, %v4355_v60 }
0x2ce4   :  { %v5666_v9 = vpop.permute.xlu0 %5665 }
0x2ce5   :  { %v5668_v35 = vsel %vm152_vm1, %v5660_v12, %v5666_v9  ;;  %vm4372_vm1 = vcmask 9224  }
0x2ce6   :  { %v5670_v46 = vrot.slane %v5668_v35, 1 }
0x2ce8   :  { %6624 = vmatmul.mubr.msk.f32.vlgmr.msra.gmra.mrb[32].mxu1 %vm3936_vm6, %v5670_v46 }
0x2d1e   :  { %v4703_v11 = vpop.xlane.xlu0 %4702 }
0x2d1f   :  { %v4704_v28 = vsub.f32 %v4698_v50, %v4703_v11  ;;  %v9163_v50 = vld [vmem:[#allocation8_spill] sm:$0xff] }
0x2d21   :  { %v4705_v36 = vmul.f32 1.442695, %v4704_v28 }
0x2d22   :  { %v5049_v5 = vpop.xlane.xlu0 %5048 }
0x2d23   :  { %7309 = vpow2.f32 %v4705_v36  ;;  %v5050_v44 = vsub.f32 %v5044_v31, %v5049_v5 }
0x2d24   :  { %7311 = vpow2.f32 %v4356_v53 }
0x2d25   :  { %v5051_v48 = vmul.f32 1.442695, %v5050_v44 }
0x2d27   :  { %7313 = vpow2.f32 %v5051_v48 }
0x2d2d   :  { %v7310_v27 = vpop.eup %7309 }
0x2d2e   :  { %v4707_v38 = vsel %vm4010_vm7, %v7310_v27, 0.0  ;;  %v7312_v16 = vpop.eup %7311 }
0x2d2f   :  { %v4358_v56 = vsel %vm4010_vm7, %v7312_v16, 0.0 }
0x2d31   :  { %v7314_v13 = vpop.eup %7313 }
0x2d32   :  { %v5053_v8 = vsel %vm4010_vm7, %v7314_v13, 0.0 }
0x2d65   :  { %v5393_v26 = vpop.f32.mrb[34].mxu0 }
0x2d66   :  { %v5394_v63 = vadd.f32 %v9048_v10, %v5393_v26  ;;  %v6587_v33 = vpop.f32.mrb[35].mxu0 }
0x2d68   :  { %v5397_v25 = vsel %vm4010_vm7, %v5394_v63, -inf }
0x2d69   :  { %5398 = vmax.xlane.f32.xlu1 %v5397_v25 }
0x2d6d   :  { %4012 = vmax.xlane.f32.xlu1 %v4011_v41  ;;  %v9166_v41 = vld [vmem:[#allocation12_spill] sm:$0xff] }
0x2d71   :  { %4708 = vadd.xlane.f32.xlu1 %v4707_v38 }
0x2dbb   :  { %v5739_v29 = vpop.f32.mrb[32].mxu1 }
0x2dbc   :  { %v5740_v51 = vadd.f32 %v9048_v10, %v5739_v29  ;;  %v6625_v15 = vpop.f32.mrb[33].mxu1 }
0x2dbe   :  { %v5743_v14 = vsel %vm4010_vm7, %v5740_v51, -inf }
0x2dbf   :  { %5744 = vmax.xlane.f32.xlu0 %v5743_v14 }
0x2dc3   :  { %4359 = vadd.xlane.f32.xlu0 %v4358_v56 }
0x2dc7   :  { %5054 = vadd.xlane.f32.xlu0 %v5053_v8 }
0x2df6   :  { %v5399_v61 = vpop.xlane.xlu1 %5398 }
0x2df7   :  { %v5400_v43 = vsub.f32 %v5394_v63, %v5399_v61  ;;  %v9165_v63 = vld [vmem:[#allocation11_spill] sm:$0xff] }
0x2df9   :  { %v5401_v34 = vmul.f32 1.442695, %v5400_v43 }
0x2dfa   :  { %v4013_v32 = vpop.xlane.xlu1 %4012 }
0x2dfb   :  { %7315 = vpow2.f32 %v5401_v34  ;;  %v4014_v22 = vsub.f32 %v4007_v2, %v4013_v32  ;;  %v9167_v32 = vld [vmem:[#allocation13_spill] sm:$0xff] }
0x2dfd   :  { %v4015_v24 = vmul.f32 1.442695, %v4014_v22 }
0x2dfe   :  { %v4709_v10 = vpop.xlane.xlu1 %4708 }
0x2dff   :  { %7317 = vpow2.f32 %v4015_v24 }
0x2e00   :  { %7319 = vlog2.f32 %v4709_v10 }
0x2e05   :  { %v7316_v18 = vpop.eup %7315 }
0x2e06   :  { %v5403_v21 = vsel %vm4010_vm7, %v7316_v18, 0.0 }
0x2e07   :  { %5404 = vadd.xlane.f32.xlu1 %v5403_v21 }
0x2e09   :  { %v7318_v3 = vpop.eup %7317 }
0x2e0a   :  { %v7320_v40 = vpop.eup %7319  ;;  %v4017_v62 = vsel %vm4010_vm7, %v7318_v3, 0.0 }
0x2e0b   :  { %v4711_v30 = vmul.f32 0.6931472, %v7320_v40  ;;  %4018 = vadd.xlane.f32.xlu1 %v4017_v62 }
0x2e0d   :  { %v4712_v1 = vsub.f32 %v4704_v28, %v4711_v30 }
0x2e0f   :  { %v4717_v54 = vmul.f32 %v9162_v39, %v4712_v1 }
0x2e11   :  { %v4718_v49 = vsel %vm4010_vm7, %v4717_v54, 0.0 }
0x2e12   :  { %4719 = vadd.xlane.f32.xlu1 %v4718_v49 }
0x2e4c   :  { %v5745_v42 = vpop.xlane.xlu0 %5744 }
0x2e4d   :  { %v5746_v55 = vsub.f32 %v5740_v51, %v5745_v42 }
0x2e4f   :  { %v5747_v58 = vmul.f32 1.442695, %v5746_v55 }
0x2e50   :  { %v4360_v0 = vpop.xlane.xlu0 %4359 }
0x2e51   :  { %7321 = vpow2.f32 %v5747_v58 }
0x2e52   :  { %7323 = vlog2.f32 %v4360_v0 }
0x2e54   :  { %v5055_v59 = vpop.xlane.xlu0 %5054 }
0x2e55   :  { %7325 = vlog2.f32 %v5055_v59 }
0x2e5b   :  { %v7322_v37 = vpop.eup %7321 }
0x2e5c   :  { %v7324_v20 = vpop.eup %7323  ;;  %v5749_v52 = vsel %vm4010_vm7, %v7322_v37, 0.0 }
0x2e5d   :  { %v4362_v6 = vmul.f32 0.6931472, %v7324_v20  ;;  %5750 = vadd.xlane.f32.xlu0 %v5749_v52 }
0x2e5f   :  { %v7326_v47 = vpop.eup %7325  ;;  %v4363_v7 = vsub.f32 %v4355_v60, %v4362_v6  ;;  %v9102_v60 = vld [vmem:[%s9129_s3] sm:$0x3]  ;;  %s7385_s3 = smov 127  }
0x2e60   :  { %v5057_v19 = vmul.f32 0.6931472, %v7326_v47  ;;  %v5778_v62 = vsel %vm5777_vm9, %v9102_v60, 0.0 }
0x2e61   :  { %v4367_v31 = vmul.f32 %v9163_v50, %v4363_v7 }
0x2e62   :  { %v5058_v17 = vsub.f32 %v5050_v44, %v5057_v19 }
0x2e63   :  { %v4368_v4 = vsel %vm4010_vm7, %v4367_v31, 0.0 }
0x2e64   :  { %4369 = vadd.xlane.f32.xlu0 %v4368_v4  ;;  %v5063_v23 = vmul.f32 %v9164_v57, %v5058_v17 }
0x2e66   :  { %v5064_v12 = vsel %vm4010_vm7, %v5063_v23, 0.0 }
0x2e68   :  { %5065 = vadd.xlane.f32.xlu0 %v5064_v12 }
0x2e94   :  { %v5405_v9 = vpop.xlane.xlu1 %5404 }
0x2e95   :  { %7327 = vlog2.f32 %v5405_v9 }
0x2e98   :  { %v4019_v35 = vpop.xlane.xlu1 %4018 }
0x2e99   :  { %7329 = vlog2.f32 %v4019_v35 }
0x2e9f   :  { %v7328_v46 = vpop.eup %7327  ;;  %v4720_v16 = vpop.xlane.xlu1 %4719 }
0x2ea0   :  { %v5407_v11 = vmul.f32 0.6931472, %v7328_v46  ;;  %v4721_v34 = vmul.f32 %v4720_v16, %v9102_v60 }
0x2ea2   :  { %v5408_v28 = vsub.f32 %v5400_v43, %v5407_v11  ;;  %v4723_v40 = vsel %vm4722_vm8, %v4721_v34, 0.0 }
0x2ea3   :  { %v7330_v36 = vpop.eup %7329  ;;  %v4724_v39 = vrot.slane %v4723_v40, 4 }
0x2ea4   :  { %v4021_v26 = vmul.f32 0.6931472, %v7330_v36  ;;  %v5413_v33 = vmul.f32 %v9165_v63, %v5408_v28 }
0x2ea5   :  { %v4725_v42 = vadd.f32 %v4724_v39, %v4723_v40 }
0x2ea6   :  { %v4022_v2 = vsub.f32 %v4014_v22, %v4021_v26  ;;  %v5414_v25 = vsel %vm4010_vm7, %v5413_v33, 0.0 }
0x2ea7   :  { %5415 = vadd.xlane.f32.xlu1 %v5414_v25 }
0x2ea8   :  { %v4025_v27 = vmul.f32 %v9166_v41, %v4022_v2 }
0x2eaa   :  { %v4026_v38 = vsel %vm4010_vm7, %v4025_v27, 0.0 }
0x2eab   :  { %4027 = vadd.xlane.f32.xlu1 %v4026_v38 }
0x2eea   :  { %v5751_v45 = vpop.xlane.xlu0 %5750 }
0x2eeb   :  { %7331 = vlog2.f32 %v5751_v45 }
0x2ef1   :  { %v4370_v5 = vpop.xlane.xlu0 %4369 }
0x2ef2   :  { %v4371_v53 = vmul.f32 %v4370_v5, %v9102_v60 }
0x2ef4   :  { %v4373_v44 = vsel %vm4372_vm1, %v4371_v53, 0.0 }
0x2ef5   :  { %v7332_v48 = vpop.eup %7331  ;;  %v4374_v29 = vrot.slane %v4373_v44, 4  ;;  %v5066_v51 = vpop.xlane.xlu0 %5065 }
0x2ef6   :  { %v5753_v15 = vmul.f32 0.6931472, %v7332_v48  ;;  %v5067_v14 = vmul.f32 %v5066_v51, %v9102_v60 }
0x2ef7   :  { %v4375_v56 = vadd.f32 %v4374_v29, %v4373_v44 }
0x2ef8   :  { %v5754_v13 = vsub.f32 %v5746_v55, %v5753_v15  ;;  %v5069_v8 = vsel %vm5068_vm5, %v5067_v14, 0.0  ;;  %v4726_v55 = vrot.slane %v4725_v42, 2 }
0x2ef9   :  { %v4376_v61 = vrot.slane %v4375_v56, 2  ;;  %v5070_v43 = vrot.slane %v5069_v8, 4 }
0x2efa   :  { %v5759_v22 = vmul.f32 %v9167_v32, %v5754_v13  ;;  %v4727_v58 = vadd.f32 %v4726_v55, %v4725_v42 }
0x2efb   :  { %v4377_v24 = vadd.f32 %v4376_v61, %v4375_v56  ;;  %v5071_v10 = vadd.f32 %v5070_v43, %v5069_v8 }
0x2efc   :  { %v5760_v18 = vsel %vm4010_vm7, %v5759_v22, 0.0  ;;  %v4728_v0 = vrot.slane %v4727_v58, 1 }
0x2efd   :  { %v4378_v21 = vrot.slane %v4377_v24, 1  ;;  %v5072_v3 = vrot.slane %v5071_v10, 2  ;;  %5761 = vadd.xlane.f32.xlu0 %v5760_v18 }
0x2efe   :  { %v4729_v59 = vadd.f32 %v4728_v0, %v4727_v58 }
0x2eff   :  { %v5073_v30 = vadd.f32 %v5072_v3, %v5071_v10  ;;  %v4379_v1 = vadd.f32 %v4378_v21, %v4377_v24 }
0x2f01   :  { %v5074_v54 = vrot.slane %v5073_v30, 1  ;;  %4381 = vrot.lane.b32.xlu1 %v4379_v1, %s7385_s3  ;;  %5779 = vadd.xlane.f32.xlu0 %v5778_v62 }
0x2f03   :  { %v5075_v49 = vadd.f32 %v5074_v54, %v5073_v30 }
0x2f05   :  { %5077 = vrot.lane.b32.xlu1 %v5075_v49, %s7386_s18 }
0x2f17   :  { %4731 = vrot.lane.b32.xlu0 %v4729_v59, %s7387_s23 }
0x2f34   :  { %v5416_v37 = vpop.xlane.xlu1 %5415 }
0x2f35   :  { %v5417_v20 = vmul.f32 %v5416_v37, %v9102_v60 }
0x2f37   :  { %v5419_v52 = vsel %vm5418_vm10, %v5417_v20, 0.0 }
0x2f38   :  { %v5420_v6 = vrot.slane %v5419_v52, 4  ;;  %v4028_v28 = vpop.xlane.xlu1 %4027 }
0x2f39   :  { %v4029_v36 = vmul.f32 %v4028_v28, %v9102_v60 }
0x2f3a   :  { %v5421_v47 = vadd.f32 %v5420_v6, %v5419_v52 }
0x2f3b   :  { %v4031_v33 = vsel %vm4030_vm13, %v4029_v36, 0.0 }
0x2f3c   :  { %v5422_v7 = vrot.slane %v5421_v47, 2  ;;  %v4032_v25 = vrot.slane %v4031_v33, 4 }
0x2f3e   :  { %v5423_v19 = vadd.f32 %v5422_v7, %v5421_v47  ;;  %v4033_v27 = vadd.f32 %v4032_v25, %v4031_v33 }
0x2f40   :  { %v5424_v50 = vrot.slane %v5423_v19, 1  ;;  %v4034_v45 = vrot.slane %v4033_v27, 2 }
0x2f42   :  { %v5425_v31 = vadd.f32 %v5424_v50, %v5423_v19  ;;  %v4035_v53 = vadd.f32 %v4034_v45, %v4033_v27 }
0x2f44   :  { %5427 = vrot.lane.b32.xlu1 %v5425_v31, %s7388_s24  ;;  %v4036_v48 = vrot.slane %v4035_v53, 1 }
0x2f46   :  { %v4037_v15 = vadd.f32 %v4036_v48, %v4035_v53 }
0x2f73   :  { %v4382_v29 = vpop.permute.xlu1 %4381 }
0x2f74   :  { %v4384_v16 = vadd.f32 %v4382_v29, %v4037_v15 }
0x2f77   :  { %v5078_v56 = vpop.permute.xlu1 %5077 }
0x2f8a   :  { %v5762_v17 = vpop.xlane.xlu0 %5761 }
0x2f8b   :  { %v5763_v4 = vmul.f32 %v5762_v17, %v9102_v60 }
0x2f8d   :  { %v5765_v57 = vsel %vm5764_vm12, %v5763_v4, 0.0 }
0x2f8e   :  { %v5766_v23 = vrot.slane %v5765_v57, 4  ;;  %v5780_v26 = vpop.xlane.xlu0 %5779 }
0x2f8f   :  { %v5781_v63 = vsel %vm3453_vm11, %v5780_v26, 0.0  ;;  %vm5793_vm11 = vcmask 0  }
0x2f90   :  { %v5767_v12 = vadd.f32 %v5766_v23, %v5765_v57  ;;  %v5782_v2 = vrot.slane %v5781_v63, 4 }
0x2f92   :  { %v5768_v9 = vrot.slane %v5767_v12, 2  ;;  %v5783_v41 = vadd.f32 %v5782_v2, %v5781_v63  ;;  %v4732_v60 = vpop.permute.xlu0 %4731 }
0x2f93   :  { %v4734_v13 = vadd.f32 %v4732_v60, %v4384_v16 }
0x2f94   :  { %v5769_v35 = vadd.f32 %v5768_v9, %v5767_v12  ;;  %v5784_v38 = vrot.slane %v5783_v41, 2 }
0x2f95   :  { %v5080_v61 = vadd.f32 %v5078_v56, %v4734_v13 }
0x2f96   :  { %v5770_v46 = vrot.slane %v5769_v35, 1  ;;  %v5785_v5 = vadd.f32 %v5784_v38, %v5783_v41 }
0x2f98   :  { %v5771_v11 = vadd.f32 %v5770_v46, %v5769_v35  ;;  %v5786_v44 = vrot.slane %v5785_v5, 1 }
0x2f9a   :  { %5773 = vrot.lane.b32.xlu0 %v5771_v11, %s7389_s0  ;;  %v5787_v51 = vadd.f32 %v5786_v44, %v5785_v5 }
0x2f9c   :  { %v5788_v14 = vmax.f32 %v5787_v51, 1.0 }
0x2f9e   :  { %7333 = vrcp.f32 %v5788_v14 }
0x2fa8   :  { %v7334_v24 = vpop.eup %7333 }
0x2fb6   :  { %v5428_v8 = vpop.permute.xlu1 %5427 }
0x2fb7   :  { %v5430_v43 = vadd.f32 %v5428_v8, %v5080_v61 }
0x300c   :  { %v5774_v34 = vpop.permute.xlu0 %5773 }
0x300d   :  { %v5776_v32 = vadd.f32 %v5774_v34, %v5430_v43 }
0x300f   :  { %v5789_v22 = vsub.f32 0.0, %v5776_v32 }
0x3011   :  { %v5791_v10 = vmul.f32 %v7334_v24, %v5789_v22 }
0x3013   :  { %v5909_v18 = vadd.f32 -0.1, %v5791_v10 }
0x3015   :  { %5794 = vst.msk [vmem:[#allocation2] sm:$0x1] %vm5793_vm11, %v5909_v18 }
0x3016   :  { %7356 = shalt.err (!%p7353_p4)
}
0x3017   :  { %s7357_s30 = scalar_lea.hbm %s9136_s10, 16 }
0x3018   :  { %p7358_p5 = scmp.ne.s32.totalorder %s9136_s10, %s7357_s30  ;;  %p7361_p6 = scmp.lt.u32.totalorder %s7357_s30, %s9136_s10 }
0x301a   :  { %p7363_p7 = pnand %p7361_p6, %p7358_p5 }
0x301c   :  { %7366 = shalt.err (!%p7363_p7)
}
0x301d   :  { %5804 = dma.vmem_to_hbm [thread:$0]  %s5802_s25, 16, %s9136_s10, [#allocation3]  }
0x301e   :  { %7367 = dma.done.wait [#allocation3], 16  }
0x301f   :  { %7368 = vsyncadd [#allocation3], 4294967280 }
0x3020   :  { %5808 = vsyncpa [#allocation3], 1 }

</bundles_post_ra>
